<compile_context>
chip_gen: v7x
topology: tpu7x:2x2x1
jax: 0.10.0
libtpu: 0.0.40
codegen_flags: <defaults>
</compile_context>

<pallas_src>
import functools

import jax
import jax.numpy as jnp
from jax import lax
from jax.experimental import pallas as pl
from jax.experimental.pallas import tpu as pltpu


# Re-budgeted for v7x's 64 MiB/TC (worst-case per-call footprint computed at
# ~13 MB for ViT-L sized layers); also valid on v5e/v6e (128 MiB VMEM).
_VMEM_LIMIT = 32 * 1024 * 1024


def _round_up(x, m):
    return ((x + m - 1) // m) * m


def _pad_to(arr, shape):
    pads = [(0, t - s) for s, t in zip(arr.shape, shape)]
    if any(p[1] for p in pads):
        return jnp.pad(arr, pads)
    return arr


def _pick_tile(dim, pref, align):
    """Pick (tile, padded_dim): lane/sublane aligned, tile divides padded_dim,
    preferring the largest tile whose zero-padding overhead is small."""
    dimp = _round_up(dim, align)
    if dimp <= pref:
        return dimp, dimp
    best_t, best_p = align, _round_up(dimp, align)
    t = pref
    while t >= align:
        p = _round_up(dimp, t)
        if p - dimp <= dimp // 8:          # <=12.5% padding -> take biggest
            return t, p
        if p < best_p:
            best_t, best_p = t, p
        t //= 2
    return best_t, best_p


# --------------------------------------------------------------------------
# Tiled linear (+ optional GELU) kernel: bf16 MXU operands, f32 accumulator.
# --------------------------------------------------------------------------

def _linear_kernel(x_ref, w_ref, b_ref, o_ref, acc_ref, *, activation):
    k = pl.program_id(2)

    @pl.when(k == 0)
    def _():
        acc_ref[...] = jnp.zeros_like(acc_ref)

    acc_ref[...] += jnp.dot(x_ref[...].astype(jnp.bfloat16), w_ref[...],
                            preferred_element_type=jnp.float32)

    @pl.when(k == pl.num_programs(2) - 1)
    def _():
        y = acc_ref[...] + b_ref[...]
        if activation == "gelu":
            # TODO(synk): tanh-approx GELU assumed (torch nn.GELU default is
            # the exact erf form; small systematic numerical difference).
            y = jax.nn.gelu(y, approximate=True)
        o_ref[...] = y.astype(o_ref.dtype)


def linear(x, w, b, activation=None, *, tm_pref=512, tn_pref=512, tk_pref=512):
    """x: [M, K], w: [K, N], b: [N] -> [M, N]  (tiled, K-accumulated)."""
    M, K = x.shape
    N = w.shape[1]
    out_dtype = x.dtype

    tm, Mp = _pick_tile(M, tm_pref, 16)     # sublane dim
    tn, Np = _pick_tile(N, tn_pref, 128)    # lane-dense output blocks
    tk, Kp = _pick_tile(K, tk_pref, 128)

    xp = _pad_to(x, (Mp, Kp))
    wp = _pad_to(w, (Kp, Np)).astype(jnp.bfloat16)
    bp = _pad_to(b.reshape(1, N), (1, Np))

    out = pl.pallas_call(
        functools.partial(_linear_kernel, activation=activation),
        out_shape=jax.ShapeDtypeStruct((Mp, Np), out_dtype),
        grid=(Mp // tm, Np // tn, Kp // tk),
        in_specs=[
            pl.BlockSpec((tm, tk), lambda i, j, k: (i, k)),
            pl.BlockSpec((tk, tn), lambda i, j, k: (k, j)),
            pl.BlockSpec((1, tn), lambda i, j, k: (0, j)),
        ],
        out_specs=pl.BlockSpec((tm, tn), lambda i, j, k: (i, j)),
        scratch_shapes=[pltpu.VMEM((tm, tn), jnp.float32)],
        compiler_params=pltpu.CompilerParams(
            dimension_semantics=("parallel", "parallel", "arbitrary"),
            vmem_limit_bytes=_VMEM_LIMIT),
    )(xp, wp, bp)

    if (Mp, Np) != (M, N):
        out = out[:M, :N]
    return out


# --------------------------------------------------------------------------
# Tiled linear fused with residual-add + LayerNorm epilogue.
# Output feature dim is padded to a lane-dense multiple of 128; LN statistics
# use sums divided by the *real* N (padded columns are exactly zero in
# w / bias / residual, so sums are unaffected), via var = E[y^2] - E[y]^2.
# --------------------------------------------------------------------------

def _linear_ln_kernel(x_ref, w_ref, b_ref, r_ref, g_ref, be_ref, o_ref,
                      acc_ref, *, eps, n_valid):
    k = pl.program_id(1)

    @pl.when(k == 0)
    def _():
        acc_ref[...] = jnp.zeros_like(acc_ref)

    acc_ref[...] += jnp.dot(x_ref[...].astype(jnp.bfloat16), w_ref[...],
                            preferred_element_type=jnp.float32)

    @pl.when(k == pl.num_programs(1) - 1)
    def _():
        y = acc_ref[...] + b_ref[...] + r_ref[...]        # bias + residual
        inv_n = 1.0 / n_valid
        mean = jnp.sum(y, axis=-1, keepdims=True) * inv_n
        ex2 = jnp.sum(y * y, axis=-1, keepdims=True) * inv_n
        var = ex2 - mean * mean
        yn = (y - mean) * lax.rsqrt(var + eps)
        # Padded gamma/beta are zero -> padded output columns are zero.
        o_ref[...] = (yn * g_ref[...] + be_ref[...]).astype(o_ref.dtype)


def linear_residual_layernorm(x, w, b, res, gamma, beta, *, eps=1e-5,
                              tm_pref=512, tk_pref=512):
    """LayerNorm((x @ w + b) + res) over last dim.  x: [M, K], res: [M, N]."""
    M, K = x.shape
    N = w.shape[1]                      # = d_model
    out_dtype = x.dtype

    tm, Mp = _pick_tile(M, tm_pref, 16)
    tk, Kp = _pick_tile(K, tk_pref, 128)
    Np = _round_up(N, 128)              # full (padded) row so LN sees everything

    xp = _pad_to(x, (Mp, Kp))
    wp = _pad_to(w, (Kp, Np)).astype(jnp.bfloat16)
    rp = _pad_to(res, (Mp, Np))
    b2 = _pad_to(b.reshape(1, N), (1, Np))
    g2 = _pad_to(gamma.reshape(1, N), (1, Np))
    be2 = _pad_to(beta.reshape(1, N), (1, Np))

    out = pl.pallas_call(
        functools.partial(_linear_ln_kernel, eps=eps, n_valid=N),
        out_shape=jax.ShapeDtypeStruct((Mp, Np), out_dtype),
        grid=(Mp // tm, Kp // tk),
        in_specs=[
            pl.BlockSpec((tm, tk), lambda i, k: (i, k)),
            pl.BlockSpec((tk, Np), lambda i, k: (k, 0)),
            pl.BlockSpec((1, Np), lambda i, k: (0, 0)),
            pl.BlockSpec((tm, Np), lambda i, k: (i, 0)),
            pl.BlockSpec((1, Np), lambda i, k: (0, 0)),
            pl.BlockSpec((1, Np), lambda i, k: (0, 0)),
        ],
        out_specs=pl.BlockSpec((tm, Np), lambda i, k: (i, 0)),
        scratch_shapes=[pltpu.VMEM((tm, Np), jnp.float32)],
        compiler_params=pltpu.CompilerParams(
            dimension_semantics=("parallel", "arbitrary"),
            vmem_limit_bytes=_VMEM_LIMIT),
    )(xp, wp, b2, rp, g2, be2)

    if (Mp, Np) != (M, N):
        out = out[:M, :N]
    return out


# --------------------------------------------------------------------------
# Multi-head attention on the packed QKV slab.
# Grid = (batch, query-tile); S is padded to a multiple of 128 (padded key
# columns masked before softmax).  Head split happens via ref slicing; each
# head's result is stored directly into its column slice of the output block.
# q.k^T uses dot_general contracting dim 1 of both operands (no transpose).
# --------------------------------------------------------------------------

def _attn_kernel(q_ref, kv_ref, o_ref, *, nheads, d_model, scale,
                 s_valid, s_padded):
    dh = d_model // nheads
    tq = q_ref.shape[1]
    need_mask = s_valid != s_padded
    if need_mask:
        kidx = lax.broadcasted_iota(jnp.int32, (tq, s_padded), 1)
        kmask = kidx < s_valid

    for h in range(nheads):
        q = q_ref[0, :, h * dh:(h + 1) * dh].astype(jnp.bfloat16)
        k = kv_ref[0, :, d_model + h * dh:d_model + (h + 1) * dh]
        v = kv_ref[0, :, 2 * d_model + h * dh:2 * d_model + (h + 1) * dh]
        s = lax.dot_general(q, k.astype(jnp.bfloat16),
                            (((1,), (1,)), ((), ())),
                            preferred_element_type=jnp.float32) * scale
        if need_mask:
            s = jnp.where(kmask, s, -1e30)
        s = s - jnp.max(s, axis=-1, keepdims=True)
        p = jnp.exp(s)
        l = jnp.sum(p, axis=-1, keepdims=True)
        o = jnp.dot(p.astype(jnp.bfloat16), v.astype(jnp.bfloat16),
                    preferred_element_type=jnp.float32)
        o = o * pl.reciprocal(l, approx=True)
        o_ref[0, :, h * dh:(h + 1) * dh] = o.astype(o_ref.dtype)


def fused_attention(qkv, nheads, d_model, *, tq=128):
    """qkv: [B, S, 3*d_model] -> [B, S, d_model]."""
    B, S, threeD = qkv.shape
    dh = d_model // nheads
    scale = 1.0 / (dh ** 0.5)
    Sp = _round_up(S, 128)
    tq = min(tq, Sp)
    qkvp = _pad_to(qkv, (B, Sp, threeD))

    out = pl.pallas_call(
        functools.partial(_attn_kernel, nheads=nheads, d_model=d_model,
                          scale=scale, s_valid=S, s_padded=Sp),
        out_shape=jax.ShapeDtypeStruct((B, Sp, d_model), qkv.dtype),
        grid=(B, Sp // tq),
        in_specs=[
            # Query rows for this (batch, q-tile).
            pl.BlockSpec((1, tq, threeD), lambda b, qi: (b, qi, 0)),
            # Full K/V slab for this batch (same block across q-tiles -> no
            # re-DMA; the extra grid axis still feeds pipelining / v7x cores).
            pl.BlockSpec((1, Sp, threeD), lambda b, qi: (b, 0, 0)),
        ],
        out_specs=pl.BlockSpec((1, tq, d_model), lambda b, qi: (b, qi, 0)),
        compiler_params=pltpu.CompilerParams(
            dimension_semantics=("parallel", "parallel"),
            vmem_limit_bytes=_VMEM_LIMIT),
    )(qkvp, qkvp)

    if Sp != S:
        out = out[:, :S]
    return out


# --------------------------------------------------------------------------
# Parameters (deterministic synthetic init)
# --------------------------------------------------------------------------

def init_params(key, *, patch_dim, d_model, nheads, num_layers, num_classes,
                num_patches):
    def nrm(k, shape, scale=0.02):
        return scale * jax.random.normal(k, shape, dtype=jnp.float32)

    keys = jax.random.split(key, 4 + num_layers)
    params = {
        "proj_w": nrm(keys[0], (patch_dim, d_model)),
        "proj_b": jnp.zeros((d_model,), jnp.float32),
        "cls": jax.random.normal(keys[1], (1, 1, d_model), jnp.float32),
        "pos": jax.random.normal(keys[2], (1, num_patches + 1, d_model),
                                 jnp.float32),
        "fc_w": nrm(keys[3], (d_model, num_classes)),
        "fc_b": jnp.zeros((num_classes,), jnp.float32),
        "layers": [],
    }
    d_ff = 4 * d_model
    for li in range(num_layers):
        lk = jax.random.split(keys[4 + li], 4)
        params["layers"].append({
            "wqkv": nrm(lk[0], (d_model, 3 * d_model)),
            "bqkv": jnp.zeros((3 * d_model,), jnp.float32),
            "wo": nrm(lk[1], (d_model, d_model)),
            "bo": jnp.zeros((d_model,), jnp.float32),
            "ln1_g": jnp.ones((d_model,), jnp.float32),
            "ln1_b": jnp.zeros((d_model,), jnp.float32),
            "w1": nrm(lk[2], (d_model, d_ff)),
            "b1": jnp.zeros((d_ff,), jnp.float32),
            "w2": nrm(lk[3], (d_ff, d_model)),
            "b2": jnp.zeros((d_model,), jnp.float32),
            "ln2_g": jnp.ones((d_model,), jnp.float32),
            "ln2_b": jnp.zeros((d_model,), jnp.float32),
        })
    return params


# --------------------------------------------------------------------------
# ViT forward
# --------------------------------------------------------------------------

def vit_forward(x, params, *, patch_size, nheads, net_type="classification"):
    N, C, H, W = x.shape
    ph, pw = H // patch_size, W // patch_size
    d_model = params["proj_w"].shape[1]

    # rearrange 'n c (h px) (w py) -> n (h w) (px py c)'  (glue, plain JAX)
    p = x.reshape(N, C, ph, patch_size, pw, patch_size)
    p = p.transpose(0, 2, 4, 3, 5, 1)                 # n, h, w, px, py, c
    patches = p.reshape(N, ph * pw, patch_size * patch_size * C)

    # patch projection (tiled Pallas matmul)
    P = ph * pw
    flat = patches.reshape(N * P, -1)
    proj = linear(flat, params["proj_w"], params["proj_b"]).reshape(N, P, d_model)

    # prepend cls token, add positional embedding (glue)
    cls = jnp.broadcast_to(params["cls"], (N, 1, d_model))
    out = jnp.concatenate([cls, proj], axis=1) + params["pos"]
    S = P + 1

    # transformer encoder layers (assumed post-LN structure; see TODO above)
    for layer in params["layers"]:
        flat_in = out.reshape(N * S, d_model)
        qkv = linear(flat_in, layer["wqkv"], layer["bqkv"])        # [N*S, 3d]
        attn = fused_attention(qkv.reshape(N, S, 3 * d_model), nheads, d_model)
        attn = attn.reshape(N * S, d_model)
        # wo projection fused with residual-add + LayerNorm
        h = linear_residual_layernorm(attn, layer["wo"], layer["bo"],
                                      flat_in, layer["ln1_g"], layer["ln1_b"])
        ff = linear(h, layer["w1"], layer["b1"], activation="gelu")
        # w2 projection fused with residual-add + LayerNorm
        out = linear_residual_layernorm(ff, layer["w2"], layer["b2"],
                                        h, layer["ln2_g"], layer["ln2_b"])
        out = out.reshape(N, S, d_model)

    if net_type.lower() in ["classification", "cls", "clf"]:
        cls_tok = out[:, 0]                                        # [N, d_model]
        return linear(cls_tok, params["fc_w"], params["fc_b"])     # [N, classes]
    else:
        return out[:, 1:]


# --------------------------------------------------------------------------

if __name__ == "__main__":
    # Small configuration consistent with the module's forward:
    # img_size=16, patch_size=4 -> 16 patches + 1 cls token = 17 tokens
    batch, channels, img_size = 2, 3, 16
    patch_size, d_model, nheads, num_layers, num_classes = 4, 32, 4, 2, 10
    num_patches = (img_size // patch_size) ** 2
    patch_dim = patch_size * patch_size * channels

    key = jax.random.PRNGKey(0)
    kx, kp = jax.random.split(key)
    x = jax.random.normal(kx, (batch, channels, img_size, img_size),
                          dtype=jnp.float32)
    params = init_params(kp, patch_dim=patch_dim, d_model=d_model,
                         nheads=nheads, num_layers=num_layers,
                         num_classes=num_classes, num_patches=num_patches)

    fwd = jax.jit(functools.partial(vit_forward, patch_size=patch_size,
                                    nheads=nheads, net_type="classification"))
    logits = fwd(x, params)
    jax.block_until_ready(logits)
    assert logits.shape == (batch, num_classes)
    assert jnp.all(jnp.isfinite(logits))
    print("KERNEL_OK")
</pallas_src>

<mosaic_0001>
module attributes {stable_mosaic.version = 11 : i64} {
  func.func @_linear_kernel(%arg0: i32, %arg1: i32, %arg2: i32, %arg3: memref<32x128xf32, #tpu.memory_space<vmem>>, %arg4: memref<128x128xbf16, #tpu.memory_space<vmem>>, %arg5: memref<1x128xf32, #tpu.memory_space<vmem>>, %arg6: memref<32x128xf32, #tpu.memory_space<vmem>>, %arg7: memref<32x128xf32, #tpu.memory_space<vmem>>) attributes {dimension_semantics = [#tpu.dimension_semantics<parallel>, #tpu.dimension_semantics<parallel>, #tpu.dimension_semantics<arbitrary>], iteration_bounds = array<i64: 1, 1, 1>, scalar_prefetch = 0 : i64, scratch_operands = 1 : i64, tpu.core_type = #tpu.core_type<tc>, window_params = [{transform_indices = @transform_0, window_bounds = array<i64: 32, 128>}, {transform_indices = @transform_1, window_bounds = array<i64: 128, 128>}, {transform_indices = @transform_2, window_bounds = array<i64: 1, 128>}, {transform_indices = @transform_3, window_bounds = array<i64: 32, 128>}]} {
    %c0_i32 = arith.constant 0 : i32
    %0 = arith.cmpi eq, %arg2, %c0_i32 : i32
    %1 = arith.extui %0 : i1 to i32
    %c0_i32_0 = arith.constant 0 : i32
    %2 = arith.cmpi ne, %1, %c0_i32_0 : i32
    scf.if %2 {
      %cst_10 = arith.constant 0.000000e+00 : f32
      %13 = vector.broadcast %cst_10 : f32 to vector<32x128xf32>
      %c0_11 = arith.constant 0 : index
      %c0_12 = arith.constant 0 : index
      %14 = vector.load %arg7[%c0_11, %c0_12] : memref<32x128xf32, #tpu.memory_space<vmem>>, vector<32x128xf32>
      tpu.vector_store %arg7[%c0_11, %c0_12], %13 {strides = array<i32>} : memref<32x128xf32, #tpu.memory_space<vmem>>, vector<32x128xf32>,
    } else {
    }
    %c0 = arith.constant 0 : index
    %c0_1 = arith.constant 0 : index
    %3 = vector.load %arg7[%c0, %c0_1] : memref<32x128xf32, #tpu.memory_space<vmem>>, vector<32x128xf32>
    %c0_2 = arith.constant 0 : index
    %c0_3 = arith.constant 0 : index
    %4 = vector.load %arg3[%c0_2, %c0_3] : memref<32x128xf32, #tpu.memory_space<vmem>>, vector<32x128xf32>
    %5 = arith.truncf %4 : vector<32x128xf32> to vector<32x128xbf16>
    %c0_4 = arith.constant 0 : index
    %c0_5 = arith.constant 0 : index
    %6 = vector.load %arg4[%c0_4, %c0_5] : memref<128x128xbf16, #tpu.memory_space<vmem>>, vector<128x128xbf16>
    %cst = arith.constant dense<0.000000e+00> : vector<32x128xf32>
    %7 = tpu.matmul %5, %6, %cst {dimension_numbers = #tpu.dot_dimension_numbers<[1], [0], [0], [1], [0, 0, 1, 1], [], []>} : vector<32x128xbf16>, vector<128x128xbf16>, vector<32x128xf32> -> vector<32x128xf32>
    %8 = arith.addf %3, %7 : vector<32x128xf32>
    %c0_6 = arith.constant 0 : index
    %c0_7 = arith.constant 0 : index
    %9 = vector.load %arg7[%c0_6, %c0_7] : memref<32x128xf32, #tpu.memory_space<vmem>>, vector<32x128xf32>
    tpu.vector_store %arg7[%c0_6, %c0_7], %8 {strides = array<i32>} : memref<32x128xf32, #tpu.memory_space<vmem>>, vector<32x128xf32>,
    %c0_i32_8 = arith.constant 0 : i32
    %10 = arith.cmpi eq, %arg2, %c0_i32_8 : i32
    %11 = arith.extui %10 : i1 to i32
    %c0_i32_9 = arith.constant 0 : i32
    %12 = arith.cmpi ne, %11, %c0_i32_9 : i32
    scf.if %12 {
      %c0_10 = arith.constant 0 : index
      %c0_11 = arith.constant 0 : index
      %13 = vector.load %arg7[%c0_10, %c0_11] : memref<32x128xf32, #tpu.memory_space<vmem>>, vector<32x128xf32>
      %c0_12 = arith.constant 0 : index
      %c0_13 = arith.constant 0 : index
      %14 = vector.load %arg5[%c0_12, %c0_13] : memref<1x128xf32, #tpu.memory_space<vmem>>, vector<1x128xf32>
      %15 = vector.broadcast %14 : vector<1x128xf32> to vector<32x128xf32>
      %16 = arith.addf %13, %15 : vector<32x128xf32>
      %c0_14 = arith.constant 0 : index
      %c0_15 = arith.constant 0 : index
      %17 = vector.load %arg6[%c0_14, %c0_15] : memref<32x128xf32, #tpu.memory_space<vmem>>, vector<32x128xf32>
      tpu.vector_store %arg6[%c0_14, %c0_15], %16 {strides = array<i32>} : memref<32x128xf32, #tpu.memory_space<vmem>>, vector<32x128xf32>,
    } else {
    }
    return
  }
  func.func @transform_0(%arg0: i32, %arg1: i32, %arg2: i32) -> (i32, i32) {
    %c0_i32 = arith.constant 0 : i32
    return %arg0, %arg2 : i32, i32
  }
  func.func @transform_1(%arg0: i32, %arg1: i32, %arg2: i32) -> (i32, i32) {
    %c0_i32 = arith.constant 0 : i32
    return %arg2, %arg1 : i32, i32
  }
  func.func @transform_2(%arg0: i32, %arg1: i32, %arg2: i32) -> (i32, i32) {
    %c0_i32 = arith.constant 0 : i32
    %c0_i32_0 = arith.constant 0 : i32
    return %c0_i32, %arg1 : i32, i32
  }
  func.func @transform_3(%arg0: i32, %arg1: i32, %arg2: i32) -> (i32, i32) {
    %c0_i32 = arith.constant 0 : i32
    return %arg0, %arg1 : i32, i32
  }
}

module attributes {stable_mosaic.version = 11 : i64} {
  func.func @_linear_kernel(%arg0: i32, %arg1: i32, %arg2: i32, %arg3: memref<48x128xf32, #tpu.memory_space<vmem>>, %arg4: memref<128x128xbf16, #tpu.memory_space<vmem>>, %arg5: memref<1x128xf32, #tpu.memory_space<vmem>>, %arg6: memref<48x128xf32, #tpu.memory_space<vmem>>, %arg7: memref<48x128xf32, #tpu.memory_space<vmem>>) attributes {dimension_semantics = [#tpu.dimension_semantics<parallel>, #tpu.dimension_semantics<parallel>, #tpu.dimension_semantics<arbitrary>], iteration_bounds = array<i64: 1, 1, 1>, scalar_prefetch = 0 : i64, scratch_operands = 1 : i64, tpu.core_type = #tpu.core_type<tc>, window_params = [{transform_indices = @transform_0, window_bounds = array<i64: 48, 128>}, {transform_indices = @transform_1, window_bounds = array<i64: 128, 128>}, {transform_indices = @transform_2, window_bounds = array<i64: 1, 128>}, {transform_indices = @transform_3, window_bounds = array<i64: 48, 128>}]} {
    %c0_i32 = arith.constant 0 : i32
    %0 = arith.cmpi eq, %arg2, %c0_i32 : i32
    %1 = arith.extui %0 : i1 to i32
    %c0_i32_0 = arith.constant 0 : i32
    %2 = arith.cmpi ne, %1, %c0_i32_0 : i32
    scf.if %2 {
      %cst_10 = arith.constant 0.000000e+00 : f32
      %13 = vector.broadcast %cst_10 : f32 to vector<48x128xf32>
      %c0_11 = arith.constant 0 : index
      %c0_12 = arith.constant 0 : index
      %14 = vector.load %arg7[%c0_11, %c0_12] : memref<48x128xf32, #tpu.memory_space<vmem>>, vector<48x128xf32>
      tpu.vector_store %arg7[%c0_11, %c0_12], %13 {strides = array<i32>} : memref<48x128xf32, #tpu.memory_space<vmem>>, vector<48x128xf32>,
    } else {
    }
    %c0 = arith.constant 0 : index
    %c0_1 = arith.constant 0 : index
    %3 = vector.load %arg7[%c0, %c0_1] : memref<48x128xf32, #tpu.memory_space<vmem>>, vector<48x128xf32>
    %c0_2 = arith.constant 0 : index
    %c0_3 = arith.constant 0 : index
    %4 = vector.load %arg3[%c0_2, %c0_3] : memref<48x128xf32, #tpu.memory_space<vmem>>, vector<48x128xf32>
    %5 = arith.truncf %4 : vector<48x128xf32> to vector<48x128xbf16>
    %c0_4 = arith.constant 0 : index
    %c0_5 = arith.constant 0 : index
    %6 = vector.load %arg4[%c0_4, %c0_5] : memref<128x128xbf16, #tpu.memory_space<vmem>>, vector<128x128xbf16>
    %cst = arith.constant dense<0.000000e+00> : vector<48x128xf32>
    %7 = tpu.matmul %5, %6, %cst {dimension_numbers = #tpu.dot_dimension_numbers<[1], [0], [0], [1], [0, 0, 1, 1], [], []>} : vector<48x128xbf16>, vector<128x128xbf16>, vector<48x128xf32> -> vector<48x128xf32>
    %8 = arith.addf %3, %7 : vector<48x128xf32>
    %c0_6 = arith.constant 0 : index
    %c0_7 = arith.constant 0 : index
    %9 = vector.load %arg7[%c0_6, %c0_7] : memref<48x128xf32, #tpu.memory_space<vmem>>, vector<48x128xf32>
    tpu.vector_store %arg7[%c0_6, %c0_7], %8 {strides = array<i32>} : memref<48x128xf32, #tpu.memory_space<vmem>>, vector<48x128xf32>,
    %c0_i32_8 = arith.constant 0 : i32
    %10 = arith.cmpi eq, %arg2, %c0_i32_8 : i32
    %11 = arith.extui %10 : i1 to i32
    %c0_i32_9 = arith.constant 0 : i32
    %12 = arith.cmpi ne, %11, %c0_i32_9 : i32
    scf.if %12 {
      %c0_10 = arith.constant 0 : index
      %c0_11 = arith.constant 0 : index
      %13 = vector.load %arg7[%c0_10, %c0_11] : memref<48x128xf32, #tpu.memory_space<vmem>>, vector<48x128xf32>
      %c0_12 = arith.constant 0 : index
      %c0_13 = arith.constant 0 : index
      %14 = vector.load %arg5[%c0_12, %c0_13] : memref<1x128xf32, #tpu.memory_space<vmem>>, vector<1x128xf32>
      %15 = vector.broadcast %14 : vector<1x128xf32> to vector<48x128xf32>
      %16 = arith.addf %13, %15 : vector<48x128xf32>
      %c0_14 = arith.constant 0 : index
      %c0_15 = arith.constant 0 : index
      %17 = vector.load %arg6[%c0_14, %c0_15] : memref<48x128xf32, #tpu.memory_space<vmem>>, vector<48x128xf32>
      tpu.vector_store %arg6[%c0_14, %c0_15], %16 {strides = array<i32>} : memref<48x128xf32, #tpu.memory_space<vmem>>, vector<48x128xf32>,
    } else {
    }
    return
  }
  func.func @transform_0(%arg0: i32, %arg1: i32, %arg2: i32) -> (i32, i32) {
    %c0_i32 = arith.constant 0 : i32
    return %arg0, %arg2 : i32, i32
  }
  func.func @transform_1(%arg0: i32, %arg1: i32, %arg2: i32) -> (i32, i32) {
    %c0_i32 = arith.constant 0 : i32
    return %arg2, %arg1 : i32, i32
  }
  func.func @transform_2(%arg0: i32, %arg1: i32, %arg2: i32) -> (i32, i32) {
    %c0_i32 = arith.constant 0 : i32
    %c0_i32_0 = arith.constant 0 : i32
    return %c0_i32, %arg1 : i32, i32
  }
  func.func @transform_3(%arg0: i32, %arg1: i32, %arg2: i32) -> (i32, i32) {
    %c0_i32 = arith.constant 0 : i32
    return %arg0, %arg1 : i32, i32
  }
}

module attributes {stable_mosaic.version = 11 : i64} {
  func.func @_attn_kernel(%arg0: i32, %arg1: i32, %arg2: memref<1x128x96xf32, #tpu.memory_space<vmem>>, %arg3: memref<1x128x96xf32, #tpu.memory_space<vmem>>, %arg4: memref<1x128x32xf32, #tpu.memory_space<vmem>>) attributes {dimension_semantics = [#tpu.dimension_semantics<parallel>, #tpu.dimension_semantics<parallel>], iteration_bounds = array<i64: 2, 1>, scalar_prefetch = 0 : i64, scratch_operands = 0 : i64, tpu.core_type = #tpu.core_type<tc>, window_params = [{transform_indices = @transform_0, window_bounds = array<i64: 1, 128, 96>}, {transform_indices = @transform_1, window_bounds = array<i64: 1, 128, 96>}, {transform_indices = @transform_2, window_bounds = array<i64: 1, 128, 32>}]} {
    %0 = tpu.iota {dimensions = array<i32: 1>} : vector<128x128xi32>
    %c17_i32 = arith.constant 17 : i32
    %1 = vector.broadcast %c17_i32 : i32 to vector<128x128xi32>
    %2 = arith.cmpi slt, %0, %1 : vector<128x128xi32>
    %c0 = arith.constant 0 : index
    %c0_0 = arith.constant 0 : index
    %c0_1 = arith.constant 0 : index
    %3 = vector.load %arg2[%c0, %c0_0, %c0_1] : memref<1x128x96xf32, #tpu.memory_space<vmem>>, vector<1x128x8xf32>
    %4 = vector.shape_cast %3 : vector<1x128x8xf32> to vector<128x8xf32>
    %5 = arith.truncf %4 : vector<128x8xf32> to vector<128x8xbf16>
    %c0_2 = arith.constant 0 : index
    %c0_3 = arith.constant 0 : index
    %c32 = arith.constant 32 : index
    %6 = vector.load %arg3[%c0_2, %c0_3, %c32] : memref<1x128x96xf32, #tpu.memory_space<vmem>>, vector<1x128x8xf32>
    %7 = vector.shape_cast %6 : vector<1x128x8xf32> to vector<128x8xf32>
    %c0_4 = arith.constant 0 : index
    %c0_5 = arith.constant 0 : index
    %c64 = arith.constant 64 : index
    %8 = vector.load %arg3[%c0_4, %c0_5, %c64] : memref<1x128x96xf32, #tpu.memory_space<vmem>>, vector<1x128x8xf32>
    %9 = vector.shape_cast %8 : vector<1x128x8xf32> to vector<128x8xf32>
    %10 = arith.truncf %7 : vector<128x8xf32> to vector<128x8xbf16>
    %cst = arith.constant dense<0.000000e+00> : vector<128x128xf32>
    %11 = tpu.matmul %5, %10, %cst {dimension_numbers = #tpu.dot_dimension_numbers<[1], [1], [0], [0], [0, 0, 1, 0], [], []>} : vector<128x8xbf16>, vector<128x8xbf16>, vector<128x128xf32> -> vector<128x128xf32>
    %cst_6 = arith.constant 0.353553385 : f32
    %12 = vector.broadcast %cst_6 : f32 to vector<128x128xf32>
    %13 = arith.mulf %11, %12 : vector<128x128xf32>
    %cst_7 = arith.constant -1.000000e+30 : f32
    %14 = vector.broadcast %cst_7 : f32 to vector<128x128xf32>
    %15 = arith.select %2, %13, %14 : vector<128x128xi1>, vector<128x128xf32>
    %cst_8 = arith.constant dense<0xFF800000> : vector<128xf32>
    %16 = vector.multi_reduction <maximumf>, %15, %cst_8 [1] : vector<128x128xf32> to vector<128xf32>
    %17 = vector.shape_cast %16 : vector<128xf32> to vector<128x1xf32>
    %18 = vector.broadcast %17 : vector<128x1xf32> to vector<128x128xf32>
    %19 = arith.subf %15, %18 : vector<128x128xf32>
    %20 = math.exp %19 : vector<128x128xf32>
    %cst_9 = arith.constant dense<0.000000e+00> : vector<128xf32>
    %21 = vector.multi_reduction <add>, %20, %cst_9 [1] : vector<128x128xf32> to vector<128xf32>
    %22 = vector.shape_cast %21 : vector<128xf32> to vector<128x1xf32>
    %23 = arith.truncf %20 : vector<128x128xf32> to vector<128x128xbf16>
    %24 = arith.truncf %9 : vector<128x8xf32> to vector<128x8xbf16>
    %cst_10 = arith.constant dense<0.000000e+00> : vector<128x8xf32>
    %25 = tpu.matmul %23, %24, %cst_10 {dimension_numbers = #tpu.dot_dimension_numbers<[1], [0], [0], [1], [0, 0, 1, 1], [], []>} : vector<128x128xbf16>, vector<128x8xbf16>, vector<128x8xf32> -> vector<128x8xf32>
    %26 = tpu.reciprocal %22 {approx = true} : vector<128x1xf32> -> vector<128x1xf32>
    %27 = vector.broadcast %26 : vector<128x1xf32> to vector<128x8xf32>
    %28 = arith.mulf %25, %27 : vector<128x8xf32>
    %c0_11 = arith.constant 0 : index
    %c0_12 = arith.constant 0 : index
    %c0_13 = arith.constant 0 : index
    %29 = vector.load %arg4[%c0_11, %c0_12, %c0_13] : memref<1x128x32xf32, #tpu.memory_space<vmem>>, vector<1x128x8xf32>
    %30 = vector.shape_cast %29 : vector<1x128x8xf32> to vector<128x8xf32>
    %31 = vector.shape_cast %28 : vector<128x8xf32> to vector<1x128x8xf32>
    tpu.vector_store %arg4[%c0_11, %c0_12, %c0_13], %31 {strides = array<i32>} : memref<1x128x32xf32, #tpu.memory_space<vmem>>, vector<1x128x8xf32>,
    %c0_14 = arith.constant 0 : index
    %c0_15 = arith.constant 0 : index
    %c8 = arith.constant 8 : index
    %32 = vector.load %arg2[%c0_14, %c0_15, %c8] : memref<1x128x96xf32, #tpu.memory_space<vmem>>, vector<1x128x8xf32>
    %33 = vector.shape_cast %32 : vector<1x128x8xf32> to vector<128x8xf32>
    %34 = arith.truncf %33 : vector<128x8xf32> to vector<128x8xbf16>
    %c0_16 = arith.constant 0 : index
    %c0_17 = arith.constant 0 : index
    %c40 = arith.constant 40 : index
    %35 = vector.load %arg3[%c0_16, %c0_17, %c40] : memref<1x128x96xf32, #tpu.memory_space<vmem>>, vector<1x128x8xf32>
    %36 = vector.shape_cast %35 : vector<1x128x8xf32> to vector<128x8xf32>
    %c0_18 = arith.constant 0 : index
    %c0_19 = arith.constant 0 : index
    %c72 = arith.constant 72 : index
    %37 = vector.load %arg3[%c0_18, %c0_19, %c72] : memref<1x128x96xf32, #tpu.memory_space<vmem>>, vector<1x128x8xf32>
    %38 = vector.shape_cast %37 : vector<1x128x8xf32> to vector<128x8xf32>
    %39 = arith.truncf %36 : vector<128x8xf32> to vector<128x8xbf16>
    %cst_20 = arith.constant dense<0.000000e+00> : vector<128x128xf32>
    %40 = tpu.matmul %34, %39, %cst_20 {dimension_numbers = #tpu.dot_dimension_numbers<[1], [1], [0], [0], [0, 0, 1, 0], [], []>} : vector<128x8xbf16>, vector<128x8xbf16>, vector<128x128xf32> -> vector<128x128xf32>
    %cst_21 = arith.constant 0.353553385 : f32
    %41 = vector.broadcast %cst_21 : f32 to vector<128x128xf32>
    %42 = arith.mulf %40, %41 : vector<128x128xf32>
    %cst_22 = arith.constant -1.000000e+30 : f32
    %43 = vector.broadcast %cst_22 : f32 to vector<128x128xf32>
    %44 = arith.select %2, %42, %43 : vector<128x128xi1>, vector<128x128xf32>
    %cst_23 = arith.constant dense<0xFF800000> : vector<128xf32>
    %45 = vector.multi_reduction <maximumf>, %44, %cst_23 [1] : vector<128x128xf32> to vector<128xf32>
    %46 = vector.shape_cast %45 : vector<128xf32> to vector<128x1xf32>
    %47 = vector.broadcast %46 : vector<128x1xf32> to vector<128x128xf32>
    %48 = arith.subf %44, %47 : vector<128x128xf32>
    %49 = math.exp %48 : vector<128x128xf32>
    %cst_24 = arith.constant dense<0.000000e+00> : vector<128xf32>
    %50 = vector.multi_reduction <add>, %49, %cst_24 [1] : vector<128x128xf32> to vector<128xf32>
    %51 = vector.shape_cast %50 : vector<128xf32> to vector<128x1xf32>
    %52 = arith.truncf %49 : vector<128x128xf32> to vector<128x128xbf16>
    %53 = arith.truncf %38 : vector<128x8xf32> to vector<128x8xbf16>
    %cst_25 = arith.constant dense<0.000000e+00> : vector<128x8xf32>
    %54 = tpu.matmul %52, %53, %cst_25 {dimension_numbers = #tpu.dot_dimension_numbers<[1], [0], [0], [1], [0, 0, 1, 1], [], []>} : vector<128x128xbf16>, vector<128x8xbf16>, vector<128x8xf32> -> vector<128x8xf32>
    %55 = tpu.reciprocal %51 {approx = true} : vector<128x1xf32> -> vector<128x1xf32>
    %56 = vector.broadcast %55 : vector<128x1xf32> to vector<128x8xf32>
    %57 = arith.mulf %54, %56 : vector<128x8xf32>
    %c0_26 = arith.constant 0 : index
    %c0_27 = arith.constant 0 : index
    %c8_28 = arith.constant 8 : index
    %58 = vector.load %arg4[%c0_26, %c0_27, %c8_28] : memref<1x128x32xf32, #tpu.memory_space<vmem>>, vector<1x128x8xf32>
    %59 = vector.shape_cast %58 : vector<1x128x8xf32> to vector<128x8xf32>
    %60 = vector.shape_cast %57 : vector<128x8xf32> to vector<1x128x8xf32>
    tpu.vector_store %arg4[%c0_26, %c0_27, %c8_28], %60 {strides = array<i32>} : memref<1x128x32xf32, #tpu.memory_space<vmem>>, vector<1x128x8xf32>,
    %c0_29 = arith.constant 0 : index
    %c0_30 = arith.constant 0 : index
    %c16 = arith.constant 16 : index
    %61 = vector.load %arg2[%c0_29, %c0_30, %c16] : memref<1x128x96xf32, #tpu.memory_space<vmem>>, vector<1x128x8xf32>
    %62 = vector.shape_cast %61 : vector<1x128x8xf32> to vector<128x8xf32>
    %63 = arith.truncf %62 : vector<128x8xf32> to vector<128x8xbf16>
    %c0_31 = arith.constant 0 : index
    %c0_32 = arith.constant 0 : index
    %c48 = arith.constant 48 : index
    %64 = vector.load %arg3[%c0_31, %c0_32, %c48] : memref<1x128x96xf32, #tpu.memory_space<vmem>>, vector<1x128x8xf32>
    %65 = vector.shape_cast %64 : vector<1x128x8xf32> to vector<128x8xf32>
    %c0_33 = arith.constant 0 : index
    %c0_34 = arith.constant 0 : index
    %c80 = arith.constant 80 : index
    %66 = vector.load %arg3[%c0_33, %c0_34, %c80] : memref<1x128x96xf32, #tpu.memory_space<vmem>>, vector<1x128x8xf32>
    %67 = vector.shape_cast %66 : vector<1x128x8xf32> to vector<128x8xf32>
    %68 = arith.truncf %65 : vector<128x8xf32> to vector<128x8xbf16>
    %cst_35 = arith.constant dense<0.000000e+00> : vector<128x128xf32>
    %69 = tpu.matmul %63, %68, %cst_35 {dimension_numbers = #tpu.dot_dimension_numbers<[1], [1], [0], [0], [0, 0, 1, 0], [], []>} : vector<128x8xbf16>, vector<128x8xbf16>, vector<128x128xf32> -> vector<128x128xf32>
    %cst_36 = arith.constant 0.353553385 : f32
    %70 = vector.broadcast %cst_36 : f32 to vector<128x128xf32>
    %71 = arith.mulf %69, %70 : vector<128x128xf32>
    %cst_37 = arith.constant -1.000000e+30 : f32
    %72 = vector.broadcast %cst_37 : f32 to vector<128x128xf32>
    %73 = arith.select %2, %71, %72 : vector<128x128xi1>, vector<128x128xf32>
    %cst_38 = arith.constant dense<0xFF800000> : vector<128xf32>
    %74 = vector.multi_reduction <maximumf>, %73, %cst_38 [1] : vector<128x128xf32> to vector<128xf32>
    %75 = vector.shape_cast %74 : vector<128xf32> to vector<128x1xf32>
    %76 = vector.broadcast %75 : vector<128x1xf32> to vector<128x128xf32>
    %77 = arith.subf %73, %76 : vector<128x128xf32>
    %78 = math.exp %77 : vector<128x128xf32>
    %cst_39 = arith.constant dense<0.000000e+00> : vector<128xf32>
    %79 = vector.multi_reduction <add>, %78, %cst_39 [1] : vector<128x128xf32> to vector<128xf32>
    %80 = vector.shape_cast %79 : vector<128xf32> to vector<128x1xf32>
    %81 = arith.truncf %78 : vector<128x128xf32> to vector<128x128xbf16>
    %82 = arith.truncf %67 : vector<128x8xf32> to vector<128x8xbf16>
    %cst_40 = arith.constant dense<0.000000e+00> : vector<128x8xf32>
    %83 = tpu.matmul %81, %82, %cst_40 {dimension_numbers = #tpu.dot_dimension_numbers<[1], [0], [0], [1], [0, 0, 1, 1], [], []>} : vector<128x128xbf16>, vector<128x8xbf16>, vector<128x8xf32> -> vector<128x8xf32>
    %84 = tpu.reciprocal %80 {approx = true} : vector<128x1xf32> -> vector<128x1xf32>
    %85 = vector.broadcast %84 : vector<128x1xf32> to vector<128x8xf32>
    %86 = arith.mulf %83, %85 : vector<128x8xf32>
    %c0_41 = arith.constant 0 : index
    %c0_42 = arith.constant 0 : index
    %c16_43 = arith.constant 16 : index
    %87 = vector.load %arg4[%c0_41, %c0_42, %c16_43] : memref<1x128x32xf32, #tpu.memory_space<vmem>>, vector<1x128x8xf32>
    %88 = vector.shape_cast %87 : vector<1x128x8xf32> to vector<128x8xf32>
    %89 = vector.shape_cast %86 : vector<128x8xf32> to vector<1x128x8xf32>
    tpu.vector_store %arg4[%c0_41, %c0_42, %c16_43], %89 {strides = array<i32>} : memref<1x128x32xf32, #tpu.memory_space<vmem>>, vector<1x128x8xf32>,
    %c0_44 = arith.constant 0 : index
    %c0_45 = arith.constant 0 : index
    %c24 = arith.constant 24 : index
    %90 = vector.load %arg2[%c0_44, %c0_45, %c24] : memref<1x128x96xf32, #tpu.memory_space<vmem>>, vector<1x128x8xf32>
    %91 = vector.shape_cast %90 : vector<1x128x8xf32> to vector<128x8xf32>
    %92 = arith.truncf %91 : vector<128x8xf32> to vector<128x8xbf16>
    %c0_46 = arith.constant 0 : index
    %c0_47 = arith.constant 0 : index
    %c56 = arith.constant 56 : index
    %93 = vector.load %arg3[%c0_46, %c0_47, %c56] : memref<1x128x96xf32, #tpu.memory_space<vmem>>, vector<1x128x8xf32>
    %94 = vector.shape_cast %93 : vector<1x128x8xf32> to vector<128x8xf32>
    %c0_48 = arith.constant 0 : index
    %c0_49 = arith.constant 0 : index
    %c88 = arith.constant 88 : index
    %95 = vector.load %arg3[%c0_48, %c0_49, %c88] : memref<1x128x96xf32, #tpu.memory_space<vmem>>, vector<1x128x8xf32>
    %96 = vector.shape_cast %95 : vector<1x128x8xf32> to vector<128x8xf32>
    %97 = arith.truncf %94 : vector<128x8xf32> to vector<128x8xbf16>
    %cst_50 = arith.constant dense<0.000000e+00> : vector<128x128xf32>
    %98 = tpu.matmul %92, %97, %cst_50 {dimension_numbers = #tpu.dot_dimension_numbers<[1], [1], [0], [0], [0, 0, 1, 0], [], []>} : vector<128x8xbf16>, vector<128x8xbf16>, vector<128x128xf32> -> vector<128x128xf32>
    %cst_51 = arith.constant 0.353553385 : f32
    %99 = vector.broadcast %cst_51 : f32 to vector<128x128xf32>
    %100 = arith.mulf %98, %99 : vector<128x128xf32>
    %cst_52 = arith.constant -1.000000e+30 : f32
    %101 = vector.broadcast %cst_52 : f32 to vector<128x128xf32>
    %102 = arith.select %2, %100, %101 : vector<128x128xi1>, vector<128x128xf32>
    %cst_53 = arith.constant dense<0xFF800000> : vector<128xf32>
    %103 = vector.multi_reduction <maximumf>, %102, %cst_53 [1] : vector<128x128xf32> to vector<128xf32>
    %104 = vector.shape_cast %103 : vector<128xf32> to vector<128x1xf32>
    %105 = vector.broadcast %104 : vector<128x1xf32> to vector<128x128xf32>
    %106 = arith.subf %102, %105 : vector<128x128xf32>
    %107 = math.exp %106 : vector<128x128xf32>
    %cst_54 = arith.constant dense<0.000000e+00> : vector<128xf32>
    %108 = vector.multi_reduction <add>, %107, %cst_54 [1] : vector<128x128xf32> to vector<128xf32>
    %109 = vector.shape_cast %108 : vector<128xf32> to vector<128x1xf32>
    %110 = arith.truncf %107 : vector<128x128xf32> to vector<128x128xbf16>
    %111 = arith.truncf %96 : vector<128x8xf32> to vector<128x8xbf16>
    %cst_55 = arith.constant dense<0.000000e+00> : vector<128x8xf32>
    %112 = tpu.matmul %110, %111, %cst_55 {dimension_numbers = #tpu.dot_dimension_numbers<[1], [0], [0], [1], [0, 0, 1, 1], [], []>} : vector<128x128xbf16>, vector<128x8xbf16>, vector<128x8xf32> -> vector<128x8xf32>
    %113 = tpu.reciprocal %109 {approx = true} : vector<128x1xf32> -> vector<128x1xf32>
    %114 = vector.broadcast %113 : vector<128x1xf32> to vector<128x8xf32>
    %115 = arith.mulf %112, %114 : vector<128x8xf32>
    %c0_56 = arith.constant 0 : index
    %c0_57 = arith.constant 0 : index
    %c24_58 = arith.constant 24 : index
    %116 = vector.load %arg4[%c0_56, %c0_57, %c24_58] : memref<1x128x32xf32, #tpu.memory_space<vmem>>, vector<1x128x8xf32>
    %117 = vector.shape_cast %116 : vector<1x128x8xf32> to vector<128x8xf32>
    %118 = vector.shape_cast %115 : vector<128x8xf32> to vector<1x128x8xf32>
    tpu.vector_store %arg4[%c0_56, %c0_57, %c24_58], %118 {strides = array<i32>} : memref<1x128x32xf32, #tpu.memory_space<vmem>>, vector<1x128x8xf32>,
    return
  }
  func.func @transform_0(%arg0: i32, %arg1: i32) -> (i32, i32, i32) {
    %c0_i32 = arith.constant 0 : i32
    %c0_i32_0 = arith.constant 0 : i32
    return %arg0, %arg1, %c0_i32 : i32, i32, i32
  }
  func.func @transform_1(%arg0: i32, %arg1: i32) -> (i32, i32, i32) {
    %c0_i32 = arith.constant 0 : i32
    %c0_i32_0 = arith.constant 0 : i32
    %c0_i32_1 = arith.constant 0 : i32
    return %arg0, %c0_i32, %c0_i32_0 : i32, i32, i32
  }
  func.func @transform_2(%arg0: i32, %arg1: i32) -> (i32, i32, i32) {
    %c0_i32 = arith.constant 0 : i32
    %c0_i32_0 = arith.constant 0 : i32
    return %arg0, %arg1, %c0_i32 : i32, i32, i32
  }
}

module attributes {stable_mosaic.version = 11 : i64} {
  func.func @_linear_ln_kernel(%arg0: i32, %arg1: i32, %arg2: memref<48x128xf32, #tpu.memory_space<vmem>>, %arg3: memref<128x128xbf16, #tpu.memory_space<vmem>>, %arg4: memref<1x128xf32, #tpu.memory_space<vmem>>, %arg5: memref<48x128xf32, #tpu.memory_space<vmem>>, %arg6: memref<1x128xf32, #tpu.memory_space<vmem>>, %arg7: memref<1x128xf32, #tpu.memory_space<vmem>>, %arg8: memref<48x128xf32, #tpu.memory_space<vmem>>, %arg9: memref<48x128xf32, #tpu.memory_space<vmem>>) attributes {dimension_semantics = [#tpu.dimension_semantics<parallel>, #tpu.dimension_semantics<arbitrary>], iteration_bounds = array<i64: 1, 1>, scalar_prefetch = 0 : i64, scratch_operands = 1 : i64, tpu.core_type = #tpu.core_type<tc>, window_params = [{transform_indices = @transform_0, window_bounds = array<i64: 48, 128>}, {transform_indices = @transform_1, window_bounds = array<i64: 128, 128>}, {pipeline_mode = #tpu.pipeline_mode<synchronous>, transform_indices = @transform_2, window_bounds = array<i64: 1, 128>}, {transform_indices = @transform_3, window_bounds = array<i64: 48, 128>}, {pipeline_mode = #tpu.pipeline_mode<synchronous>, transform_indices = @transform_4, window_bounds = array<i64: 1, 128>}, {pipeline_mode = #tpu.pipeline_mode<synchronous>, transform_indices = @transform_5, window_bounds = array<i64: 1, 128>}, {transform_indices = @transform_6, window_bounds = array<i64: 48, 128>}]} {
    %c0_i32 = arith.constant 0 : i32
    %0 = arith.cmpi eq, %arg1, %c0_i32 : i32
    %1 = arith.extui %0 : i1 to i32
    %c0_i32_0 = arith.constant 0 : i32
    %2 = arith.cmpi ne, %1, %c0_i32_0 : i32
    scf.if %2 {
      %cst_10 = arith.constant 0.000000e+00 : f32
      %13 = vector.broadcast %cst_10 : f32 to vector<48x128xf32>
      %c0_11 = arith.constant 0 : index
      %c0_12 = arith.constant 0 : index
      %14 = vector.load %arg9[%c0_11, %c0_12] : memref<48x128xf32, #tpu.memory_space<vmem>>, vector<48x128xf32>
      tpu.vector_store %arg9[%c0_11, %c0_12], %13 {strides = array<i32>} : memref<48x128xf32, #tpu.memory_space<vmem>>, vector<48x128xf32>,
    } else {
    }
    %c0 = arith.constant 0 : index
    %c0_1 = arith.constant 0 : index
    %3 = vector.load %arg9[%c0, %c0_1] : memref<48x128xf32, #tpu.memory_space<vmem>>, vector<48x128xf32>
    %c0_2 = arith.constant 0 : index
    %c0_3 = arith.constant 0 : index
    %4 = vector.load %arg2[%c0_2, %c0_3] : memref<48x128xf32, #tpu.memory_space<vmem>>, vector<48x128xf32>
    %5 = arith.truncf %4 : vector<48x128xf32> to vector<48x128xbf16>
    %c0_4 = arith.constant 0 : index
    %c0_5 = arith.constant 0 : index
    %6 = vector.load %arg3[%c0_4, %c0_5] : memref<128x128xbf16, #tpu.memory_space<vmem>>, vector<128x128xbf16>
    %cst = arith.constant dense<0.000000e+00> : vector<48x128xf32>
    %7 = tpu.matmul %5, %6, %cst {dimension_numbers = #tpu.dot_dimension_numbers<[1], [0], [0], [1], [0, 0, 1, 1], [], []>} : vector<48x128xbf16>, vector<128x128xbf16>, vector<48x128xf32> -> vector<48x128xf32>
    %8 = arith.addf %3, %7 : vector<48x128xf32>
    %c0_6 = arith.constant 0 : index
    %c0_7 = arith.constant 0 : index
    %9 = vector.load %arg9[%c0_6, %c0_7] : memref<48x128xf32, #tpu.memory_space<vmem>>, vector<48x128xf32>
    tpu.vector_store %arg9[%c0_6, %c0_7], %8 {strides = array<i32>} : memref<48x128xf32, #tpu.memory_space<vmem>>, vector<48x128xf32>,
    %c0_i32_8 = arith.constant 0 : i32
    %10 = arith.cmpi eq, %arg1, %c0_i32_8 : i32
    %11 = arith.extui %10 : i1 to i32
    %c0_i32_9 = arith.constant 0 : i32
    %12 = arith.cmpi ne, %11, %c0_i32_9 : i32
    scf.if %12 {
      %c0_10 = arith.constant 0 : index
      %c0_11 = arith.constant 0 : index
      %13 = vector.load %arg9[%c0_10, %c0_11] : memref<48x128xf32, #tpu.memory_space<vmem>>, vector<48x128xf32>
      %c0_12 = arith.constant 0 : index
      %c0_13 = arith.constant 0 : index
      %14 = vector.load %arg4[%c0_12, %c0_13] : memref<1x128xf32, #tpu.memory_space<vmem>>, vector<1x128xf32>
      %15 = vector.broadcast %14 : vector<1x128xf32> to vector<48x128xf32>
      %16 = arith.addf %13, %15 : vector<48x128xf32>
      %c0_14 = arith.constant 0 : index
      %c0_15 = arith.constant 0 : index
      %17 = vector.load %arg5[%c0_14, %c0_15] : memref<48x128xf32, #tpu.memory_space<vmem>>, vector<48x128xf32>
      %18 = arith.addf %16, %17 : vector<48x128xf32>
      %cst_16 = arith.constant dense<0.000000e+00> : vector<48xf32>
      %19 = vector.multi_reduction <add>, %18, %cst_16 [1] : vector<48x128xf32> to vector<48xf32>
      %20 = vector.shape_cast %19 : vector<48xf32> to vector<48x1xf32>
      %cst_17 = arith.constant 3.125000e-02 : f32
      %21 = vector.broadcast %cst_17 : f32 to vector<48x1xf32>
      %22 = arith.mulf %20, %21 : vector<48x1xf32>
      %23 = arith.mulf %18, %18 : vector<48x128xf32>
      %cst_18 = arith.constant dense<0.000000e+00> : vector<48xf32>
      %24 = vector.multi_reduction <add>, %23, %cst_18 [1] : vector<48x128xf32> to vector<48xf32>
      %25 = vector.shape_cast %24 : vector<48xf32> to vector<48x1xf32>
      %cst_19 = arith.constant 3.125000e-02 : f32
      %26 = vector.broadcast %cst_19 : f32 to vector<48x1xf32>
      %27 = arith.mulf %25, %26 : vector<48x1xf32>
      %28 = arith.mulf %22, %22 : vector<48x1xf32>
      %29 = arith.subf %27, %28 : vector<48x1xf32>
      %30 = vector.broadcast %22 : vector<48x1xf32> to vector<48x128xf32>
      %31 = arith.subf %18, %30 : vector<48x128xf32>
      %cst_20 = arith.constant 9.99999974E-6 : f32
      %32 = vector.broadcast %cst_20 : f32 to vector<48x1xf32>
      %33 = arith.addf %29, %32 : vector<48x1xf32>
      %34 = math.rsqrt %33 : vector<48x1xf32>
      %35 = vector.broadcast %34 : vector<48x1xf32> to vector<48x128xf32>
      %36 = arith.mulf %31, %35 : vector<48x128xf32>
      %c0_21 = arith.constant 0 : index
      %c0_22 = arith.constant 0 : index
      %37 = vector.load %arg6[%c0_21, %c0_22] : memref<1x128xf32, #tpu.memory_space<vmem>>, vector<1x128xf32>
      %38 = vector.broadcast %37 : vector<1x128xf32> to vector<48x128xf32>
      %39 = arith.mulf %36, %38 : vector<48x128xf32>
      %c0_23 = arith.constant 0 : index
      %c0_24 = arith.constant 0 : index
      %40 = vector.load %arg7[%c0_23, %c0_24] : memref<1x128xf32, #tpu.memory_space<vmem>>, vector<1x128xf32>
      %41 = vector.broadcast %40 : vector<1x128xf32> to vector<48x128xf32>
      %42 = arith.addf %39, %41 : vector<48x128xf32>
      %c0_25 = arith.constant 0 : index
      %c0_26 = arith.constant 0 : index
      %43 = vector.load %arg8[%c0_25, %c0_26] : memref<48x128xf32, #tpu.memory_space<vmem>>, vector<48x128xf32>
      tpu.vector_store %arg8[%c0_25, %c0_26], %42 {strides = array<i32>} : memref<48x128xf32, #tpu.memory_space<vmem>>, vector<48x128xf32>,
    } else {
    }
    return
  }
  func.func @transform_0(%arg0: i32, %arg1: i32) -> (i32, i32) {
    %c0_i32 = arith.constant 0 : i32
    return %arg0, %arg1 : i32, i32
  }
  func.func @transform_1(%arg0: i32, %arg1: i32) -> (i32, i32) {
    %c0_i32 = arith.constant 0 : i32
    %c0_i32_0 = arith.constant 0 : i32
    return %arg1, %c0_i32 : i32, i32
  }
  func.func @transform_2(%arg0: i32, %arg1: i32) -> (i32, i32) {
    %c0_i32 = arith.constant 0 : i32
    %c0_i32_0 = arith.constant 0 : i32
    %c0_i32_1 = arith.constant 0 : i32
    return %c0_i32, %c0_i32_0 : i32, i32
  }
  func.func @transform_3(%arg0: i32, %arg1: i32) -> (i32, i32) {
    %c0_i32 = arith.constant 0 : i32
    %c0_i32_0 = arith.constant 0 : i32
    return %arg0, %c0_i32 : i32, i32
  }
  func.func @transform_4(%arg0: i32, %arg1: i32) -> (i32, i32) {
    %c0_i32 = arith.constant 0 : i32
    %c0_i32_0 = arith.constant 0 : i32
    %c0_i32_1 = arith.constant 0 : i32
    return %c0_i32, %c0_i32_0 : i32, i32
  }
  func.func @transform_5(%arg0: i32, %arg1: i32) -> (i32, i32) {
    %c0_i32 = arith.constant 0 : i32
    %c0_i32_0 = arith.constant 0 : i32
    %c0_i32_1 = arith.constant 0 : i32
    return %c0_i32, %c0_i32_0 : i32, i32
  }
  func.func @transform_6(%arg0: i32, %arg1: i32) -> (i32, i32) {
    %c0_i32 = arith.constant 0 : i32
    %c0_i32_0 = arith.constant 0 : i32
    return %arg0, %c0_i32 : i32, i32
  }
}

module attributes {stable_mosaic.version = 11 : i64} {
  func.func @_linear_kernel(%arg0: i32, %arg1: i32, %arg2: i32, %arg3: memref<48x128xf32, #tpu.memory_space<vmem>>, %arg4: memref<128x128xbf16, #tpu.memory_space<vmem>>, %arg5: memref<1x128xf32, #tpu.memory_space<vmem>>, %arg6: memref<48x128xf32, #tpu.memory_space<vmem>>, %arg7: memref<48x128xf32, #tpu.memory_space<vmem>>) attributes {dimension_semantics = [#tpu.dimension_semantics<parallel>, #tpu.dimension_semantics<parallel>, #tpu.dimension_semantics<arbitrary>], iteration_bounds = array<i64: 1, 1, 1>, scalar_prefetch = 0 : i64, scratch_operands = 1 : i64, tpu.core_type = #tpu.core_type<tc>, window_params = [{transform_indices = @transform_0, window_bounds = array<i64: 48, 128>}, {transform_indices = @transform_1, window_bounds = array<i64: 128, 128>}, {transform_indices = @transform_2, window_bounds = array<i64: 1, 128>}, {transform_indices = @transform_3, window_bounds = array<i64: 48, 128>}]} {
    %c0_i32 = arith.constant 0 : i32
    %0 = arith.cmpi eq, %arg2, %c0_i32 : i32
    %1 = arith.extui %0 : i1 to i32
    %c0_i32_0 = arith.constant 0 : i32
    %2 = arith.cmpi ne, %1, %c0_i32_0 : i32
    scf.if %2 {
      %cst_10 = arith.constant 0.000000e+00 : f32
      %13 = vector.broadcast %cst_10 : f32 to vector<48x128xf32>
      %c0_11 = arith.constant 0 : index
      %c0_12 = arith.constant 0 : index
      %14 = vector.load %arg7[%c0_11, %c0_12] : memref<48x128xf32, #tpu.memory_space<vmem>>, vector<48x128xf32>
      tpu.vector_store %arg7[%c0_11, %c0_12], %13 {strides = array<i32>} : memref<48x128xf32, #tpu.memory_space<vmem>>, vector<48x128xf32>,
    } else {
    }
    %c0 = arith.constant 0 : index
    %c0_1 = arith.constant 0 : index
    %3 = vector.load %arg7[%c0, %c0_1] : memref<48x128xf32, #tpu.memory_space<vmem>>, vector<48x128xf32>
    %c0_2 = arith.constant 0 : index
    %c0_3 = arith.constant 0 : index
    %4 = vector.load %arg3[%c0_2, %c0_3] : memref<48x128xf32, #tpu.memory_space<vmem>>, vector<48x128xf32>
    %5 = arith.truncf %4 : vector<48x128xf32> to vector<48x128xbf16>
    %c0_4 = arith.constant 0 : index
    %c0_5 = arith.constant 0 : index
    %6 = vector.load %arg4[%c0_4, %c0_5] : memref<128x128xbf16, #tpu.memory_space<vmem>>, vector<128x128xbf16>
    %cst = arith.constant dense<0.000000e+00> : vector<48x128xf32>
    %7 = tpu.matmul %5, %6, %cst {dimension_numbers = #tpu.dot_dimension_numbers<[1], [0], [0], [1], [0, 0, 1, 1], [], []>} : vector<48x128xbf16>, vector<128x128xbf16>, vector<48x128xf32> -> vector<48x128xf32>
    %8 = arith.addf %3, %7 : vector<48x128xf32>
    %c0_6 = arith.constant 0 : index
    %c0_7 = arith.constant 0 : index
    %9 = vector.load %arg7[%c0_6, %c0_7] : memref<48x128xf32, #tpu.memory_space<vmem>>, vector<48x128xf32>
    tpu.vector_store %arg7[%c0_6, %c0_7], %8 {strides = array<i32>} : memref<48x128xf32, #tpu.memory_space<vmem>>, vector<48x128xf32>,
    %c0_i32_8 = arith.constant 0 : i32
    %10 = arith.cmpi eq, %arg2, %c0_i32_8 : i32
    %11 = arith.extui %10 : i1 to i32
    %c0_i32_9 = arith.constant 0 : i32
    %12 = arith.cmpi ne, %11, %c0_i32_9 : i32
    scf.if %12 {
      %c0_10 = arith.constant 0 : index
      %c0_11 = arith.constant 0 : index
      %13 = vector.load %arg7[%c0_10, %c0_11] : memref<48x128xf32, #tpu.memory_space<vmem>>, vector<48x128xf32>
      %c0_12 = arith.constant 0 : index
      %c0_13 = arith.constant 0 : index
      %14 = vector.load %arg5[%c0_12, %c0_13] : memref<1x128xf32, #tpu.memory_space<vmem>>, vector<1x128xf32>
      %15 = vector.broadcast %14 : vector<1x128xf32> to vector<48x128xf32>
      %16 = arith.addf %13, %15 : vector<48x128xf32>
      %17 = arith.mulf %16, %16 : vector<48x128xf32>
      %18 = arith.mulf %16, %17 : vector<48x128xf32>
      %cst_14 = arith.constant 4.471500e-02 : f32
      %19 = vector.broadcast %cst_14 : f32 to vector<48x128xf32>
      %20 = arith.mulf %19, %18 : vector<48x128xf32>
      %21 = arith.addf %16, %20 : vector<48x128xf32>
      %cst_15 = arith.constant 0.797884583 : f32
      %22 = vector.broadcast %cst_15 : f32 to vector<48x128xf32>
      %23 = arith.mulf %22, %21 : vector<48x128xf32>
      %24 = math.tanh %23 : vector<48x128xf32>
      %cst_16 = arith.constant 1.000000e+00 : f32
      %25 = vector.broadcast %cst_16 : f32 to vector<48x128xf32>
      %26 = arith.addf %25, %24 : vector<48x128xf32>
      %cst_17 = arith.constant 5.000000e-01 : f32
      %27 = vector.broadcast %cst_17 : f32 to vector<48x128xf32>
      %28 = arith.mulf %27, %26 : vector<48x128xf32>
      %29 = arith.mulf %16, %28 : vector<48x128xf32>
      %c0_18 = arith.constant 0 : index
      %c0_19 = arith.constant 0 : index
      %30 = vector.load %arg6[%c0_18, %c0_19] : memref<48x128xf32, #tpu.memory_space<vmem>>, vector<48x128xf32>
      tpu.vector_store %arg6[%c0_18, %c0_19], %29 {strides = array<i32>} : memref<48x128xf32, #tpu.memory_space<vmem>>, vector<48x128xf32>,
    } else {
    }
    return
  }
  func.func @transform_0(%arg0: i32, %arg1: i32, %arg2: i32) -> (i32, i32) {
    %c0_i32 = arith.constant 0 : i32
    return %arg0, %arg2 : i32, i32
  }
  func.func @transform_1(%arg0: i32, %arg1: i32, %arg2: i32) -> (i32, i32) {
    %c0_i32 = arith.constant 0 : i32
    return %arg2, %arg1 : i32, i32
  }
  func.func @transform_2(%arg0: i32, %arg1: i32, %arg2: i32) -> (i32, i32) {
    %c0_i32 = arith.constant 0 : i32
    %c0_i32_0 = arith.constant 0 : i32
    return %c0_i32, %arg1 : i32, i32
  }
  func.func @transform_3(%arg0: i32, %arg1: i32, %arg2: i32) -> (i32, i32) {
    %c0_i32 = arith.constant 0 : i32
    return %arg0, %arg1 : i32, i32
  }
}

module attributes {stable_mosaic.version = 11 : i64} {
  func.func @_linear_kernel(%arg0: i32, %arg1: i32, %arg2: i32, %arg3: memref<16x128xf32, #tpu.memory_space<vmem>>, %arg4: memref<128x128xbf16, #tpu.memory_space<vmem>>, %arg5: memref<1x128xf32, #tpu.memory_space<vmem>>, %arg6: memref<16x128xf32, #tpu.memory_space<vmem>>, %arg7: memref<16x128xf32, #tpu.memory_space<vmem>>) attributes {dimension_semantics = [#tpu.dimension_semantics<parallel>, #tpu.dimension_semantics<parallel>, #tpu.dimension_semantics<arbitrary>], iteration_bounds = array<i64: 1, 1, 1>, scalar_prefetch = 0 : i64, scratch_operands = 1 : i64, tpu.core_type = #tpu.core_type<tc>, window_params = [{transform_indices = @transform_0, window_bounds = array<i64: 16, 128>}, {transform_indices = @transform_1, window_bounds = array<i64: 128, 128>}, {transform_indices = @transform_2, window_bounds = array<i64: 1, 128>}, {transform_indices = @transform_3, window_bounds = array<i64: 16, 128>}]} {
    %c0_i32 = arith.constant 0 : i32
    %0 = arith.cmpi eq, %arg2, %c0_i32 : i32
    %1 = arith.extui %0 : i1 to i32
    %c0_i32_0 = arith.constant 0 : i32
    %2 = arith.cmpi ne, %1, %c0_i32_0 : i32
    scf.if %2 {
      %cst_10 = arith.constant 0.000000e+00 : f32
      %13 = vector.broadcast %cst_10 : f32 to vector<16x128xf32>
      %c0_11 = arith.constant 0 : index
      %c0_12 = arith.constant 0 : index
      %14 = vector.load %arg7[%c0_11, %c0_12] : memref<16x128xf32, #tpu.memory_space<vmem>>, vector<16x128xf32>
      tpu.vector_store %arg7[%c0_11, %c0_12], %13 {strides = array<i32>} : memref<16x128xf32, #tpu.memory_space<vmem>>, vector<16x128xf32>,
    } else {
    }
    %c0 = arith.constant 0 : index
    %c0_1 = arith.constant 0 : index
    %3 = vector.load %arg7[%c0, %c0_1] : memref<16x128xf32, #tpu.memory_space<vmem>>, vector<16x128xf32>
    %c0_2 = arith.constant 0 : index
    %c0_3 = arith.constant 0 : index
    %4 = vector.load %arg3[%c0_2, %c0_3] : memref<16x128xf32, #tpu.memory_space<vmem>>, vector<16x128xf32>
    %5 = arith.truncf %4 : vector<16x128xf32> to vector<16x128xbf16>
    %c0_4 = arith.constant 0 : index
    %c0_5 = arith.constant 0 : index
    %6 = vector.load %arg4[%c0_4, %c0_5] : memref<128x128xbf16, #tpu.memory_space<vmem>>, vector<128x128xbf16>
    %cst = arith.constant dense<0.000000e+00> : vector<16x128xf32>
    %7 = tpu.matmul %5, %6, %cst {dimension_numbers = #tpu.dot_dimension_numbers<[1], [0], [0], [1], [0, 0, 1, 1], [], []>} : vector<16x128xbf16>, vector<128x128xbf16>, vector<16x128xf32> -> vector<16x128xf32>
    %8 = arith.addf %3, %7 : vector<16x128xf32>
    %c0_6 = arith.constant 0 : index
    %c0_7 = arith.constant 0 : index
    %9 = vector.load %arg7[%c0_6, %c0_7] : memref<16x128xf32, #tpu.memory_space<vmem>>, vector<16x128xf32>
    tpu.vector_store %arg7[%c0_6, %c0_7], %8 {strides = array<i32>} : memref<16x128xf32, #tpu.memory_space<vmem>>, vector<16x128xf32>,
    %c0_i32_8 = arith.constant 0 : i32
    %10 = arith.cmpi eq, %arg2, %c0_i32_8 : i32
    %11 = arith.extui %10 : i1 to i32
    %c0_i32_9 = arith.constant 0 : i32
    %12 = arith.cmpi ne, %11, %c0_i32_9 : i32
    scf.if %12 {
      %c0_10 = arith.constant 0 : index
      %c0_11 = arith.constant 0 : index
      %13 = vector.load %arg7[%c0_10, %c0_11] : memref<16x128xf32, #tpu.memory_space<vmem>>, vector<16x128xf32>
      %c0_12 = arith.constant 0 : index
      %c0_13 = arith.constant 0 : index
      %14 = vector.load %arg5[%c0_12, %c0_13] : memref<1x128xf32, #tpu.memory_space<vmem>>, vector<1x128xf32>
      %15 = vector.broadcast %14 : vector<1x128xf32> to vector<16x128xf32>
      %16 = arith.addf %13, %15 : vector<16x128xf32>
      %c0_14 = arith.constant 0 : index
      %c0_15 = arith.constant 0 : index
      %17 = vector.load %arg6[%c0_14, %c0_15] : memref<16x128xf32, #tpu.memory_space<vmem>>, vector<16x128xf32>
      tpu.vector_store %arg6[%c0_14, %c0_15], %16 {strides = array<i32>} : memref<16x128xf32, #tpu.memory_space<vmem>>, vector<16x128xf32>,
    } else {
    }
    return
  }
  func.func @transform_0(%arg0: i32, %arg1: i32, %arg2: i32) -> (i32, i32) {
    %c0_i32 = arith.constant 0 : i32
    return %arg0, %arg2 : i32, i32
  }
  func.func @transform_1(%arg0: i32, %arg1: i32, %arg2: i32) -> (i32, i32) {
    %c0_i32 = arith.constant 0 : i32
    return %arg2, %arg1 : i32, i32
  }
  func.func @transform_2(%arg0: i32, %arg1: i32, %arg2: i32) -> (i32, i32) {
    %c0_i32 = arith.constant 0 : i32
    %c0_i32_0 = arith.constant 0 : i32
    return %c0_i32, %arg1 : i32, i32
  }
  func.func @transform_3(%arg0: i32, %arg1: i32, %arg2: i32) -> (i32, i32) {
    %c0_i32 = arith.constant 0 : i32
    return %arg0, %arg1 : i32, i32
  }
}

</mosaic_0001>

<bundles_post_ra>
// kernel: vit_forward.13
= control target key start
LH: loop header
LB: loop body
LE: loop exit
PB: predicated region body
PF: predicated region fallthrough
CT: control target
= control target key end

     0   :  { %v279_v0 = vmov 0.0   ;;  %vm280_vm0 = vmmov 0   ;;  %s367_s1 = inlined_call_operand.vmem [shape: bf16[128,128], index: 1, kind: input, shape index: {}]   ;;  %s368_s0 = inlined_call_operand.vmem [shape: f32[48,128], index: 0, kind: input, shape index: {}]   ;;  %s369_s2 = inlined_call_operand.vmem [shape: f32[1,128], index: 2, kind: input, shape index: {}]   ;;  %s370_s3 = inlined_call_operand.vmem [shape: f32[48,128], index: 3, kind: output, shape index: {}]  }
   0x1   :  { %253 = vmatprep.subr.bf16.mxu1 %v279_v0  ;;  %v271_v1 = vld [vmem:[%s367_s1] sm:$0xff]   ;;  %225 = vmatprep.subr.bf16.mxu0 %v279_v0  ;;  %v272_v2 = vld [vmem:[%s367_s1 + $0x8] sm:$0xff]   ;;  %v273_v3 = vld [vmem:[%s367_s1 + $0x10] sm:$0xff]  }
   0x2   :  { %245 = vmatprep.mubr.msk.bf16.mxu1 %vm280_vm0, %v279_v0  ;;  %241 = vmatprep.mubr.msk.bf16.mxu0 %vm280_vm0, %v279_v0  ;;  %v274_v4 = vld [vmem:[%s367_s1 + $0x18] sm:$0xff]   ;;  %v275_v5 = vld [vmem:[%s367_s1 + $0x20] sm:$0xff]   ;;  %v276_v6 = vld [vmem:[%s367_s1 + $0x28] sm:$0xff]  }
   0x3   :  { %261 = vmatpush3.bf16.msra.mxu1 %v271_v1  ;;  %226 = vmatpush3.bf16.msra.mxu0 %v271_v1  ;;  %v277_v7 = vld [vmem:[%s367_s1 + $0x30] sm:$0xff]   ;;  %v278_v8 = vld [vmem:[%s367_s1 + $0x38] sm:$0xff]   ;;  %v31_v11 = vld [vmem:[%s368_s0] sm:$0xff] }
   0x4   :  { %254 = vmatprep.subr.bf16.mxu1 %v279_v0  ;;  %227 = vmatprep.subr.bf16.mxu0 %v279_v0  ;;  %v33_v9 = vld [vmem:[%s368_s0 + $0x10] sm:$0xff]  ;;  %v34_v10 = vld [vmem:[%s368_s0 + $0x18] sm:$0xff]  ;;  %v32_v12 = vld [vmem:[%s368_s0 + $0x8] sm:$0xff] }
   0x5   :  { %v38_v13 = vpack.c.bf16 %v34_v10, %v33_v9  ;;  %v37_v14 = vpack.c.bf16 %v32_v12, %v31_v11  ;;  %v35_v15 = vld [vmem:[%s368_s0 + $0x20] sm:$0xff]  ;;  %v36_v16 = vld [vmem:[%s368_s0 + $0x28] sm:$0xff] }
   0x6   :  { %v39_v17 = vpack.c.bf16 %v36_v16, %v35_v15  ;;  %v213_v18 = vld [vmem:[%s369_s2] ss:$0 sm:$0xff] }
   0x7   :  { %262 = vmatpush3.bf16.msra.mxu1 %v272_v2  ;;  %228 = vmatpush3.bf16.msra.mxu0 %v272_v2 }
   0x8   :  { %255 = vmatprep.subr.bf16.mxu1 %v279_v0  ;;  %229 = vmatprep.subr.bf16.mxu0 %v279_v0 }
   0xb   :  { %263 = vmatpush3.bf16.msra.mxu1 %v273_v3  ;;  %230 = vmatpush3.bf16.msra.mxu0 %v273_v3 }
   0xc   :  { %256 = vmatprep.subr.bf16.mxu1 %v279_v0  ;;  %231 = vmatprep.subr.bf16.mxu0 %v279_v0 }
   0xf   :  { %264 = vmatpush3.bf16.msra.mxu1 %v274_v4  ;;  %232 = vmatpush3.bf16.msra.mxu0 %v274_v4 }
  0x10   :  { %257 = vmatprep.subr.bf16.mxu1 %v279_v0  ;;  %233 = vmatprep.subr.bf16.mxu0 %v279_v0 }
  0x13   :  { %265 = vmatpush3.bf16.msra.mxu1 %v275_v5  ;;  %234 = vmatpush3.bf16.msra.mxu0 %v275_v5 }
  0x14   :  { %258 = vmatprep.subr.bf16.mxu1 %v279_v0  ;;  %235 = vmatprep.subr.bf16.mxu0 %v279_v0 }
  0x17   :  { %266 = vmatpush3.bf16.msra.mxu1 %v276_v6  ;;  %236 = vmatpush3.bf16.msra.mxu0 %v276_v6 }
  0x18   :  { %259 = vmatprep.subr.bf16.mxu1 %v279_v0  ;;  %237 = vmatprep.subr.bf16.mxu0 %v279_v0 }
  0x1b   :  { %267 = vmatpush3.bf16.msra.mxu1 %v277_v7  ;;  %238 = vmatpush3.bf16.msra.mxu0 %v277_v7 }
  0x1c   :  { %260 = vmatprep.subr.bf16.mxu1 %v279_v0  ;;  %239 = vmatprep.subr.bf16.mxu0 %v279_v0 }
  0x1f   :  { %268 = vmatpush3.bf16.msra.mxu1 %v278_v8  ;;  %240 = vmatpush3.bf16.msra.mxu0 %v278_v8 }
  0x22   :  { %246 = vmatmul.mubr.bf16.vlgmr.msra.gmra.mrb[0].mxu1 %v38_v13  ;;  %242 = vmatmul.mubr.bf16.vlgmr.msra.gmra.mrb[0].mxu0 %v37_v14 }
  0x23   :  { %249 = vmatprep.mubr.msk.bf16.mxu1 %vm280_vm0, %v279_v0 }
  0x2a   :  { %250 = vmatmul.mubr.bf16.gmra.mrb[4].mxu1 %v39_v17 }
  0xf5   :  { %v146_v19 = vpop.f32.mrb[0].mxu1  ;;  %v138_v20 = vpop.f32.mrb[0].mxu0 }
  0xf6   :  { %v191_v21 = vadd.f32 %v213_v18, %v146_v19  ;;  %v247_v22 = vpop.f32.mrb[1].mxu1  ;;  %v189_v23 = vadd.f32 %v213_v18, %v138_v20  ;;  %v243_v24 = vpop.f32.mrb[1].mxu0 }
  0xf7   :  { %v149_v25 = vpop.f32.mrb[2].mxu1  ;;  %v141_v26 = vpop.f32.mrb[2].mxu0 }
  0xf8   :  { %197 = vst [vmem:[%s370_s3 + $0x10] sm:$0xff] %v191_v21  ;;  %v192_v27 = vadd.f32 %v213_v18, %v149_v25  ;;  %v248_v28 = vpop.f32.mrb[3].mxu1  ;;  %195 = vst [vmem:[%s370_s3] sm:$0xff] %v189_v23  ;;  %v190_v29 = vadd.f32 %v213_v18, %v141_v26  ;;  %v244_v30 = vpop.f32.mrb[3].mxu0 }
  0xfa   :  { %198 = vst [vmem:[%s370_s3 + $0x18] sm:$0xff] %v192_v27  ;;  %196 = vst [vmem:[%s370_s3 + $0x8] sm:$0xff] %v190_v29 }
  0xfd   :  { %v154_v31 = vpop.f32.mrb[4].mxu1 }
  0xfe   :  { %v193_v32 = vadd.f32 %v213_v18, %v154_v31  ;;  %v251_v33 = vpop.f32.mrb[5].mxu1 }
  0xff   :  { %v157_v34 = vpop.f32.mrb[6].mxu1 }
 0x100   :  { %199 = vst [vmem:[%s370_s3 + $0x20] sm:$0xff] %v193_v32  ;;  %v194_v35 = vadd.f32 %v213_v18, %v157_v34  ;;  %v252_v36 = vpop.f32.mrb[7].mxu1 }
 0x102   :  { %200 = vst [vmem:[%s370_s3 + $0x28] sm:$0xff] %v194_v35 }

// kernel: vit_forward.12
= control target key start
LH: loop header
LB: loop body
LE: loop exit
PB: predicated region body
PF: predicated region fallthrough
CT: control target
= control target key end

     0   :  { %s298_s1 = inlined_call_operand.vmem [shape: bf16[128,128], index: 1, kind: input, shape index: {}]   ;;  %s299_s0 = inlined_call_operand.vmem [shape: f32[32,128], index: 0, kind: input, shape index: {}]   ;;  %s300_s2 = inlined_call_operand.vmem [shape: f32[1,128], index: 2, kind: input, shape index: {}]   ;;  %s301_s3 = inlined_call_operand.vmem [shape: f32[32,128], index: 3, kind: output, shape index: {}]  }
   0x1   :  { %v219_v0 = vld [vmem:[%s298_s1] sm:$0xff]   ;;  %v220_v1 = vld [vmem:[%s298_s1 + $0x8] sm:$0xff]   ;;  %v221_v2 = vld [vmem:[%s298_s1 + $0x10] sm:$0xff]  }
   0x2   :  { %199 = vmatprep.subr.bf16.mxu0 %v219_v0  ;;  %v222_v3 = vld [vmem:[%s298_s1 + $0x18] sm:$0xff]   ;;  %v27_v4 = vld [vmem:[%s299_s0] sm:$0xff]  ;;  %v28_v5 = vld [vmem:[%s299_s0 + $0x8] sm:$0xff] }
   0x3   :  { %200 = vmatpush3.bf16.msra.mxu0 %v219_v0  ;;  %v31_v6 = vpack.c.bf16 %v28_v5, %v27_v4  ;;  %v223_v7 = vld [vmem:[%s298_s1 + $0x20] sm:$0xff]   ;;  %v224_v8 = vld [vmem:[%s298_s1 + $0x28] sm:$0xff]   ;;  %v225_v9 = vld [vmem:[%s298_s1 + $0x30] sm:$0xff]  }
   0x4   :  { %201 = vmatprep.subr.bf16.mxu0 %v220_v1  ;;  %v226_v10 = vld [vmem:[%s298_s1 + $0x38] sm:$0xff]   ;;  %v29_v11 = vld [vmem:[%s299_s0 + $0x10] sm:$0xff]  ;;  %v188_v14 = vld [vmem:[%s300_s2] ss:$0 sm:$0xff] }
   0x5   :  { %215 = vmatprep.mubr.bf16.mxu0 %v31_v6  ;;  %v30_v12 = vld [vmem:[%s299_s0 + $0x18] sm:$0xff] }
   0x6   :  { %v32_v13 = vpack.c.bf16 %v30_v12, %v29_v11 }
   0x7   :  { %202 = vmatpush3.bf16.msra.mxu0 %v220_v1 }
   0x8   :  { %203 = vmatprep.subr.bf16.mxu0 %v221_v2 }
   0xb   :  { %204 = vmatpush3.bf16.msra.mxu0 %v221_v2 }
   0xc   :  { %205 = vmatprep.subr.bf16.mxu0 %v222_v3 }
   0xf   :  { %206 = vmatpush3.bf16.msra.mxu0 %v222_v3 }
  0x10   :  { %207 = vmatprep.subr.bf16.mxu0 %v223_v7 }
  0x13   :  { %208 = vmatpush3.bf16.msra.mxu0 %v223_v7 }
  0x14   :  { %209 = vmatprep.subr.bf16.mxu0 %v224_v8 }
  0x17   :  { %210 = vmatpush3.bf16.msra.mxu0 %v224_v8 }
  0x18   :  { %211 = vmatprep.subr.bf16.mxu0 %v225_v9 }
  0x1b   :  { %212 = vmatpush3.bf16.msra.mxu0 %v225_v9 }
  0x1c   :  { %213 = vmatprep.subr.bf16.mxu0 %v226_v10 }
  0x1f   :  { %214 = vmatpush3.bf16.msra.mxu0 %v226_v10 }
  0x22   :  { %216 = vmatmul.mubr.bf16.vlgmr.msra.gmra.mrb[0].mxu0 %v32_v13 }
  0xf5   :  { %v217_v15 = vpop.f32.mrb[0].mxu0 }
  0xf6   :  { %v170_v16 = vadd.f32 %v217_v15, %v188_v14  ;;  %v131_v17 = vpop.f32.mrb[1].mxu0 }
  0xf7   :  { %v168_v18 = vadd.f32 %v188_v14, %v131_v17  ;;  %v218_v19 = vpop.f32.mrb[2].mxu0 }
  0xf8   :  { %174 = vst [vmem:[%s301_s3 + $0x10] sm:$0xff] %v170_v16  ;;  %v171_v20 = vadd.f32 %v218_v19, %v188_v14  ;;  %v134_v21 = vpop.f32.mrb[3].mxu0 }
  0xf9   :  { %172 = vst [vmem:[%s301_s3] sm:$0xff] %v168_v18  ;;  %v169_v22 = vadd.f32 %v188_v14, %v134_v21 }
  0xfa   :  { %175 = vst [vmem:[%s301_s3 + $0x18] sm:$0xff] %v171_v20 }
  0xfb   :  { %173 = vst [vmem:[%s301_s3 + $0x8] sm:$0xff] %v169_v22 }

// kernel: vit_forward.15
= control target key start
LH: loop header
LB: loop body
LE: loop exit
PB: predicated region body
PF: predicated region fallthrough
CT: control target
= control target key end

     0   :  { %v418_v0 = vmov 0.0   ;;  %vm419_vm0 = vmmov 0   ;;  %s581_s1 = inlined_call_operand.vmem [shape: bf16[128,128], index: 1, kind: input, shape index: {}]   ;;  %s582_s0 = inlined_call_operand.vmem [shape: f32[48,128], index: 0, kind: input, shape index: {}]   ;;  %s583_s2 = inlined_call_operand.vmem [shape: f32[1,128], index: 2, kind: input, shape index: {}]   ;;  %s584_s3 = inlined_call_operand.vmem [shape: f32[48,128], index: 3, kind: input, shape index: {}]   ;;  %s585_s4 = inlined_call_operand.vmem [shape: f32[1,128], index: 4, kind: input, shape index: {}]   ;;  %s586_s5 = inlined_call_operand.vmem [shape: f32[1,128], index: 5, kind: input, shape index: {}]   ;;  %s587_s6 = inlined_call_operand.vmem [shape: f32[48,128], index: 6, kind: output, shape index: {}]  }
   0x1   :  { %352 = vmatprep.subr.bf16.mxu0 %v418_v0  ;;  %380 = vmatprep.subr.bf16.mxu1 %v418_v0  ;;  %v398_v1 = vld [vmem:[%s581_s1] sm:$0xff]   ;;  %v399_v2 = vld [vmem:[%s581_s1 + $0x8] sm:$0xff]   ;;  %v400_v3 = vld [vmem:[%s581_s1 + $0x10] sm:$0xff]  }
   0x2   :  { %368 = vmatprep.mubr.msk.bf16.mxu0 %vm419_vm0, %v418_v0  ;;  %372 = vmatprep.mubr.msk.bf16.mxu1 %vm419_vm0, %v418_v0  ;;  %v401_v4 = vld [vmem:[%s581_s1 + $0x18] sm:$0xff]   ;;  %v402_v5 = vld [vmem:[%s581_s1 + $0x20] sm:$0xff]   ;;  %v403_v6 = vld [vmem:[%s581_s1 + $0x28] sm:$0xff]  }
   0x3   :  { %353 = vmatpush3.bf16.msra.mxu0 %v398_v1  ;;  %388 = vmatpush3.bf16.msra.mxu1 %v398_v1  ;;  %v404_v7 = vld [vmem:[%s581_s1 + $0x30] sm:$0xff]   ;;  %v405_v8 = vld [vmem:[%s581_s1 + $0x38] sm:$0xff]   ;;  %v40_v9 = vld [vmem:[%s582_s0] sm:$0xff] }
   0x4   :  { %354 = vmatprep.subr.bf16.mxu0 %v418_v0  ;;  %381 = vmatprep.subr.bf16.mxu1 %v418_v0  ;;  %v41_v10 = vld [vmem:[%s582_s0 + $0x8] sm:$0xff]  ;;  %v42_v11 = vld [vmem:[%s582_s0 + $0x10] sm:$0xff]  ;;  %v43_v12 = vld [vmem:[%s582_s0 + $0x18] sm:$0xff] }
   0x5   :  { %v46_v13 = vpack.c.bf16 %v41_v10, %v40_v9  ;;  %v47_v14 = vpack.c.bf16 %v43_v12, %v42_v11  ;;  %v44_v15 = vld [vmem:[%s582_s0 + $0x20] sm:$0xff]  ;;  %v45_v16 = vld [vmem:[%s582_s0 + $0x28] sm:$0xff]  ;;  %v206_v22 = vld [vmem:[%s584_s3 + $0x10] sm:$0xff] }
   0x6   :  { %v48_v17 = vpack.c.bf16 %v45_v16, %v44_v15  ;;  %v338_v18 = vld [vmem:[%s583_s2] ss:$0 sm:$0xff]  ;;  %v205_v35 = vld [vmem:[%s584_s3 + $0x8] sm:$0xff]  ;;  %v207_v36 = vld [vmem:[%s584_s3 + $0x18] sm:$0xff] }
   0x7   :  { %355 = vmatpush3.bf16.msra.mxu0 %v399_v2  ;;  %389 = vmatpush3.bf16.msra.mxu1 %v399_v2  ;;  %v204_v20 = vld [vmem:[%s584_s3] sm:$0xff]  ;;  %v209_v50 = vld [vmem:[%s584_s3 + $0x28] sm:$0xff] }
   0x8   :  { %356 = vmatprep.subr.bf16.mxu0 %v418_v0  ;;  %382 = vmatprep.subr.bf16.mxu1 %v418_v0  ;;  %v208_v49 = vld [vmem:[%s584_s3 + $0x20] sm:$0xff] }
   0xb   :  { %357 = vmatpush3.bf16.msra.mxu0 %v400_v3  ;;  %390 = vmatpush3.bf16.msra.mxu1 %v400_v3 }
   0xc   :  { %358 = vmatprep.subr.bf16.mxu0 %v418_v0  ;;  %383 = vmatprep.subr.bf16.mxu1 %v418_v0 }
   0xf   :  { %359 = vmatpush3.bf16.msra.mxu0 %v401_v4  ;;  %391 = vmatpush3.bf16.msra.mxu1 %v401_v4 }
  0x10   :  { %360 = vmatprep.subr.bf16.mxu0 %v418_v0  ;;  %384 = vmatprep.subr.bf16.mxu1 %v418_v0 }
  0x13   :  { %361 = vmatpush3.bf16.msra.mxu0 %v402_v5  ;;  %392 = vmatpush3.bf16.msra.mxu1 %v402_v5 }
  0x14   :  { %362 = vmatprep.subr.bf16.mxu0 %v418_v0  ;;  %385 = vmatprep.subr.bf16.mxu1 %v418_v0 }
  0x17   :  { %363 = vmatpush3.bf16.msra.mxu0 %v403_v6  ;;  %393 = vmatpush3.bf16.msra.mxu1 %v403_v6 }
  0x18   :  { %364 = vmatprep.subr.bf16.mxu0 %v418_v0  ;;  %386 = vmatprep.subr.bf16.mxu1 %v418_v0 }
  0x1b   :  { %365 = vmatpush3.bf16.msra.mxu0 %v404_v7  ;;  %394 = vmatpush3.bf16.msra.mxu1 %v404_v7 }
  0x1c   :  { %366 = vmatprep.subr.bf16.mxu0 %v418_v0  ;;  %387 = vmatprep.subr.bf16.mxu1 %v418_v0 }
  0x1f   :  { %367 = vmatpush3.bf16.msra.mxu0 %v405_v8  ;;  %395 = vmatpush3.bf16.msra.mxu1 %v405_v8 }
  0x22   :  { %369 = vmatmul.mubr.bf16.vlgmr.msra.gmra.mrb[0].mxu0 %v46_v13  ;;  %373 = vmatmul.mubr.bf16.vlgmr.msra.gmra.mrb[0].mxu1 %v47_v14 }
  0x23   :  { %376 = vmatprep.mubr.msk.bf16.mxu1 %vm419_vm0, %v418_v0 }
  0x2a   :  { %377 = vmatmul.mubr.bf16.gmra.mrb[4].mxu1 %v48_v17 }
  0xf5   :  { %v147_v19 = vpop.f32.mrb[0].mxu0  ;;  %v155_v21 = vpop.f32.mrb[0].mxu1 }
  0xf6   :  { %v198_v23 = vadd.f32 %v338_v18, %v147_v19  ;;  %v200_v24 = vadd.f32 %v338_v18, %v155_v21  ;;  %v370_v25 = vpop.f32.mrb[1].mxu0  ;;  %v374_v26 = vpop.f32.mrb[1].mxu1 }
  0xf7   :  { %v150_v27 = vpop.f32.mrb[2].mxu0  ;;  %v158_v28 = vpop.f32.mrb[2].mxu1 }
  0xf8   :  { %v509_v29 = vadd.f32 %v204_v20, %v198_v23  ;;  %v511_v30 = vadd.f32 %v206_v22, %v200_v24  ;;  %v199_v31 = vadd.f32 %v338_v18, %v150_v27  ;;  %v201_v32 = vadd.f32 %v338_v18, %v158_v28  ;;  %v371_v33 = vpop.f32.mrb[3].mxu0  ;;  %v375_v34 = vpop.f32.mrb[3].mxu1 }
  0xfa   :  { %220 = vadd.xlane.f32.xlu1 %v511_v30  ;;  %216 = vadd.xlane.f32.xlu0 %v509_v29  ;;  %v521_v37 = vadd.f32 %v205_v35, %v199_v31  ;;  %v523_v38 = vadd.f32 %v207_v36, %v201_v32  ;;  %v234_v42 = vmul.f32 %v509_v29, %v509_v29  ;;  %v339_v36 = vld [vmem:[%s585_s4] ss:$0 sm:$0xff] }
  0xfb   :  { %v236_v47 = vmul.f32 %v511_v30, %v511_v30 }
  0xfc   :  { %v235_v43 = vmul.f32 %v521_v37, %v521_v37  ;;  %v237_v48 = vmul.f32 %v523_v38, %v523_v38 }
  0xfd   :  { %v163_v39 = vpop.f32.mrb[4].mxu1 }
  0xfe   :  { %222 = vadd.xlane.f32.xlu1 %v523_v38  ;;  %218 = vadd.xlane.f32.xlu0 %v521_v37  ;;  %v378_v40 = vpop.f32.mrb[5].mxu1  ;;  %v202_v45 = vadd.f32 %v338_v18, %v163_v39 }
  0xff   :  { %v166_v41 = vpop.f32.mrb[6].mxu1 }
 0x100   :  { %v379_v44 = vpop.f32.mrb[7].mxu1  ;;  %v203_v46 = vadd.f32 %v338_v18, %v166_v41  ;;  %v541_v51 = vadd.f32 %v208_v49, %v202_v45 }
 0x102   :  { %240 = vadd.xlane.f32.xlu0 %v234_v42  ;;  %242 = vadd.xlane.f32.xlu1 %v235_v43  ;;  %v543_v52 = vadd.f32 %v209_v50, %v203_v46  ;;  %v238_v53 = vmul.f32 %v541_v51, %v541_v51  ;;  %v340_v43 = vld [vmem:[%s586_s5] ss:$0 sm:$0xff] }
 0x104   :  { %v239_v54 = vmul.f32 %v543_v52, %v543_v52 }
 0x106   :  { %244 = vadd.xlane.f32.xlu0 %v236_v47  ;;  %246 = vadd.xlane.f32.xlu1 %v237_v48 }
 0x10a   :  { %224 = vadd.xlane.f32.xlu0 %v541_v51  ;;  %226 = vadd.xlane.f32.xlu1 %v543_v52 }
 0x10e   :  { %248 = vadd.xlane.f32.xlu0 %v238_v53  ;;  %250 = vadd.xlane.f32.xlu1 %v239_v54 }
 0x187   :  { %v221_v55 = vpop.xlane.xlu1 %220  ;;  %v217_v56 = vpop.xlane.xlu0 %216 }
 0x188   :  { %v228_v59 = vmul.f32 0.03125, %v217_v56  ;;  %v230_v61 = vmul.f32 0.03125, %v221_v55 }
 0x18a   :  { %v258_v1 = vmul.f32 %v228_v59, %v228_v59  ;;  %v260_v7 = vmul.f32 %v230_v61, %v230_v61  ;;  %v270_v33 = vsub.f32 %v509_v29, %v228_v59  ;;  %v272_v45 = vsub.f32 %v511_v30, %v230_v61 }
 0x18b   :  { %v223_v57 = vpop.xlane.xlu1 %222  ;;  %v219_v58 = vpop.xlane.xlu0 %218 }
 0x18c   :  { %v229_v60 = vmul.f32 0.03125, %v219_v58  ;;  %v231_v62 = vmul.f32 0.03125, %v223_v57 }
 0x18e   :  { %v259_v2 = vmul.f32 %v229_v60, %v229_v60  ;;  %v261_v8 = vmul.f32 %v231_v62, %v231_v62  ;;  %v271_v35 = vsub.f32 %v521_v37, %v229_v60  ;;  %v273_v37 = vsub.f32 %v523_v38, %v231_v62 }
 0x18f   :  { %v241_v63 = vpop.xlane.xlu0 %240  ;;  %v243_v0 = vpop.xlane.xlu1 %242 }
 0x190   :  { %v252_v3 = vmul.f32 0.03125, %v241_v63  ;;  %v253_v4 = vmul.f32 0.03125, %v243_v0 }
 0x192   :  { %v264_v5 = vsub.f32 %v252_v3, %v258_v1  ;;  %v265_v6 = vsub.f32 %v253_v4, %v259_v2 }
 0x193   :  { %v245_v9 = vpop.xlane.xlu0 %244  ;;  %v247_v10 = vpop.xlane.xlu1 %246 }
 0x194   :  { %v276_v11 = vadd.f32 1e-05, %v264_v5  ;;  %v277_v12 = vadd.f32 1e-05, %v265_v6  ;;  %v254_v13 = vmul.f32 0.03125, %v245_v9  ;;  %v255_v14 = vmul.f32 0.03125, %v247_v10 }
 0x196   :  { %406 = vrsqrt.f32 %v276_v11  ;;  %v266_v15 = vsub.f32 %v254_v13, %v260_v7  ;;  %v267_v16 = vsub.f32 %v255_v14, %v261_v8 }
 0x197   :  { %408 = vrsqrt.f32 %v277_v12  ;;  %v225_v17 = vpop.xlane.xlu0 %224  ;;  %v227_v18 = vpop.xlane.xlu1 %226 }
 0x198   :  { %v278_v19 = vadd.f32 1e-05, %v266_v15  ;;  %v279_v20 = vadd.f32 1e-05, %v267_v16  ;;  %v232_v21 = vmul.f32 0.03125, %v225_v17  ;;  %v233_v22 = vmul.f32 0.03125, %v227_v18 }
 0x19a   :  { %410 = vrsqrt.f32 %v278_v19  ;;  %v262_v25 = vmul.f32 %v232_v21, %v232_v21  ;;  %v263_v26 = vmul.f32 %v233_v22, %v233_v22  ;;  %v274_v38 = vsub.f32 %v541_v51, %v232_v21 }
 0x19b   :  { %412 = vrsqrt.f32 %v279_v20  ;;  %v249_v23 = vpop.xlane.xlu0 %248  ;;  %v251_v24 = vpop.xlane.xlu1 %250  ;;  %v275_v59 = vsub.f32 %v543_v52, %v233_v22 }
 0x19c   :  { %v256_v27 = vmul.f32 0.03125, %v249_v23  ;;  %v257_v28 = vmul.f32 0.03125, %v251_v24 }
 0x19e   :  { %v268_v31 = vsub.f32 %v256_v27, %v262_v25  ;;  %v269_v32 = vsub.f32 %v257_v28, %v263_v26 }
 0x1a0   :  { %v407_v34 = vpop.eup %406  ;;  %v280_v39 = vadd.f32 1e-05, %v268_v31  ;;  %v281_v40 = vadd.f32 1e-05, %v269_v32 }
 0x1a1   :  { %v409_v41 = vpop.eup %408  ;;  %v288_v42 = vmul.f32 %v407_v34, %v270_v33 }
 0x1a2   :  { %v289_v44 = vmul.f32 %v409_v41, %v271_v35  ;;  %414 = vrsqrt.f32 %v280_v39 }
 0x1a3   :  { %v301_v29 = vmul.f32 %v339_v36, %v288_v42  ;;  %416 = vrsqrt.f32 %v281_v40 }
 0x1a4   :  { %v411_v46 = vpop.eup %410  ;;  %v302_v47 = vmul.f32 %v339_v36, %v289_v44 }
 0x1a5   :  { %v413_v48 = vpop.eup %412  ;;  %v314_v49 = vadd.f32 %v340_v43, %v301_v29  ;;  %v290_v50 = vmul.f32 %v411_v46, %v272_v45 }
 0x1a6   :  { %v315_v53 = vadd.f32 %v340_v43, %v302_v47  ;;  %v291_v54 = vmul.f32 %v413_v48, %v273_v37 }
 0x1a7   :  { %320 = vst [vmem:[%s587_s6] sm:$0xff] %v314_v49  ;;  %v303_v55 = vmul.f32 %v339_v36, %v290_v50 }
 0x1a8   :  { %321 = vst [vmem:[%s587_s6 + $0x8] sm:$0xff] %v315_v53  ;;  %v304_v30 = vmul.f32 %v339_v36, %v291_v54 }
 0x1a9   :  { %v316_v56 = vadd.f32 %v340_v43, %v303_v55 }
 0x1aa   :  { %v317_v57 = vadd.f32 %v340_v43, %v304_v30 }
 0x1ab   :  { %322 = vst [vmem:[%s587_s6 + $0x10] sm:$0xff] %v316_v56 }
 0x1ac   :  { %v415_v58 = vpop.eup %414  ;;  %323 = vst [vmem:[%s587_s6 + $0x18] sm:$0xff] %v317_v57 }
 0x1ad   :  { %v417_v60 = vpop.eup %416  ;;  %v292_v61 = vmul.f32 %v415_v58, %v274_v38 }
 0x1ae   :  { %v293_v62 = vmul.f32 %v417_v60, %v275_v59 }
 0x1af   :  { %v305_v63 = vmul.f32 %v339_v36, %v292_v61 }
 0x1b0   :  { %v306_v0 = vmul.f32 %v339_v36, %v293_v62 }
 0x1b1   :  { %v318_v1 = vadd.f32 %v340_v43, %v305_v63 }
 0x1b2   :  { %v319_v2 = vadd.f32 %v340_v43, %v306_v0 }
 0x1b3   :  { %324 = vst [vmem:[%s587_s6 + $0x20] sm:$0xff] %v318_v1 }
 0x1b4   :  { %325 = vst [vmem:[%s587_s6 + $0x28] sm:$0xff] %v319_v2 }

// kernel: vit_forward.16
= control target key start
LH: loop header
LB: loop body
LE: loop exit
PB: predicated region body
PF: predicated region fallthrough
CT: control target
= control target key end

     0   :  { %v345_v0 = vmov 0.0   ;;  %vm346_vm0 = vmmov 0   ;;  %s447_s1 = inlined_call_operand.vmem [shape: bf16[128,128], index: 1, kind: input, shape index: {}]   ;;  %s448_s0 = inlined_call_operand.vmem [shape: f32[48,128], index: 0, kind: input, shape index: {}]   ;;  %s449_s2 = inlined_call_operand.vmem [shape: f32[1,128], index: 2, kind: input, shape index: {}]   ;;  %s450_s3 = inlined_call_operand.vmem [shape: f32[48,128], index: 3, kind: output, shape index: {}]  }
   0x1   :  { %279 = vmatprep.subr.bf16.mxu0 %v345_v0  ;;  %307 = vmatprep.subr.bf16.mxu1 %v345_v0  ;;  %v325_v1 = vld [vmem:[%s447_s1] sm:$0xff]   ;;  %v326_v2 = vld [vmem:[%s447_s1 + $0x8] sm:$0xff]   ;;  %v327_v3 = vld [vmem:[%s447_s1 + $0x10] sm:$0xff]  }
   0x2   :  { %295 = vmatprep.mubr.msk.bf16.mxu0 %vm346_vm0, %v345_v0  ;;  %299 = vmatprep.mubr.msk.bf16.mxu1 %vm346_vm0, %v345_v0  ;;  %v328_v4 = vld [vmem:[%s447_s1 + $0x18] sm:$0xff]   ;;  %v329_v5 = vld [vmem:[%s447_s1 + $0x20] sm:$0xff]   ;;  %v330_v6 = vld [vmem:[%s447_s1 + $0x28] sm:$0xff]  }
   0x3   :  { %280 = vmatpush3.bf16.msra.mxu0 %v325_v1  ;;  %315 = vmatpush3.bf16.msra.mxu1 %v325_v1  ;;  %v331_v7 = vld [vmem:[%s447_s1 + $0x30] sm:$0xff]   ;;  %v332_v8 = vld [vmem:[%s447_s1 + $0x38] sm:$0xff]   ;;  %v31_v9 = vld [vmem:[%s448_s0] sm:$0xff] }
   0x4   :  { %281 = vmatprep.subr.bf16.mxu0 %v345_v0  ;;  %308 = vmatprep.subr.bf16.mxu1 %v345_v0  ;;  %v32_v10 = vld [vmem:[%s448_s0 + $0x8] sm:$0xff]  ;;  %v33_v11 = vld [vmem:[%s448_s0 + $0x10] sm:$0xff]  ;;  %v34_v12 = vld [vmem:[%s448_s0 + $0x18] sm:$0xff] }
   0x5   :  { %v37_v13 = vpack.c.bf16 %v32_v10, %v31_v9  ;;  %v38_v14 = vpack.c.bf16 %v34_v12, %v33_v11  ;;  %v35_v15 = vld [vmem:[%s448_s0 + $0x20] sm:$0xff]  ;;  %v36_v16 = vld [vmem:[%s448_s0 + $0x28] sm:$0xff] }
   0x6   :  { %v39_v17 = vpack.c.bf16 %v36_v16, %v35_v15  ;;  %v267_v18 = vld [vmem:[%s449_s2] ss:$0 sm:$0xff] }
   0x7   :  { %282 = vmatpush3.bf16.msra.mxu0 %v326_v2  ;;  %316 = vmatpush3.bf16.msra.mxu1 %v326_v2 }
   0x8   :  { %283 = vmatprep.subr.bf16.mxu0 %v345_v0  ;;  %309 = vmatprep.subr.bf16.mxu1 %v345_v0 }
   0xb   :  { %284 = vmatpush3.bf16.msra.mxu0 %v327_v3  ;;  %317 = vmatpush3.bf16.msra.mxu1 %v327_v3 }
   0xc   :  { %285 = vmatprep.subr.bf16.mxu0 %v345_v0  ;;  %310 = vmatprep.subr.bf16.mxu1 %v345_v0 }
   0xf   :  { %286 = vmatpush3.bf16.msra.mxu0 %v328_v4  ;;  %318 = vmatpush3.bf16.msra.mxu1 %v328_v4 }
  0x10   :  { %287 = vmatprep.subr.bf16.mxu0 %v345_v0  ;;  %311 = vmatprep.subr.bf16.mxu1 %v345_v0 }
  0x13   :  { %288 = vmatpush3.bf16.msra.mxu0 %v329_v5  ;;  %319 = vmatpush3.bf16.msra.mxu1 %v329_v5 }
  0x14   :  { %289 = vmatprep.subr.bf16.mxu0 %v345_v0  ;;  %312 = vmatprep.subr.bf16.mxu1 %v345_v0 }
  0x17   :  { %290 = vmatpush3.bf16.msra.mxu0 %v330_v6  ;;  %320 = vmatpush3.bf16.msra.mxu1 %v330_v6 }
  0x18   :  { %291 = vmatprep.subr.bf16.mxu0 %v345_v0  ;;  %313 = vmatprep.subr.bf16.mxu1 %v345_v0 }
  0x1b   :  { %292 = vmatpush3.bf16.msra.mxu0 %v331_v7  ;;  %321 = vmatpush3.bf16.msra.mxu1 %v331_v7 }
  0x1c   :  { %293 = vmatprep.subr.bf16.mxu0 %v345_v0  ;;  %314 = vmatprep.subr.bf16.mxu1 %v345_v0 }
  0x1f   :  { %294 = vmatpush3.bf16.msra.mxu0 %v332_v8  ;;  %322 = vmatpush3.bf16.msra.mxu1 %v332_v8 }
  0x22   :  { %296 = vmatmul.mubr.bf16.vlgmr.msra.gmra.mrb[0].mxu0 %v37_v13  ;;  %300 = vmatmul.mubr.bf16.vlgmr.msra.gmra.mrb[0].mxu1 %v38_v14 }
  0x23   :  { %303 = vmatprep.mubr.msk.bf16.mxu1 %vm346_vm0, %v345_v0 }
  0x2a   :  { %304 = vmatmul.mubr.bf16.gmra.mrb[4].mxu1 %v39_v17 }
  0xf5   :  { %v138_v19 = vpop.f32.mrb[0].mxu0  ;;  %v146_v20 = vpop.f32.mrb[0].mxu1 }
  0xf6   :  { %v415_v21 = vadd.f32 %v267_v18, %v138_v19  ;;  %v417_v22 = vadd.f32 %v267_v18, %v146_v20  ;;  %v297_v23 = vpop.f32.mrb[1].mxu0  ;;  %v301_v24 = vpop.f32.mrb[1].mxu1 }
  0xf7   :  { %v141_v25 = vpop.f32.mrb[2].mxu0  ;;  %v149_v26 = vpop.f32.mrb[2].mxu1 }
  0xf8   :  { %v195_v27 = vmul.f32 %v415_v21, %v415_v21  ;;  %v197_v28 = vmul.f32 %v417_v22, %v417_v22  ;;  %v190_v29 = vadd.f32 %v267_v18, %v141_v25  ;;  %v192_v30 = vadd.f32 %v267_v18, %v149_v26  ;;  %v302_v31 = vpop.f32.mrb[3].mxu1  ;;  %v298_v32 = vpop.f32.mrb[3].mxu0 }
  0xfa   :  { %v201_v33 = vmul.f32 %v195_v27, %v415_v21  ;;  %v203_v34 = vmul.f32 %v197_v28, %v417_v22  ;;  %v196_v35 = vmul.f32 %v190_v29, %v190_v29  ;;  %v198_v36 = vmul.f32 %v192_v30, %v192_v30 }
  0xfc   :  { %v207_v37 = vmul.f32 0.044715, %v201_v33  ;;  %v209_v38 = vmul.f32 0.044715, %v203_v34  ;;  %v202_v39 = vmul.f32 %v196_v35, %v190_v29  ;;  %v204_v40 = vmul.f32 %v198_v36, %v192_v30 }
  0xfd   :  { %v154_v41 = vpop.f32.mrb[4].mxu1 }
  0xfe   :  { %v213_v42 = vadd.f32 %v207_v37, %v415_v21  ;;  %v215_v43 = vadd.f32 %v209_v38, %v417_v22  ;;  %v208_v44 = vmul.f32 0.044715, %v202_v39  ;;  %v210_v45 = vmul.f32 0.044715, %v204_v40  ;;  %v305_v46 = vpop.f32.mrb[5].mxu1 }
  0xff   :  { %v193_v47 = vadd.f32 %v267_v18, %v154_v41  ;;  %v157_v48 = vpop.f32.mrb[6].mxu1 }
 0x100   :  { %v219_v49 = vmul.f32 0.7978846, %v213_v42  ;;  %v221_v50 = vmul.f32 0.7978846, %v215_v43  ;;  %v214_v51 = vadd.f32 %v208_v44, %v190_v29  ;;  %v216_v52 = vadd.f32 %v210_v45, %v192_v30  ;;  %v306_v53 = vpop.f32.mrb[7].mxu1 }
 0x101   :  { %v199_v54 = vmul.f32 %v193_v47, %v193_v47  ;;  %v194_v55 = vadd.f32 %v267_v18, %v157_v48 }
 0x102   :  { %333 = vtanh.f32 %v219_v49  ;;  %v220_v56 = vmul.f32 0.7978846, %v214_v51  ;;  %v222_v57 = vmul.f32 0.7978846, %v216_v52 }
 0x103   :  { %335 = vtanh.f32 %v221_v50  ;;  %v205_v58 = vmul.f32 %v199_v54, %v193_v47  ;;  %v200_v59 = vmul.f32 %v194_v55, %v194_v55 }
 0x104   :  { %337 = vtanh.f32 %v220_v56 }
 0x105   :  { %339 = vtanh.f32 %v222_v57  ;;  %v211_v60 = vmul.f32 0.044715, %v205_v58  ;;  %v206_v61 = vmul.f32 %v200_v59, %v194_v55 }
 0x107   :  { %v217_v62 = vadd.f32 %v211_v60, %v193_v47  ;;  %v212_v63 = vmul.f32 0.044715, %v206_v61 }
 0x109   :  { %v223_v0 = vmul.f32 0.7978846, %v217_v62  ;;  %v218_v1 = vadd.f32 %v212_v63, %v194_v55 }
 0x10b   :  { %341 = vtanh.f32 %v223_v0  ;;  %v224_v2 = vmul.f32 0.7978846, %v218_v1 }
 0x10c   :  { %v334_v3 = vpop.eup %333 }
 0x10d   :  { %v336_v4 = vpop.eup %335  ;;  %v231_v5 = vadd.f32 1.0, %v334_v3  ;;  %343 = vtanh.f32 %v224_v2 }
 0x10e   :  { %v338_v6 = vpop.eup %337  ;;  %v233_v7 = vadd.f32 1.0, %v336_v4 }
 0x10f   :  { %v340_v8 = vpop.eup %339  ;;  %v237_v9 = vmul.f32 0.5, %v231_v5  ;;  %v232_v10 = vadd.f32 1.0, %v338_v6 }
 0x110   :  { %v239_v11 = vmul.f32 0.5, %v233_v7  ;;  %v234_v12 = vadd.f32 1.0, %v340_v8 }
 0x111   :  { %v243_v13 = vmul.f32 %v237_v9, %v415_v21  ;;  %v238_v14 = vmul.f32 0.5, %v232_v10 }
 0x112   :  { %v245_v15 = vmul.f32 %v239_v11, %v417_v22  ;;  %v240_v16 = vmul.f32 0.5, %v234_v12 }
 0x113   :  { %249 = vst [vmem:[%s450_s3] sm:$0xff] %v243_v13  ;;  %v244_v17 = vmul.f32 %v238_v14, %v190_v29 }
 0x114   :  { %251 = vst [vmem:[%s450_s3 + $0x10] sm:$0xff] %v245_v15  ;;  %v246_v18 = vmul.f32 %v240_v16, %v192_v30 }
 0x115   :  { %v342_v19 = vpop.eup %341  ;;  %250 = vst [vmem:[%s450_s3 + $0x8] sm:$0xff] %v244_v17 }
 0x116   :  { %252 = vst [vmem:[%s450_s3 + $0x18] sm:$0xff] %v246_v18  ;;  %v235_v20 = vadd.f32 1.0, %v342_v19 }
 0x117   :  { %v344_v21 = vpop.eup %343 }
 0x118   :  { %v241_v22 = vmul.f32 0.5, %v235_v20  ;;  %v236_v23 = vadd.f32 1.0, %v344_v21 }
 0x11a   :  { %v247_v24 = vmul.f32 %v241_v22, %v193_v47  ;;  %v242_v25 = vmul.f32 0.5, %v236_v23 }
 0x11c   :  { %253 = vst [vmem:[%s450_s3 + $0x20] sm:$0xff] %v247_v24  ;;  %v248_v26 = vmul.f32 %v242_v25, %v194_v55 }
 0x11e   :  { %254 = vst [vmem:[%s450_s3 + $0x28] sm:$0xff] %v248_v26 }

// kernel: vit_forward.14
= control target key start
LH: loop header
LB: loop body
LE: loop exit
PB: predicated region body
PF: predicated region fallthrough
CT: control target
= control target key end

     0   :  { %s3537_s9 = smov 0   ;;  %s3539_s10 = smov 0   ;;  %s4997_s0 = inlined_call_operand.vmem [shape: f32[2,128,96], index: 0, kind: input, shape index: {}, may-alias: {0,1}]   ;;  %s4998_s1 = inlined_call_operand.vmem [shape: f32[2,128,96], index: 1, kind: input, shape index: {}, may-alias: {0,1}]   ;;  %s4999_s2 = inlined_call_operand.vmem [shape: f32[2,128,32], index: 2, kind: output, shape index: {}]  }
   0x1   :  { %s3541_s11 = smov 0  }
   0x2 LB: > { %s24_s12 = sadd.s32 1, %s3502_s10  ;;  %p2730_p0 = scmp.ge.s32.totalorder %s3506_s11, 1  ;;  %s3506_s11 = sphi %s3541_s11, %s12_s11   ;;  %s3502_s10 = sphi %s3539_s10, %s5128_s10   ;;  %s3498_s9 = sphi %s3537_s9, %s5127_s9  }
   0x3   : > { %p26_p1 = scmp.ge.s32.totalorder %s24_s12, 2  ;;  %p143_p2 = scmp.lt.s32.totalorder %s3506_s11, 3 }
   0x5   : > { %s5130_s12 = smov (%p26_p1, %s24_s12), 0  ;;  %p144_p3 = pnand %p2730_p0, %p143_p2 }
   0x7   : > { %147 = sbr.rel (%p144_p3) target bundleno = 2418 (0x972), region = 28 }
   0xe   : > { %p179_p4 = scmp.lt.s32.totalorder %s3498_s9, 1  ;;  %s3508_s17 = smov 96   ;;  %vm279_vm0 = vcmask 64512   ;;  %vm1356_vm2 = vcmask 130112   ;;  %vm1983_vm3 = vcmask 195712   ;;  %vm2610_vm4 = vcmask 261312  }
   0xf   : > { %s3509_s21 = smov 64   ;;  %s3510_s22 = smov 88  }
  0x10   : > { %s5132_s9 = smov (!%p179_p4, %s3498_s9), 1  ;;  %s3511_s23 = smov 120  }
  0x11   : > { %s3555_s13 = sshll.u32 %s5132_s9, 7  ;;  %s3512_s24 = smov 56  }
  0x12   : > { %s3561_s16 = scalar_lea.vmem %s4998_s1, %s3555_s13  ;;  %s3607_s20 = scalar_lea.vmem %s4997_s0, %s3555_s13 }
  0x13   : > { %v231_v0 = vld [vmem:[%s3561_s16] sm:$0xff]  ;;  %v232_v1 = vld [vmem:[%s3561_s16 + $0x8] sm:$0xff]  ;;  %v233_v2 = vld [vmem:[%s3561_s16 + $0x10] sm:$0xff]  ;;  %s3513_s25 = smov 80   ;;  %s3514_s26 = smov 112  }
  0x14   : > { %v3566_v3 = vpack.c.bf16 %v232_v1, %v231_v0  ;;  %v234_v4 = vld [vmem:[%s3561_s16 + $0x18] sm:$0xff]  ;;  %v235_v5 = vld [vmem:[%s3561_s16 + $0x20] sm:$0xff]  ;;  %v236_v6 = vld [vmem:[%s3561_s16 + $0x28] sm:$0xff]  ;;  %s3515_s27 = smov 48   ;;  %s3516_s28 = smov 72  }
  0x15   : > { %v3571_v7 = vpack.c.bf16 %v236_v6, %v235_v5  ;;  %v237_v8 = vld [vmem:[%s3561_s16 + $0x30] sm:$0xff]  ;;  %v238_v9 = vld [vmem:[%s3561_s16 + $0x38] sm:$0xff]  ;;  %v3576_v10 = vpack.c.bf16 %v234_v4, %v233_v2  ;;  %v239_v12 = vld [vmem:[%s3561_s16 + $0x40] sm:$0xff]  ;;  %s3517_s29 = smov 104   ;;  %s3518_s30 = smov 40  }
  0x16   : > { %263 = vrot.lane.b32.xlu0 %v3566_v3, %s3508_s17  ;;  %v3579_v11 = vpack.c.bf16 %v238_v9, %v237_v8  ;;  %v240_v13 = vld [vmem:[%s3561_s16 + $0x48] sm:$0xff]  ;;  %v241_v14 = vld [vmem:[%s3561_s16 + $0x50] sm:$0xff]  ;;  %v242_v15 = vld [vmem:[%s3561_s16 + $0x58] sm:$0xff]  ;;  %s3519_s3 = smov 8   ;;  %s3520_s4 = smov 16  }
  0x17   : > { %267 = vrot.lane.b32.xlu1 %v3571_v7, %s3508_s17  ;;  %v3586_v16 = vpack.c.bf16 %v240_v13, %v239_v12  ;;  %v3589_v17 = vpack.c.bf16 %v242_v15, %v241_v14  ;;  %v243_v18 = vld [vmem:[%s3561_s16 + $0x60] sm:$0xff]  ;;  %v244_v19 = vld [vmem:[%s3561_s16 + $0x68] sm:$0xff]  ;;  %v245_v20 = vld [vmem:[%s3561_s16 + $0x70] sm:$0xff]  ;;  %v204_v13 = vlaneseq  ;;  %s4749_s7 = scalar_lea.vmem %s4999_s2, %s3555_s13  ;;  %s3521_s8 = smov 24  }
  0x18   : > { %v246_v21 = vld [vmem:[%s3561_s16 + $0x78] sm:$0xff]  ;;  %v3596_v22 = vpack.c.bf16 %v244_v19, %v243_v18  ;;  %v207_v24 = vld [vmem:[%s3607_s20] sm:$0xff]  ;;  %v208_v25 = vld [vmem:[%s3607_s20 + $0x8] sm:$0xff] }
  0x19   : > { %v3599_v23 = vpack.c.bf16 %v246_v21, %v245_v20  ;;  %v3611_v26 = vpack.c.bf16 %v208_v25, %v207_v24  ;;  %v209_v43 = vld [vmem:[%s3607_s20 + $0x10] sm:$0xff]  ;;  %v210_v44 = vld [vmem:[%s3607_s20 + $0x18] sm:$0xff]  ;;  %v211_v45 = vld [vmem:[%s3607_s20 + $0x20] sm:$0xff]  ;;  %v3693_v14 = vand.u32 127, %v204_v13 }
  0x1a   : > { %265 = vrot.lane.b32.xlu0 %v3576_v10, %s3508_s17  ;;  %v212_v46 = vld [vmem:[%s3607_s20 + $0x28] sm:$0xff]  ;;  %v3651_v47 = vpack.c.bf16 %v210_v44, %v209_v43  ;;  %v213_v49 = vld [vmem:[%s3607_s20 + $0x30] sm:$0xff]  ;;  %v214_v50 = vld [vmem:[%s3607_s20 + $0x38] sm:$0xff] }
  0x1b   : > { %269 = vrot.lane.b32.xlu1 %v3579_v11, %s3508_s17  ;;  %2918 = vmatprep.mubr.msk.bf16.mxu0 %vm279_vm0, %v3611_v26  ;;  %v3653_v48 = vpack.c.bf16 %v212_v46, %v211_v45  ;;  %v215_v51 = vld [vmem:[%s3607_s20 + $0x40] sm:$0xff]  ;;  %v216_v52 = vld [vmem:[%s3607_s20 + $0x48] sm:$0xff]  ;;  %v3663_v53 = vpack.c.bf16 %v214_v50, %v213_v49  ;;  %v217_v55 = vld [vmem:[%s3607_s20 + $0x50] sm:$0xff]  ;;  %vm206_vm1 = vcmp.lt.s32.totalorder %v3693_v14, 17 }
  0x1c   : > { %v3665_v54 = vpack.c.bf16 %v216_v52, %v215_v51  ;;  %v218_v56 = vld [vmem:[%s3607_s20 + $0x58] sm:$0xff]  ;;  %v219_v57 = vld [vmem:[%s3607_s20 + $0x60] sm:$0xff]  ;;  %v220_v58 = vld [vmem:[%s3607_s20 + $0x68] sm:$0xff] }
  0x1d   : > { %v3675_v59 = vpack.c.bf16 %v218_v56, %v217_v55  ;;  %v3677_v60 = vpack.c.bf16 %v220_v58, %v219_v57  ;;  %v221_v61 = vld [vmem:[%s3607_s20 + $0x70] sm:$0xff]  ;;  %v222_v62 = vld [vmem:[%s3607_s20 + $0x78] sm:$0xff] }
  0x1e   : > { %271 = vrot.lane.b32.xlu0 %v3586_v16, %s3508_s17  ;;  %v3685_v63 = vpack.c.bf16 %v222_v62, %v221_v61 }
  0x1f   : > { %273 = vrot.lane.b32.xlu1 %v3589_v17, %s3508_s17 }
  0x22   : > { %275 = vrot.lane.b32.xlu0 %v3596_v22, %s3508_s17 }
  0x23   : > { %277 = vrot.lane.b32.xlu1 %v3599_v23, %s3508_s17 }
  0x26   : > { %577 = vrot.lane.b32.xlu0 %v3566_v3, %s3509_s21 }
  0x27   : > { %579 = vrot.lane.b32.xlu1 %v3576_v10, %s3509_s21 }
  0x2a   : > { %583 = vrot.lane.b32.xlu0 %v3579_v11, %s3509_s21 }
  0x2b   : > { %581 = vrot.lane.b32.xlu1 %v3571_v7, %s3509_s21 }
  0x2e   : > { %589 = vrot.lane.b32.xlu0 %v3596_v22, %s3509_s21 }
  0x2f   : > { %585 = vrot.lane.b32.xlu1 %v3586_v16, %s3509_s21 }
  0x32   : > { %826 = vrot.lane.b32.xlu0 %v3566_v3, %s3510_s22 }
  0x33   : > { %587 = vrot.lane.b32.xlu1 %v3589_v17, %s3509_s21 }
  0x36   : > { %828 = vrot.lane.b32.xlu0 %v3576_v10, %s3510_s22 }
  0x37   : > { %591 = vrot.lane.b32.xlu1 %v3599_v23, %s3509_s21 }
  0x3a   : > { %832 = vrot.lane.b32.xlu0 %v3579_v11, %s3510_s22 }
  0x3b   : > { %830 = vrot.lane.b32.xlu1 %v3571_v7, %s3510_s22 }
  0x88   : > { %v264_v27 = vpop.permute.xlu0 %263 }
  0x89   : > { %3158 = vmatprep.subr.msk.bf16.mxu0 %vm279_vm0, %v264_v27  ;;  %v305_v28 = vsel %vm279_vm0, %v264_v27, 0  ;;  %v268_v31 = vpop.permute.xlu1 %267 }
  0x8a   : > { %2903 = vmatpush3.bf16.xpose.msra.mxu0 %v305_v28  ;;  %v311_v32 = vsel %vm279_vm0, %v268_v31, 0 }
  0x8c   : > { %v266_v29 = vpop.permute.xlu0 %265 }
  0x8d   : > { %3159 = vmatprep.subr.msk.bf16.mxu0 %vm279_vm0, %v266_v29  ;;  %v308_v30 = vsel %vm279_vm0, %v266_v29, 0  ;;  %v270_v33 = vpop.permute.xlu1 %269 }
  0x8e   : > { %v314_v34 = vsel %vm279_vm0, %v270_v33, 0 }
  0x90   : > { %v272_v35 = vpop.permute.xlu0 %271 }
  0x91   : > { %v317_v36 = vsel %vm279_vm0, %v272_v35, 0  ;;  %v274_v37 = vpop.permute.xlu1 %273 }
  0x92   : > { %2905 = vmatpush3.bf16.xpose.msra.mxu0 %v308_v30  ;;  %v320_v38 = vsel %vm279_vm0, %v274_v37, 0 }
  0x93   : > { %3160 = vmatprep.subr.msk.bf16.mxu0 %vm279_vm0, %v268_v31 }
  0x94   : > { %v276_v39 = vpop.permute.xlu0 %275 }
  0x95   : > { %v323_v40 = vsel %vm279_vm0, %v276_v39, 0  ;;  %v278_v41 = vpop.permute.xlu1 %277 }
  0x96   : > { %v326_v42 = vsel %vm279_vm0, %v278_v41, 0 }
  0x98   : > { %v578_v0 = vpop.permute.xlu0 %577 }
  0x99   : > { %v580_v1 = vpop.permute.xlu1 %579  ;;  %2934 = vmatprep.subr.bf16.mxu1 %v578_v0 }
  0x9a   : > { %2907 = vmatpush3.bf16.xpose.msra.mxu0 %v311_v32  ;;  %2935 = vmatpush3.bf16.msra.mxu1 %v578_v0 }
  0x9b   : > { %3161 = vmatprep.subr.msk.bf16.mxu0 %vm279_vm0, %v270_v33  ;;  %2936 = vmatprep.subr.bf16.mxu1 %v580_v1 }
  0x9c   : > { %v584_v4 = vpop.permute.xlu0 %583 }
  0x9d   : > { %v582_v2 = vpop.permute.xlu1 %581 }
  0x9e   : > { %2937 = vmatpush3.bf16.msra.mxu1 %v580_v1 }
  0x9f   : > { %2938 = vmatprep.subr.bf16.mxu1 %v582_v2 }
  0xa0   : > { %v590_v8 = vpop.permute.xlu0 %589 }
  0xa1   : > { %v586_v5 = vpop.permute.xlu1 %585 }
  0xa2   : > { %2909 = vmatpush3.bf16.xpose.msra.mxu0 %v314_v34  ;;  %2939 = vmatpush3.bf16.msra.mxu1 %v582_v2 }
  0xa3   : > { %3162 = vmatprep.subr.msk.bf16.mxu0 %vm279_vm0, %v272_v35  ;;  %2940 = vmatprep.subr.bf16.mxu1 %v584_v4 }
  0xa4   : > { %v3689_v12 = vpop.permute.xlu0 %826 }
  0xa5   : > { %v588_v6 = vpop.permute.xlu1 %587 }
  0xa6   : > { %2941 = vmatpush3.bf16.msra.mxu1 %v584_v4 }
  0xa7   : > { %2942 = vmatprep.subr.bf16.mxu1 %v586_v5 }
  0xa9   : > { %v592_v9 = vpop.permute.xlu1 %591 }
  0xaa   : > { %2911 = vmatpush3.bf16.xpose.msra.mxu0 %v317_v36  ;;  %2943 = vmatpush3.bf16.msra.mxu1 %v586_v5 }
  0xab   : > { %3163 = vmatprep.subr.msk.bf16.mxu0 %vm279_vm0, %v274_v37  ;;  %2944 = vmatprep.subr.bf16.mxu1 %v588_v6 }
  0xae   : > { %2945 = vmatpush3.bf16.msra.mxu1 %v588_v6 }
  0xaf   : > { %2946 = vmatprep.subr.bf16.mxu1 %v590_v8 }
  0xb2   : > { %2913 = vmatpush3.bf16.xpose.msra.mxu0 %v320_v38  ;;  %2947 = vmatpush3.bf16.msra.mxu1 %v590_v8 }
  0xb3   : > { %3164 = vmatprep.subr.msk.bf16.mxu0 %vm279_vm0, %v276_v39  ;;  %2948 = vmatprep.subr.bf16.mxu1 %v592_v9 }
  0xb6   : > { %2949 = vmatpush3.bf16.msra.mxu1 %v592_v9 }
  0xb7   : > { %3166 = vmatprep.subr.msk.bf16.mxu1 %vm279_vm0, %v3689_v12 }
  0xba   : > { %2915 = vmatpush3.bf16.xpose.msra.mxu0 %v323_v40 }
  0xbb   : > { %3165 = vmatprep.subr.msk.bf16.mxu0 %vm279_vm0, %v278_v41 }
  0xc2   : > { %2917 = vmatpush3.bf16.xpose.msra.mxu0 %v326_v42 }
  0xc9   : > { %2919 = vmatmul.mubr.msk.bf16.vlgmr.msra.gmra.mrb[0].mxu0 %vm279_vm0, %v3651_v47 }
  0xca   : > { %2922 = vmatprep.mubr.msk.bf16.mxu0 %vm279_vm0, %v3653_v48 }
  0xd1   : > { %2923 = vmatmul.mubr.msk.bf16.gmra.mrb[4].mxu0 %vm279_vm0, %v3663_v53 }
  0xd2   : > { %2926 = vmatprep.mubr.msk.bf16.mxu0 %vm279_vm0, %v3665_v54 }
  0xd9   : > { %2927 = vmatmul.mubr.msk.bf16.gmra.mrb[8].mxu0 %vm279_vm0, %v3675_v59 }
  0xda   : > { %2930 = vmatprep.mubr.msk.bf16.mxu0 %vm279_vm0, %v3677_v60 }
  0xe1   : > { %2931 = vmatmul.mubr.msk.bf16.gmra.mrb[12].mxu0 %vm279_vm0, %v3685_v63 }
 0x19c   : > { %v2920_v15 = vpop.f32.mrb[0].mxu0 }
 0x19d   : > { %v427_v18 = vmul.f32 0.35355338, %v2920_v15  ;;  %v362_v19 = vpop.f32.mrb[1].mxu0 }
 0x19e   : > { %v2921_v20 = vpop.f32.mrb[2].mxu0  ;;  %v425_v21 = vmul.f32 0.35355338, %v362_v19  ;;  %v3792_v19 = vpop.permute.xlu0 %828 }
 0x19f   : > { %v365_v24 = vpop.f32.mrb[3].mxu0  ;;  %v3698_v25 = vsel %vm206_vm1, %v427_v18, -1e+30  ;;  %v428_v28 = vmul.f32 0.35355338, %v2921_v20 }
 0x1a0   : > { %v426_v27 = vmul.f32 0.35355338, %v365_v24  ;;  %461 = vmax.xlane.f32.xlu0 %v3698_v25  ;;  %v3708_v30 = vsel %vm206_vm1, %v425_v21, -1e+30  ;;  %v3796_v21 = vpop.permute.xlu1 %830 }
 0x1a1   : > { %v3713_v35 = vsel %vm206_vm1, %v428_v28, -1e+30 }
 0x1a2   : > { %v3703_v29 = vsel %vm206_vm1, %v426_v27, -1e+30  ;;  %v3794_v20 = vpop.permute.xlu0 %832 }
 0x1a3   : > { %459 = vmax.xlane.f32.xlu1 %v3703_v29 }
 0x1a4   : > { %457 = vmax.xlane.f32.xlu0 %v3708_v30  ;;  %v2924_v31 = vpop.f32.mrb[4].mxu0 }
 0x1a5   : > { %v431_v32 = vmul.f32 0.35355338, %v2924_v31  ;;  %v378_v33 = vpop.f32.mrb[5].mxu0 }
 0x1a6   : > { %v2925_v34 = vpop.f32.mrb[6].mxu0  ;;  %v429_v36 = vmul.f32 0.35355338, %v378_v33 }
 0x1a7   : > { %v381_v37 = vpop.f32.mrb[7].mxu0  ;;  %v3717_v38 = vsel %vm206_vm1, %v431_v32, -1e+30  ;;  %v432_v40 = vmul.f32 0.35355338, %v2925_v34 }
 0x1a8   : > { %v430_v39 = vmul.f32 0.35355338, %v381_v37  ;;  %463 = vmax.xlane.f32.xlu0 %v3713_v35  ;;  %469 = vmax.xlane.f32.xlu1 %v3717_v38  ;;  %v3727_v42 = vsel %vm206_vm1, %v429_v36, -1e+30 }
 0x1a9   : > { %v3733_v49 = vsel %vm206_vm1, %v432_v40, -1e+30 }
 0x1aa   : > { %v3723_v41 = vsel %vm206_vm1, %v430_v39, -1e+30 }
 0x1ac   : > { %465 = vmax.xlane.f32.xlu1 %v3727_v42  ;;  %467 = vmax.xlane.f32.xlu0 %v3723_v41  ;;  %v2928_v43 = vpop.f32.mrb[8].mxu0 }
 0x1ad   : > { %v435_v44 = vmul.f32 0.35355338, %v2928_v43  ;;  %v394_v45 = vpop.f32.mrb[9].mxu0 }
 0x1ae   : > { %v2929_v46 = vpop.f32.mrb[10].mxu0  ;;  %v433_v50 = vmul.f32 0.35355338, %v394_v45 }
 0x1af   : > { %v397_v51 = vpop.f32.mrb[11].mxu0  ;;  %v3737_v52 = vsel %vm206_vm1, %v435_v44, -1e+30  ;;  %v436_v55 = vmul.f32 0.35355338, %v2929_v46 }
 0x1b0   : > { %471 = vmax.xlane.f32.xlu1 %v3733_v49  ;;  %477 = vmax.xlane.f32.xlu0 %v3737_v52  ;;  %v3743_v56 = vsel %vm206_vm1, %v433_v50, -1e+30  ;;  %v434_v0 = vmul.f32 0.35355338, %v397_v51 }
 0x1b1   : > { %v3748_v2 = vsel %vm206_vm1, %v436_v55, -1e+30 }
 0x1b2   : > { %v3758_v6 = vsel %vm206_vm1, %v434_v0, -1e+30 }
 0x1b4   : > { %473 = vmax.xlane.f32.xlu1 %v3743_v56  ;;  %v2932_v57 = vpop.f32.mrb[12].mxu0 }
 0x1b5   : > { %v410_v58 = vpop.f32.mrb[13].mxu0  ;;  %v439_v5 = vmul.f32 0.35355338, %v2932_v57 }
 0x1b6   : > { %v437_v61 = vmul.f32 0.35355338, %v410_v58  ;;  %v2933_v62 = vpop.f32.mrb[14].mxu0 }
 0x1b7   : > { %v413_v1 = vpop.f32.mrb[15].mxu0  ;;  %v440_v8 = vmul.f32 0.35355338, %v2933_v62  ;;  %v3763_v9 = vsel %vm206_vm1, %v439_v5, -1e+30 }
 0x1b8   : > { %479 = vmax.xlane.f32.xlu1 %v3748_v2  ;;  %v3753_v4 = vsel %vm206_vm1, %v437_v61, -1e+30  ;;  %v438_v15 = vmul.f32 0.35355338, %v413_v1 }
 0x1b9   : > { %481 = vmax.xlane.f32.xlu0 %v3753_v4  ;;  %v3768_v13 = vsel %vm206_vm1, %v440_v8, -1e+30 }
 0x1ba   : > { %v3781_v18 = vsel %vm206_vm1, %v438_v15, -1e+30 }
 0x1bc   : > { %475 = vmax.xlane.f32.xlu1 %v3758_v6 }
 0x1c0   : > { %485 = vmax.xlane.f32.xlu1 %v3763_v9 }
 0x1c4   : > { %487 = vmax.xlane.f32.xlu1 %v3768_v13 }
 0x1cf   : > { %836 = vrot.lane.b32.xlu0 %v3589_v17, %s3510_s22 }
 0x1d5   : > { %834 = vrot.lane.b32.xlu1 %v3586_v16, %s3510_s22 }
 0x1d9   : > { %804 = vrot.lane.b32.xlu1 %v3651_v47, %s3511_s23 }
 0x1dd   : > { %808 = vrot.lane.b32.xlu1 %v3663_v53, %s3511_s23 }
 0x1e1   : > { %812 = vrot.lane.b32.xlu1 %v3675_v59, %s3511_s23 }
 0x1e5   : > { %816 = vrot.lane.b32.xlu1 %v3685_v63, %s3511_s23 }
 0x1e9   : > { %1141 = vrot.lane.b32.xlu1 %v3576_v10, %s3512_s24 }
 0x1ed   : > { %1143 = vrot.lane.b32.xlu1 %v3571_v7, %s3512_s24 }
 0x1ee   : > { %483 = vmax.xlane.f32.xlu0 %v3781_v18 }
 0x1f1   : > { %1147 = vrot.lane.b32.xlu1 %v3586_v16, %s3512_s24 }
 0x1f5   : > { %1149 = vrot.lane.b32.xlu1 %v3589_v17, %s3512_s24 }
 0x1f9   : > { %1153 = vrot.lane.b32.xlu1 %v3599_v23, %s3512_s24 }
 0x1fd   : > { %1457 = vrot.lane.b32.xlu1 %v3571_v7, %s3513_s25 }
 0x204   : > { %838 = vrot.lane.b32.xlu0 %v3596_v22, %s3510_s22 }
 0x208   : > { %840 = vrot.lane.b32.xlu0 %v3599_v23, %s3510_s22 }
 0x20c   : > { %802 = vrot.lane.b32.xlu0 %v3611_v26, %s3511_s23 }
 0x210   : > { %806 = vrot.lane.b32.xlu0 %v3653_v48, %s3511_s23 }
 0x214   : > { %810 = vrot.lane.b32.xlu0 %v3665_v54, %s3511_s23 }
 0x218   : > { %814 = vrot.lane.b32.xlu0 %v3677_v60, %s3511_s23 }
 0x21c   : > { %1139 = vrot.lane.b32.xlu0 %v3566_v3, %s3512_s24 }
 0x220   : > { %1145 = vrot.lane.b32.xlu0 %v3579_v11, %s3512_s24 }
 0x224   : > { %1151 = vrot.lane.b32.xlu0 %v3596_v22, %s3512_s24 }
 0x228   : > { %1453 = vrot.lane.b32.xlu0 %v3566_v3, %s3513_s25 }
 0x22c   : > { %1455 = vrot.lane.b32.xlu0 %v3576_v10, %s3513_s25 }
 0x22d   : > { %v462_v24 = vpop.xlane.xlu0 %461 }
 0x22e   : > { %v491_v28 = vsub.f32 %v3698_v25, %v462_v24 }
 0x230   : > { %v460_v27 = vpop.xlane.xlu1 %459  ;;  %v509_v37 = vmul.f32 1.442695, %v491_v28  ;;  %1459 = vrot.lane.b32.xlu0 %v3579_v11, %s3513_s25 }
 0x231   : > { %v490_v31 = vsub.f32 %v3703_v29, %v460_v27  ;;  %v458_v32 = vpop.xlane.xlu0 %457  ;;  %v867_v27 = vsel %vm279_vm0, %v3689_v12, 0 }
 0x232   : > { %v489_v33 = vsub.f32 %v3708_v30, %v458_v32 }
 0x233   : > { %v507_v34 = vmul.f32 1.442695, %v490_v31 }
 0x234   : > { %v505_v36 = vmul.f32 1.442695, %v489_v33 }
 0x235   : > { %3228 = vpow2.f32 %v507_v34  ;;  %v464_v39 = vpop.xlane.xlu0 %463  ;;  %v470_v40 = vpop.xlane.xlu1 %469 }
 0x236   : > { %3230 = vpow2.f32 %v505_v36  ;;  %v492_v43 = vsub.f32 %v3713_v35, %v464_v39  ;;  %v495_v45 = vsub.f32 %v3717_v38, %v470_v40 }
 0x237   : > { %3232 = vpow2.f32 %v509_v37 }
 0x238   : > { %v511_v44 = vmul.f32 1.442695, %v492_v43  ;;  %v517_v55 = vmul.f32 1.442695, %v495_v45  ;;  %v873_v45 = vsel %vm279_vm0, %v3796_v21, 0 }
 0x239   : > { %v466_v46 = vpop.xlane.xlu1 %465  ;;  %v468_v25 = vpop.xlane.xlu0 %467 }
 0x23a   : > { %3234 = vpow2.f32 %v511_v44  ;;  %v493_v29 = vsub.f32 %v3727_v42, %v466_v46  ;;  %v494_v30 = vsub.f32 %v3723_v41, %v468_v25 }
 0x23c   : > { %v513_v50 = vmul.f32 1.442695, %v493_v29  ;;  %v515_v51 = vmul.f32 1.442695, %v494_v30 }
 0x23d   : > { %v472_v57 = vpop.xlane.xlu1 %471  ;;  %v478_v1 = vpop.xlane.xlu0 %477 }
 0x23e   : > { %3236 = vpow2.f32 %v513_v50  ;;  %v496_v58 = vsub.f32 %v3733_v49, %v472_v57  ;;  %v499_v24 = vsub.f32 %v3737_v52, %v478_v1 }
 0x23f   : > { %v3806_v61 = vpop.eup %3228  ;;  %3238 = vpow2.f32 %v515_v51 }
 0x240   : > { %5013 = vst [vmem:[#allocation2_spill] sm:$0xff] %v3806_v61  ;;  %v3808_v35 = vpop.eup %3230  ;;  %v519_v38 = vmul.f32 1.442695, %v496_v58  ;;  %3240 = vpow2.f32 %v517_v55  ;;  %v525_v36 = vmul.f32 1.442695, %v499_v24 }
 0x241   : > { %v474_v62 = vpop.xlane.xlu1 %473  ;;  %v569_v42 = vpack.c.bf16 %v3806_v61, %v3808_v35  ;;  %v3812_v41 = vpop.eup %3232 }
 0x242   : > { %3242 = vpow2.f32 %v519_v38  ;;  %v497_v49 = vsub.f32 %v3743_v56, %v474_v62 }
 0x243   : > { %2950 = vmatprep.mubr.bf16.mxu1 %v569_v42 }
 0x244   : > { %v3814_v0 = vpop.eup %3234  ;;  %v521_v31 = vmul.f32 1.442695, %v497_v49 }
 0x245   : > { %5014 = vst [vmem:[#allocation3_spill] sm:$0xff] %v3814_v0  ;;  %v480_v5 = vpop.xlane.xlu1 %479  ;;  %v570_v8 = vpack.c.bf16 %v3814_v0, %v3812_v41 }
 0x246   : > { %v500_v15 = vsub.f32 %v3748_v2, %v480_v5  ;;  %3244 = vpow2.f32 %v521_v31  ;;  %v482_v51 = vpop.xlane.xlu0 %481 }
 0x247   : > { %2951 = vmatmul.mubr.bf16.vlgmr.msra.gmra.mrb[0].mxu1 %v570_v8  ;;  %v501_v38 = vsub.f32 %v3753_v4, %v482_v51 }
 0x248   : > { %v3823_v28 = vpop.eup %3236  ;;  %2967 = vmatpush3.bf16.xpose.msra.mxu1 %v867_v27  ;;  %v527_v33 = vmul.f32 1.442695, %v500_v15 }
 0x249   : > { %v3825_v32 = vpop.eup %3238  ;;  %3167 = vmatprep.subr.msk.bf16.mxu1 %vm279_vm0, %v3792_v19  ;;  %v476_v56 = vpop.xlane.xlu1 %475 }
 0x24a   : > { %5015 = vst [vmem:[#allocation4_spill] sm:$0xff] %v3825_v32  ;;  %v498_v34 = vsub.f32 %v3758_v6, %v476_v56  ;;  %v571_v52 = vpack.c.bf16 %v3825_v32, %v3823_v28  ;;  %v3832_v2 = vpop.eup %3240  ;;  %3246 = vpow2.f32 %v527_v33  ;;  %v870_v6 = vsel %vm279_vm0, %v3792_v19, 0  ;;  %v837_v57 = vpop.permute.xlu0 %836 }
 0x24b   : > { %5016 = vst [vmem:[#allocation5_spill] sm:$0xff] %v3832_v2  ;;  %v882_v58 = vsel %vm279_vm0, %v837_v57, 0 }
 0x24c   : > { %v3834_v12 = vpop.eup %3242  ;;  %v523_v37 = vmul.f32 1.442695, %v498_v34  ;;  %2954 = vmatprep.mubr.bf16.mxu1 %v571_v52 }
 0x24d   : > { %5017 = vst [vmem:[#allocation6_spill] sm:$0xff] %v3834_v12  ;;  %v572_v39 = vpack.c.bf16 %v3834_v12, %v3832_v2  ;;  %v486_v40 = vpop.xlane.xlu1 %485  ;;  %v2012_v12 = vld [vmem:[%s3607_s20 + $0x60] sm:$0xff] }
 0x24e   : > { %3248 = vpow2.f32 %v523_v37  ;;  %v503_v42 = vsub.f32 %v3763_v9, %v486_v40 }
 0x24f   : > { %3250 = vpow2.f32 %v525_v36  ;;  %2955 = vmatmul.mubr.bf16.gmra.mrb[4].mxu1 %v572_v39 }
 0x250   : > { %2969 = vmatpush3.bf16.xpose.msra.mxu1 %v870_v6  ;;  %v3842_v43 = vpop.eup %3244  ;;  %v533_v8 = vmul.f32 1.442695, %v503_v42 }
 0x251   : > { %3168 = vmatprep.subr.msk.bf16.mxu1 %vm279_vm0, %v3796_v21  ;;  %5018 = vst [vmem:[#allocation7_spill] sm:$0xff] %v3842_v43  ;;  %v488_v29 = vpop.xlane.xlu1 %487  ;;  %v876_v21 = vsel %vm279_vm0, %v3794_v20, 0 }
 0x252   : > { %v504_v62 = vsub.f32 %v3768_v13, %v488_v29 }
 0x254   : > { %v3844_v44 = vpop.eup %3246  ;;  %v535_v1 = vmul.f32 1.442695, %v504_v62 }
 0x255   : > { %5019 = vst [vmem:[#allocation8_spill] sm:$0xff] %v3844_v44  ;;  %v835_v50 = vpop.permute.xlu1 %834 }
 0x256   : > { %v879_v55 = vsel %vm279_vm0, %v835_v50, 0 }
 0x258   : > { %v3848_v46 = vpop.eup %3248  ;;  %2971 = vmatpush3.bf16.xpose.msra.mxu1 %v873_v45 }
 0x259   : > { %5020 = vst [vmem:[#allocation9_spill] sm:$0xff] %v3848_v46  ;;  %v3850_v25 = vpop.eup %3250  ;;  %3169 = vmatprep.subr.msk.bf16.mxu1 %vm279_vm0, %v3794_v20  ;;  %v573_v19 = vpack.c.bf16 %v3848_v46, %v3842_v43  ;;  %v529_v20 = vmul.f32 1.442695, %v501_v38  ;;  %v805_v36 = vpop.permute.xlu1 %804  ;;  %v2009_v46 = vld [vmem:[%s3607_s20 + $0x48] sm:$0xff] }
 0x25a   : > { %5021 = vst [vmem:[#allocation10_spill] sm:$0xff] %v3850_v25  ;;  %v574_v30 = vpack.c.bf16 %v3844_v44, %v3850_v25  ;;  %v2015_v44 = vld [vmem:[%s3607_s20 + $0x78] sm:$0xff] }
 0x25b   : > { %2958 = vmatprep.mubr.bf16.mxu1 %v573_v19  ;;  %3252 = vpow2.f32 %v529_v20 }
 0x25c   : > { %2959 = vmatmul.mubr.bf16.gmra.mrb[8].mxu1 %v574_v30  ;;  %3254 = vpow2.f32 %v535_v1 }
 0x25d   : > { %v809_v39 = vpop.permute.xlu1 %808 }
 0x260   : > { %2973 = vmatpush3.bf16.xpose.msra.mxu1 %v876_v21 }
 0x261   : > { %3170 = vmatprep.subr.msk.bf16.mxu1 %vm279_vm0, %v835_v50  ;;  %v813_v40 = vpop.permute.xlu1 %812 }
 0x265   : > { %v3872_v13 = vpop.eup %3252  ;;  %v817_v19 = vpop.permute.xlu1 %816 }
 0x266   : > { %5022 = vst [vmem:[#allocation11_spill] sm:$0xff] %v3872_v13 }
 0x268   : > { %2975 = vmatpush3.bf16.xpose.msra.mxu1 %v879_v55 }
 0x269   : > { %3171 = vmatprep.subr.msk.bf16.mxu1 %vm279_vm0, %v837_v57  ;;  %v1142_v55 = vpop.permute.xlu1 %1141 }
 0x26d   : > { %v1144_v57 = vpop.permute.xlu1 %1143 }
 0x270   : > { %2977 = vmatpush3.bf16.xpose.msra.mxu1 %v882_v58 }
 0x271   : > { %v1148_v1 = vpop.permute.xlu1 %1147 }
 0x27b   : > { %v484_v49 = vpop.xlane.xlu0 %483 }
 0x27c   : > { %v502_v5 = vsub.f32 %v3781_v18, %v484_v49  ;;  %v3874_v18 = vpop.eup %3254  ;;  %v1150_v49 = vpop.permute.xlu1 %1149 }
 0x27d   : > { %5023 = vst [vmem:[#allocation12_spill] sm:$0xff] %v3874_v18 }
 0x27e   : > { %v531_v15 = vmul.f32 1.442695, %v502_v5 }
 0x27f   : > { %v839_v24 = vpop.permute.xlu0 %838 }
 0x280   : > { %3256 = vpow2.f32 %v531_v15  ;;  %3172 = vmatprep.subr.msk.bf16.mxu1 %vm279_vm0, %v839_v24  ;;  %v885_v27 = vsel %vm279_vm0, %v839_v24, 0 }
 0x281   : > { %3258 = vpow2.f32 %v533_v8  ;;  %2979 = vmatpush3.bf16.xpose.msra.mxu1 %v885_v27 }
 0x283   : > { %v841_v4 = vpop.permute.xlu0 %840 }
 0x284   : > { %3173 = vmatprep.subr.msk.bf16.mxu1 %vm279_vm0, %v841_v4  ;;  %v888_v9 = vsel %vm279_vm0, %v841_v4, 0  ;;  %v1154_v4 = vpop.permute.xlu1 %1153 }
 0x287   : > { %v803_v52 = vpop.permute.xlu0 %802 }
 0x289   : > { %2981 = vmatpush3.bf16.xpose.msra.mxu1 %v888_v9 }
 0x28a   : > { %v3876_v31 = vpop.eup %3256 }
 0x28b   : > { %5024 = vst [vmem:[#allocation13_spill] sm:$0xff] %v3876_v31  ;;  %v3878_v33 = vpop.eup %3258  ;;  %v575_v56 = vpack.c.bf16 %v3876_v31, %v3872_v13  ;;  %v807_v37 = vpop.permute.xlu0 %806  ;;  %v2011_v31 = vld [vmem:[%s3607_s20 + $0x58] sm:$0xff]  ;;  %v2013_v13 = vld [vmem:[%s3607_s20 + $0x68] sm:$0xff] }
 0x28c   : > { %5025 = vst [vmem:[#allocation14_spill] sm:$0xff] %v3878_v33  ;;  %v576_v34 = vpack.c.bf16 %v3874_v18, %v3878_v33  ;;  %v2007_v18 = vld [vmem:[%s3607_s20 + $0x38] sm:$0xff] }
 0x28d   : > { %2962 = vmatprep.mubr.bf16.mxu1 %v575_v56 }
 0x28e   : > { %2963 = vmatmul.mubr.bf16.gmra.mrb[12].mxu1 %v576_v34 }
 0x28f   : > { %2982 = vmatprep.mubr.msk.bf16.mxu1 %vm279_vm0, %v803_v52  ;;  %v811_v6 = vpop.permute.xlu0 %810 }
 0x293   : > { %v815_v45 = vpop.permute.xlu0 %814 }
 0x296   : > { %2983 = vmatmul.mubr.msk.bf16.vlgmr.msra.gmra.mrb[16].mxu1 %vm279_vm0, %v805_v36 }
 0x297   : > { %2986 = vmatprep.mubr.msk.bf16.mxu1 %vm279_vm0, %v807_v37  ;;  %v1140_v21 = vpop.permute.xlu0 %1139 }
 0x298   : > { %2998 = vmatprep.subr.bf16.mxu0 %v1140_v21 }
 0x299   : > { %2999 = vmatpush3.bf16.msra.mxu0 %v1140_v21 }
 0x29a   : > { %3000 = vmatprep.subr.bf16.mxu0 %v1142_v55 }
 0x29b   : > { %v1146_v42 = vpop.permute.xlu0 %1145 }
 0x29d   : > { %3001 = vmatpush3.bf16.msra.mxu0 %v1142_v55 }
 0x29e   : > { %2987 = vmatmul.mubr.msk.bf16.gmra.mrb[20].mxu1 %vm279_vm0, %v809_v39  ;;  %3002 = vmatprep.subr.bf16.mxu0 %v1144_v57 }
 0x29f   : > { %2990 = vmatprep.mubr.msk.bf16.mxu1 %vm279_vm0, %v811_v6  ;;  %v1152_v15 = vpop.permute.xlu0 %1151 }
 0x2a1   : > { %3003 = vmatpush3.bf16.msra.mxu0 %v1144_v57 }
 0x2a2   : > { %3004 = vmatprep.subr.bf16.mxu0 %v1146_v42 }
 0x2a3   : > { %v3932_v9 = vpop.permute.xlu0 %1453 }
 0x2a5   : > { %3005 = vmatpush3.bf16.msra.mxu0 %v1146_v42 }
 0x2a6   : > { %2991 = vmatmul.mubr.msk.bf16.gmra.mrb[24].mxu1 %vm279_vm0, %v813_v40  ;;  %3006 = vmatprep.subr.bf16.mxu0 %v1148_v1 }
 0x2a7   : > { %2994 = vmatprep.mubr.msk.bf16.mxu1 %vm279_vm0, %v815_v45 }
 0x2a9   : > { %3007 = vmatpush3.bf16.msra.mxu0 %v1148_v1 }
 0x2aa   : > { %3008 = vmatprep.subr.bf16.mxu0 %v1150_v49 }
 0x2ad   : > { %3009 = vmatpush3.bf16.msra.mxu0 %v1150_v49 }
 0x2ae   : > { %2995 = vmatmul.mubr.msk.bf16.gmra.mrb[28].mxu1 %vm279_vm0, %v817_v19  ;;  %3010 = vmatprep.subr.bf16.mxu0 %v1152_v15 }
 0x2b1   : > { %3011 = vmatpush3.bf16.msra.mxu0 %v1152_v15 }
 0x2b2   : > { %3012 = vmatprep.subr.bf16.mxu0 %v1154_v4 }
 0x2b5   : > { %3013 = vmatpush3.bf16.msra.mxu0 %v1154_v4 }
 0x2b6   : > { %3174 = vmatprep.subr.msk.bf16.mxu0 %vm279_vm0, %v3932_v9 }
 0x31a   : > { %v3908_v29 = vpop.f32.mrb[0].mxu1 }
 0x31b   : > { %5026 = vst [vmem:[#allocation15_spill] sm:$0xff] %v3908_v29  ;;  %v3910_v30 = vpop.f32.mrb[1].mxu1 }
 0x31c   : > { %5027 = vst [vmem:[#allocation16_spill] sm:$0xff] %v3910_v30  ;;  %v3912_v50 = vpop.f32.mrb[2].mxu1 }
 0x31d   : > { %5028 = vst [vmem:[#allocation17_spill] sm:$0xff] %v3912_v50  ;;  %v3914_v51 = vpop.f32.mrb[3].mxu1 }
 0x31e   : > { %5029 = vst [vmem:[#allocation18_spill] sm:$0xff] %v3914_v51 }
 0x322   : > { %v3916_v58 = vpop.f32.mrb[4].mxu1 }
 0x323   : > { %5030 = vst [vmem:[#allocation19_spill] sm:$0xff] %v3916_v58  ;;  %v3918_v38 = vpop.f32.mrb[5].mxu1 }
 0x324   : > { %5031 = vst [vmem:[#allocation20_spill] sm:$0xff] %v3918_v38  ;;  %v3920_v62 = vpop.f32.mrb[6].mxu1 }
 0x325   : > { %5032 = vst [vmem:[#allocation21_spill] sm:$0xff] %v3920_v62  ;;  %v3922_v20 = vpop.f32.mrb[7].mxu1 }
 0x326   : > { %5033 = vst [vmem:[#allocation22_spill] sm:$0xff] %v3922_v20 }
 0x32f   : > { %v3924_v5 = vpop.f32.mrb[8].mxu1 }
 0x330   : > { %5034 = vst [vmem:[#allocation23_spill] sm:$0xff] %v3924_v5  ;;  %v3926_v8 = vpop.f32.mrb[9].mxu1 }
 0x331   : > { %5035 = vst [vmem:[#allocation24_spill] sm:$0xff] %v3926_v8  ;;  %v3928_v24 = vpop.f32.mrb[10].mxu1 }
 0x332   : > { %5036 = vst [vmem:[#allocation25_spill] sm:$0xff] %v3928_v24  ;;  %v3930_v27 = vpop.f32.mrb[11].mxu1 }
 0x333   : > { %5037 = vst [vmem:[#allocation26_spill] sm:$0xff] %v3930_v27 }
 0x361   : > { %v3936_v56 = vpop.f32.mrb[12].mxu1 }
 0x362   : > { %5038 = vst [vmem:[#allocation27_spill] sm:$0xff] %v3936_v56  ;;  %v3938_v34 = vpop.f32.mrb[13].mxu1 }
 0x363   : > { %5039 = vst [vmem:[#allocation28_spill] sm:$0xff] %v3938_v34  ;;  %v3940_v52 = vpop.f32.mrb[14].mxu1 }
 0x364   : > { %5040 = vst [vmem:[#allocation29_spill] sm:$0xff] %v3940_v52  ;;  %v3942_v36 = vpop.f32.mrb[15].mxu1 }
 0x365   : > { %5041 = vst [vmem:[#allocation30_spill] sm:$0xff] %v3942_v36 }
 0x369   : > { %v2984_v37 = vpop.f32.mrb[16].mxu1 }
 0x36a   : > { %v989_v39 = vmul.f32 0.35355338, %v2984_v37  ;;  %v924_v6 = vpop.f32.mrb[17].mxu1 }
 0x36b   : > { %v2985_v40 = vpop.f32.mrb[18].mxu1  ;;  %v987_v45 = vmul.f32 0.35355338, %v924_v6 }
 0x36c   : > { %v927_v19 = vpop.f32.mrb[19].mxu1  ;;  %v3946_v21 = vsel %vm206_vm1, %v989_v39, -1e+30  ;;  %v990_v57 = vmul.f32 0.35355338, %v2985_v40 }
 0x36d   : > { %v988_v55 = vmul.f32 0.35355338, %v927_v19  ;;  %1023 = vmax.xlane.f32.xlu0 %v3946_v21  ;;  %v3956_v1 = vsel %vm206_vm1, %v987_v45, -1e+30 }
 0x36e   : > { %v3961_v39 = vsel %vm206_vm1, %v990_v57, -1e+30 }
 0x36f   : > { %v3951_v42 = vsel %vm206_vm1, %v988_v55, -1e+30 }
 0x370   : > { %1021 = vmax.xlane.f32.xlu1 %v3951_v42 }
 0x371   : > { %1019 = vmax.xlane.f32.xlu0 %v3956_v1  ;;  %v2988_v49 = vpop.f32.mrb[20].mxu1 }
 0x372   : > { %v993_v15 = vmul.f32 0.35355338, %v2988_v49  ;;  %v940_v4 = vpop.f32.mrb[21].mxu1 }
 0x373   : > { %v2989_v37 = vpop.f32.mrb[22].mxu1  ;;  %v991_v6 = vmul.f32 0.35355338, %v940_v4 }
 0x374   : > { %v943_v40 = vpop.f32.mrb[23].mxu1  ;;  %v3965_v19 = vsel %vm206_vm1, %v993_v15, -1e+30  ;;  %v994_v45 = vmul.f32 0.35355338, %v2989_v37 }
 0x375   : > { %v992_v55 = vmul.f32 0.35355338, %v943_v40  ;;  %1025 = vmax.xlane.f32.xlu0 %v3961_v39  ;;  %1031 = vmax.xlane.f32.xlu1 %v3965_v19  ;;  %v3975_v57 = vsel %vm206_vm1, %v991_v6, -1e+30 }
 0x376   : > { %v3981_v36 = vsel %vm206_vm1, %v994_v45, -1e+30 }
 0x377   : > { %v3971_v49 = vsel %vm206_vm1, %v992_v55, -1e+30 }
 0x379   : > { %1027 = vmax.xlane.f32.xlu1 %v3975_v57  ;;  %1029 = vmax.xlane.f32.xlu0 %v3971_v49  ;;  %v2992_v15 = vpop.f32.mrb[24].mxu1 }
 0x37a   : > { %v997_v4 = vmul.f32 0.35355338, %v2992_v15  ;;  %v956_v40 = vpop.f32.mrb[25].mxu1 }
 0x37b   : > { %v2993_v52 = vpop.f32.mrb[26].mxu1  ;;  %v995_v37 = vmul.f32 0.35355338, %v956_v40 }
 0x37c   : > { %v959_v24 = vpop.f32.mrb[27].mxu1  ;;  %v3985_v55 = vsel %vm206_vm1, %v997_v4, -1e+30  ;;  %v998_v6 = vmul.f32 0.35355338, %v2993_v52 }
 0x37d   : > { %1033 = vmax.xlane.f32.xlu1 %v3981_v36  ;;  %1039 = vmax.xlane.f32.xlu0 %v3985_v55  ;;  %v3991_v15 = vsel %vm206_vm1, %v995_v37, -1e+30  ;;  %v996_v62 = vmul.f32 0.35355338, %v959_v24 }
 0x37e   : > { %v3996_v4 = vsel %vm206_vm1, %v998_v6, -1e+30 }
 0x37f   : > { %v4006_v20 = vsel %vm206_vm1, %v996_v62, -1e+30 }
 0x381   : > { %1035 = vmax.xlane.f32.xlu1 %v3991_v15  ;;  %v2996_v27 = vpop.f32.mrb[28].mxu1 }
 0x382   : > { %v972_v45 = vpop.f32.mrb[29].mxu1  ;;  %v1001_v37 = vmul.f32 0.35355338, %v2996_v27 }
 0x383   : > { %v999_v56 = vmul.f32 0.35355338, %v972_v45  ;;  %v2997_v40 = vpop.f32.mrb[30].mxu1 }
 0x384   : > { %v975_v34 = vpop.f32.mrb[31].mxu1  ;;  %v1002_v24 = vmul.f32 0.35355338, %v2997_v40  ;;  %v4011_v6 = vsel %vm206_vm1, %v1001_v37, -1e+30 }
 0x385   : > { %1041 = vmax.xlane.f32.xlu1 %v3996_v4  ;;  %v4001_v52 = vsel %vm206_vm1, %v999_v56, -1e+30  ;;  %v1000_v62 = vmul.f32 0.35355338, %v975_v34 }
 0x386   : > { %1043 = vmax.xlane.f32.xlu0 %v4001_v52  ;;  %v4016_v56 = vsel %vm206_vm1, %v1002_v24, -1e+30 }
 0x387   : > { %v4029_v27 = vsel %vm206_vm1, %v1000_v62, -1e+30 }
 0x389   : > { %1037 = vmax.xlane.f32.xlu1 %v4006_v20 }
 0x38d   : > { %1047 = vmax.xlane.f32.xlu1 %v4011_v6 }
 0x391   : > { %1049 = vmax.xlane.f32.xlu1 %v4016_v56 }
 0x39c   : > { %1463 = vrot.lane.b32.xlu0 %v3589_v17, %s3513_s25 }
 0x3a2   : > { %1461 = vrot.lane.b32.xlu1 %v3586_v16, %s3513_s25 }
 0x3a6   : > { %1431 = vrot.lane.b32.xlu1 %v3651_v47, %s3514_s26  ;;  %v4040_v47 = vpop.permute.xlu0 %1455 }
 0x3aa   : > { %1435 = vrot.lane.b32.xlu1 %v3663_v53, %s3514_s26  ;;  %v4042_v53 = vpop.permute.xlu0 %1459 }
 0x3ae   : > { %1439 = vrot.lane.b32.xlu1 %v3675_v59, %s3514_s26  ;;  %v4044_v59 = vpop.permute.xlu1 %1457 }
 0x3b2   : > { %1443 = vrot.lane.b32.xlu1 %v3685_v63, %s3514_s26 }
 0x3b6   : > { %1768 = vrot.lane.b32.xlu1 %v3576_v10, %s3515_s27  ;;  %v2027_v10 = vld [vmem:[%s3561_s16 + $0x18] sm:$0xff] }
 0x3ba   : > { %1770 = vrot.lane.b32.xlu1 %v3571_v7, %s3515_s27 }
 0x3bb   : > { %1045 = vmax.xlane.f32.xlu0 %v4029_v27 }
 0x3be   : > { %1774 = vrot.lane.b32.xlu1 %v3586_v16, %s3515_s27 }
 0x3c2   : > { %1776 = vrot.lane.b32.xlu1 %v3589_v17, %s3515_s27 }
 0x3c6   : > { %1780 = vrot.lane.b32.xlu1 %v3599_v23, %s3515_s27 }
 0x3d1   : > { %1465 = vrot.lane.b32.xlu0 %v3596_v22, %s3513_s25 }
 0x3d5   : > { %1467 = vrot.lane.b32.xlu0 %v3599_v23, %s3513_s25 }
 0x3d9   : > { %1429 = vrot.lane.b32.xlu0 %v3611_v26, %s3514_s26 }
 0x3dd   : > { %1433 = vrot.lane.b32.xlu0 %v3653_v48, %s3514_s26 }
 0x3e1   : > { %1437 = vrot.lane.b32.xlu0 %v3665_v54, %s3514_s26 }
 0x3e5   : > { %1441 = vrot.lane.b32.xlu0 %v3677_v60, %s3514_s26 }
 0x3e9   : > { %1766 = vrot.lane.b32.xlu0 %v3566_v3, %s3515_s27  ;;  %v2026_v3 = vld [vmem:[%s3561_s16 + $0x10] sm:$0xff] }
 0x3ea   : > { %v4155_v7 = vpack.c.bf16 %v2027_v10, %v2026_v3 }
 0x3ed   : > { %1772 = vrot.lane.b32.xlu0 %v3579_v11, %s3515_s27  ;;  %v2028_v11 = vld [vmem:[%s3561_s16 + $0x20] sm:$0xff] }
 0x3f1   : > { %1778 = vrot.lane.b32.xlu0 %v3596_v22, %s3515_s27  ;;  %v2031_v22 = vld [vmem:[%s3561_s16 + $0x38] sm:$0xff] }
 0x3fa   : > { %v1024_v63 = vpop.xlane.xlu0 %1023 }
 0x3fb   : > { %v1053_v37 = vsub.f32 %v3946_v21, %v1024_v63 }
 0x3fd   : > { %v1022_v34 = vpop.xlane.xlu1 %1021  ;;  %v1071_v62 = vmul.f32 1.442695, %v1053_v37 }
 0x3fe   : > { %v1052_v45 = vsub.f32 %v3951_v42, %v1022_v34  ;;  %v1020_v40 = vpop.xlane.xlu0 %1019 }
 0x3ff   : > { %v1051_v26 = vsub.f32 %v3956_v1, %v1020_v40 }
 0x400   : > { %v1069_v48 = vmul.f32 1.442695, %v1052_v45 }
 0x401   : > { %v1067_v24 = vmul.f32 1.442695, %v1051_v26 }
 0x402   : > { %3260 = vpow2.f32 %v1069_v48  ;;  %v1032_v54 = vpop.xlane.xlu1 %1031  ;;  %v1026_v60 = vpop.xlane.xlu0 %1025 }
 0x403   : > { %3262 = vpow2.f32 %v1067_v24  ;;  %v1054_v5 = vsub.f32 %v3961_v39, %v1026_v60  ;;  %v1057_v8 = vsub.f32 %v3965_v19, %v1032_v54  ;;  %v1494_v60 = vsel %vm279_vm0, %v3932_v9, 0 }
 0x404   : > { %3264 = vpow2.f32 %v1071_v62 }
 0x405   : > { %v1073_v50 = vmul.f32 1.442695, %v1054_v5  ;;  %v1079_v34 = vmul.f32 1.442695, %v1057_v8 }
 0x406   : > { %v1028_v51 = vpop.xlane.xlu1 %1027  ;;  %v1030_v58 = vpop.xlane.xlu0 %1029 }
 0x407   : > { %v1055_v42 = vsub.f32 %v3975_v57, %v1028_v51  ;;  %v1056_v21 = vsub.f32 %v3971_v49, %v1030_v58  ;;  %3266 = vpow2.f32 %v1073_v50 }
 0x409   : > { %v1075_v1 = vmul.f32 1.442695, %v1055_v42  ;;  %v1077_v63 = vmul.f32 1.442695, %v1056_v21 }
 0x40a   : > { %v1034_v45 = vpop.xlane.xlu1 %1033  ;;  %v1040_v58 = vpop.xlane.xlu0 %1039 }
 0x40b   : > { %3268 = vpow2.f32 %v1075_v1  ;;  %v1058_v40 = vsub.f32 %v3981_v36, %v1034_v45  ;;  %v1061_v48 = vsub.f32 %v3985_v55, %v1040_v58 }
 0x40c   : > { %v4054_v37 = vpop.eup %3260  ;;  %3270 = vpow2.f32 %v1077_v63 }
 0x40d   : > { %v4056_v5 = vpop.eup %3262  ;;  %v1081_v39 = vmul.f32 1.442695, %v1058_v40  ;;  %3272 = vpow2.f32 %v1079_v34  ;;  %v1087_v1 = vmul.f32 1.442695, %v1061_v48 }
 0x40e   : > { %v1036_v19 = vpop.xlane.xlu1 %1035  ;;  %v1131_v51 = vpack.c.bf16 %v4054_v37, %v4056_v5  ;;  %v4060_v50 = vpop.eup %3264 }
 0x40f   : > { %3274 = vpow2.f32 %v1081_v39  ;;  %v1059_v8 = vsub.f32 %v3991_v15, %v1036_v19 }
 0x410   : > { %3014 = vmatprep.mubr.bf16.mxu0 %v1131_v51  ;;  %v1500_v51 = vsel %vm279_vm0, %v4044_v59, 0 }
 0x411   : > { %v4063_v49 = vpop.eup %3266  ;;  %v1083_v54 = vmul.f32 1.442695, %v1059_v8 }
 0x412   : > { %v1042_v36 = vpop.xlane.xlu1 %1041  ;;  %v1132_v26 = vpack.c.bf16 %v4063_v49, %v4060_v50 }
 0x413   : > { %v1062_v57 = vsub.f32 %v3996_v4, %v1042_v36  ;;  %3276 = vpow2.f32 %v1083_v54 }
 0x414   : > { %3015 = vmatmul.mubr.bf16.vlgmr.msra.gmra.mrb[16].mxu0 %v1132_v26  ;;  %v1503_v26 = vsel %vm279_vm0, %v4042_v53, 0 }
 0x415   : > { %v4069_v24 = vpop.eup %3268  ;;  %v1089_v15 = vmul.f32 1.442695, %v1062_v57  ;;  %3031 = vmatpush3.bf16.xpose.msra.mxu0 %v1494_v60 }
 0x416   : > { %v4073_v62 = vpop.eup %3270  ;;  %v1038_v42 = vpop.xlane.xlu1 %1037  ;;  %3175 = vmatprep.subr.msk.bf16.mxu0 %vm279_vm0, %v4040_v47 }
 0x417   : > { %v1060_v4 = vsub.f32 %v4006_v20, %v1038_v42  ;;  %v1133_v55 = vpack.c.bf16 %v4073_v62, %v4069_v24  ;;  %v4080_v21 = vpop.eup %3272  ;;  %3278 = vpow2.f32 %v1089_v15  ;;  %v1497_v20 = vsel %vm279_vm0, %v4040_v47, 0 }
 0x419   : > { %v4082_v63 = vpop.eup %3274  ;;  %v1085_v9 = vmul.f32 1.442695, %v1060_v4  ;;  %3018 = vmatprep.mubr.bf16.mxu0 %v1133_v55 }
 0x41a   : > { %v1134_v34 = vpack.c.bf16 %v4082_v63, %v4080_v21  ;;  %v1048_v45 = vpop.xlane.xlu1 %1047 }
 0x41b   : > { %3280 = vpow2.f32 %v1085_v9  ;;  %v1065_v4 = vsub.f32 %v4011_v6, %v1048_v45 }
 0x41c   : > { %3282 = vpow2.f32 %v1087_v1  ;;  %3019 = vmatmul.mubr.bf16.gmra.mrb[20].mxu0 %v1134_v34 }
 0x41d   : > { %3033 = vmatpush3.bf16.xpose.msra.mxu0 %v1497_v20  ;;  %v4090_v40 = vpop.eup %3276  ;;  %v1095_v34 = vmul.f32 1.442695, %v1065_v4 }
 0x41e   : > { %3176 = vmatprep.subr.msk.bf16.mxu0 %vm279_vm0, %v4044_v59  ;;  %v1050_v36 = vpop.xlane.xlu1 %1049  ;;  %v1044_v59 = vpop.xlane.xlu0 %1043 }
 0x41f   : > { %v1063_v15 = vsub.f32 %v4001_v52, %v1044_v59  ;;  %v1066_v42 = vsub.f32 %v4016_v56, %v1050_v36 }
 0x421   : > { %v4092_v39 = vpop.eup %3278  ;;  %v1097_v55 = vmul.f32 1.442695, %v1066_v42 }
 0x422   : > { %v1462_v57 = vpop.permute.xlu1 %1461  ;;  %v1464_v54 = vpop.permute.xlu0 %1463 }
 0x423   : > { %v1506_v48 = vsel %vm279_vm0, %v1462_v57, 0  ;;  %v1509_v60 = vsel %vm279_vm0, %v1464_v54, 0 }
 0x425   : > { %v4094_v19 = vpop.eup %3280  ;;  %3035 = vmatpush3.bf16.xpose.msra.mxu0 %v1500_v51 }
 0x426   : > { %v4098_v58 = vpop.eup %3282  ;;  %v1135_v47 = vpack.c.bf16 %v4094_v19, %v4090_v40  ;;  %3177 = vmatprep.subr.msk.bf16.mxu0 %vm279_vm0, %v4042_v53  ;;  %v1091_v53 = vmul.f32 1.442695, %v1063_v15  ;;  %v1432_v59 = vpop.permute.xlu1 %1431 }
 0x427   : > { %v1136_v8 = vpack.c.bf16 %v4092_v39, %v4098_v58 }
 0x428   : > { %3022 = vmatprep.mubr.bf16.mxu0 %v1135_v47  ;;  %3284 = vpow2.f32 %v1091_v53  ;;  %v2024_v53 = vld [vmem:[%s3561_s16] sm:$0xff] }
 0x429   : > { %3023 = vmatmul.mubr.bf16.gmra.mrb[24].mxu0 %v1136_v8  ;;  %3286 = vpow2.f32 %v1097_v55  ;;  %v2025_v55 = vld [vmem:[%s3561_s16 + $0x8] sm:$0xff] }
 0x42d   : > { %3037 = vmatpush3.bf16.xpose.msra.mxu0 %v1503_v26 }
 0x42e   : > { %3178 = vmatprep.subr.msk.bf16.mxu0 %vm279_vm0, %v1462_v57 }
 0x432   : > { %v4120_v56 = vpop.eup %3284 }
 0x435   : > { %3039 = vmatpush3.bf16.xpose.msra.mxu0 %v1506_v48 }
 0x436   : > { %3179 = vmatprep.subr.msk.bf16.mxu0 %vm279_vm0, %v1464_v54  ;;  %v1436_v54 = vpop.permute.xlu1 %1435 }
 0x43a   : > { %v1440_v15 = vpop.permute.xlu1 %1439 }
 0x43d   : > { %3041 = vmatpush3.bf16.xpose.msra.mxu0 %v1509_v60 }
 0x43e   : > { %v1444_v4 = vpop.permute.xlu1 %1443 }
 0x442   : > { %v1769_v23 = vpop.permute.xlu1 %1768 }
 0x448   : > { %v1046_v1 = vpop.xlane.xlu0 %1045 }
 0x449   : > { %v1064_v9 = vsub.f32 %v4029_v27, %v1046_v1  ;;  %v4122_v27 = vpop.eup %3286  ;;  %v4149_v1 = vpack.c.bf16 %v2025_v55, %v2024_v53 }
 0x44b   : > { %v1093_v20 = vmul.f32 1.442695, %v1064_v9  ;;  %2080 = vrot.lane.b32.xlu0 %v4149_v1, %s3516_s28  ;;  %v2029_v9 = vld [vmem:[%s3561_s16 + $0x28] sm:$0xff] }
 0x44c   : > { %v1466_v51 = vpop.permute.xlu0 %1465  ;;  %v4162_v16 = vpack.c.bf16 %v2029_v9, %v2028_v11 }
 0x44d   : > { %3288 = vpow2.f32 %v1093_v20  ;;  %3180 = vmatprep.subr.msk.bf16.mxu0 %vm279_vm0, %v1466_v51  ;;  %v1512_v47 = vsel %vm279_vm0, %v1466_v51, 0 }
 0x44e   : > { %3290 = vpow2.f32 %v1095_v34  ;;  %3043 = vmatpush3.bf16.xpose.msra.mxu0 %v1512_v47  ;;  %v2030_v34 = vld [vmem:[%s3561_s16 + $0x30] sm:$0xff]  ;;  %2084 = vrot.lane.b32.xlu1 %v4162_v16, %s3516_s28 }
 0x44f   : > { %2082 = vrot.lane.b32.xlu0 %v4155_v7, %s3516_s28  ;;  %v4166_v20 = vpack.c.bf16 %v2031_v22, %v2030_v34 }
 0x450   : > { %v1468_v52 = vpop.permute.xlu0 %1467 }
 0x451   : > { %3181 = vmatprep.subr.msk.bf16.mxu0 %vm279_vm0, %v1468_v52  ;;  %v1515_v6 = vsel %vm279_vm0, %v1468_v52, 0 }
 0x453   : > { %2086 = vrot.lane.b32.xlu0 %v4166_v20, %s3516_s28 }
 0x454   : > { %v1430_v26 = vpop.permute.xlu0 %1429 }
 0x456   : > { %3045 = vmatpush3.bf16.xpose.msra.mxu0 %v1515_v6 }
 0x457   : > { %v4124_v45 = vpop.eup %3288 }
 0x458   : > { %v4126_v8 = vpop.eup %3290  ;;  %v1137_v36 = vpack.c.bf16 %v4124_v45, %v4120_v56  ;;  %v1434_v48 = vpop.permute.xlu0 %1433 }
 0x459   : > { %v1138_v57 = vpack.c.bf16 %v4122_v27, %v4126_v8 }
 0x45a   : > { %3026 = vmatprep.mubr.bf16.mxu0 %v1137_v36  ;;  %v1771_v36 = vpop.permute.xlu1 %1770 }
 0x45b   : > { %3027 = vmatmul.mubr.bf16.gmra.mrb[28].mxu0 %v1138_v57 }
 0x45c   : > { %3046 = vmatprep.mubr.msk.bf16.mxu0 %vm279_vm0, %v1430_v26  ;;  %v1438_v60 = vpop.permute.xlu0 %1437 }
 0x460   : > { %v1442_v42 = vpop.permute.xlu0 %1441 }
 0x463   : > { %3047 = vmatmul.mubr.msk.bf16.vlgmr.msra.gmra.mrb[32].mxu0 %vm279_vm0, %v1432_v59 }
 0x464   : > { %3050 = vmatprep.mubr.msk.bf16.mxu0 %vm279_vm0, %v1434_v48  ;;  %v1767_v47 = vpop.permute.xlu0 %1766 }
 0x465   : > { %3062 = vmatprep.subr.bf16.mxu1 %v1767_v47 }
 0x466   : > { %3063 = vmatpush3.bf16.msra.mxu1 %v1767_v47 }
 0x467   : > { %3064 = vmatprep.subr.bf16.mxu1 %v1769_v23 }
 0x468   : > { %v1773_v59 = vpop.permute.xlu0 %1772 }
 0x46a   : > { %3065 = vmatpush3.bf16.msra.mxu1 %v1769_v23 }
 0x46b   : > { %3051 = vmatmul.mubr.msk.bf16.gmra.mrb[36].mxu0 %vm279_vm0, %v1436_v54  ;;  %3066 = vmatprep.subr.bf16.mxu1 %v1771_v36 }
 0x46c   : > { %3054 = vmatprep.mubr.msk.bf16.mxu0 %vm279_vm0, %v1438_v60  ;;  %v1775_v60 = vpop.permute.xlu1 %1774  ;;  %v1779_v53 = vpop.permute.xlu0 %1778 }
 0x46e   : > { %3067 = vmatpush3.bf16.msra.mxu1 %v1771_v36 }
 0x46f   : > { %3068 = vmatprep.subr.bf16.mxu1 %v1773_v59 }
 0x472   : > { %3069 = vmatpush3.bf16.msra.mxu1 %v1773_v59 }
 0x473   : > { %3055 = vmatmul.mubr.msk.bf16.gmra.mrb[40].mxu0 %vm279_vm0, %v1440_v15  ;;  %3070 = vmatprep.subr.bf16.mxu1 %v1775_v60  ;;  %v1777_v15 = vpop.permute.xlu1 %1776 }
 0x474   : > { %3058 = vmatprep.mubr.msk.bf16.mxu0 %vm279_vm0, %v1442_v42 }
 0x476   : > { %3071 = vmatpush3.bf16.msra.mxu1 %v1775_v60 }
 0x477   : > { %3072 = vmatprep.subr.bf16.mxu1 %v1777_v15  ;;  %v1781_v10 = vpop.permute.xlu1 %1780 }
 0x47a   : > { %3073 = vmatpush3.bf16.msra.mxu1 %v1777_v15 }
 0x47b   : > { %3059 = vmatmul.mubr.msk.bf16.gmra.mrb[44].mxu0 %vm279_vm0, %v1444_v4  ;;  %3074 = vmatprep.subr.bf16.mxu1 %v1779_v53 }
 0x47e   : > { %3075 = vmatpush3.bf16.msra.mxu1 %v1779_v53 }
 0x47f   : > { %3076 = vmatprep.subr.bf16.mxu1 %v1781_v10 }
 0x482   : > { %3077 = vmatpush3.bf16.msra.mxu1 %v1781_v10 }
 0x4bd   : > { %v4196_v11 = vpop.permute.xlu0 %2080 }
 0x4be   : > { %3182 = vmatprep.subr.msk.bf16.mxu1 %vm279_vm0, %v4196_v11 }
 0x4e7   : > { %v4172_v17 = vpop.f32.mrb[16].mxu0 }
 0x4e8   : > { %5042 = vst [vmem:[#allocation31_spill] sm:$0xff] %v4172_v17  ;;  %v4174_v51 = vpop.f32.mrb[17].mxu0  ;;  %v2033_v17 = vld [vmem:[%s3561_s16 + $0x48] sm:$0xff] }
 0x4e9   : > { %5043 = vst [vmem:[#allocation32_spill] sm:$0xff] %v4174_v51  ;;  %v4176_v52 = vpop.f32.mrb[18].mxu0 }
 0x4ea   : > { %5044 = vst [vmem:[#allocation33_spill] sm:$0xff] %v4176_v52  ;;  %v4178_v6 = vpop.f32.mrb[19].mxu0 }
 0x4eb   : > { %5045 = vst [vmem:[#allocation34_spill] sm:$0xff] %v4178_v6  ;;  %v2006_v6 = vld [vmem:[%s3607_s20 + $0x30] sm:$0xff] }
 0x4ef   : > { %v4180_v57 = vpop.f32.mrb[20].mxu0 }
 0x4f0   : > { %5046 = vst [vmem:[#allocation35_spill] sm:$0xff] %v4180_v57  ;;  %v4182_v26 = vpop.f32.mrb[21].mxu0 }
 0x4f1   : > { %5047 = vst [vmem:[#allocation36_spill] sm:$0xff] %v4182_v26  ;;  %v4184_v48 = vpop.f32.mrb[22].mxu0  ;;  %v2002_v26 = vld [vmem:[%s3607_s20 + $0x10] sm:$0xff] }
 0x4f2   : > { %5048 = vst [vmem:[#allocation37_spill] sm:$0xff] %v4184_v48  ;;  %v4186_v54 = vpop.f32.mrb[23].mxu0 }
 0x4f3   : > { %5049 = vst [vmem:[#allocation38_spill] sm:$0xff] %v4186_v54 }
 0x4fc   : > { %v4188_v42 = vpop.f32.mrb[24].mxu0 }
 0x4fd   : > { %5050 = vst [vmem:[#allocation39_spill] sm:$0xff] %v4188_v42  ;;  %v4190_v4 = vpop.f32.mrb[25].mxu0 }
 0x4fe   : > { %5051 = vst [vmem:[#allocation40_spill] sm:$0xff] %v4190_v4  ;;  %v4192_v55 = vpop.f32.mrb[26].mxu0 }
 0x4ff   : > { %5052 = vst [vmem:[#allocation41_spill] sm:$0xff] %v4192_v55  ;;  %v4194_v3 = vpop.f32.mrb[27].mxu0 }
 0x500   : > { %5053 = vst [vmem:[#allocation42_spill] sm:$0xff] %v4194_v3 }
 0x52e   : > { %v4200_v9 = vpop.f32.mrb[28].mxu0 }
 0x52f   : > { %5054 = vst [vmem:[#allocation43_spill] sm:$0xff] %v4200_v9  ;;  %v4202_v34 = vpop.f32.mrb[29].mxu0 }
 0x530   : > { %5055 = vst [vmem:[#allocation44_spill] sm:$0xff] %v4202_v34  ;;  %v4204_v22 = vpop.f32.mrb[30].mxu0 }
 0x531   : > { %5056 = vst [vmem:[#allocation45_spill] sm:$0xff] %v4204_v22  ;;  %v4206_v47 = vpop.f32.mrb[31].mxu0 }
 0x532   : > { %5057 = vst [vmem:[#allocation46_spill] sm:$0xff] %v4206_v47 }
 0x536   : > { %v3048_v23 = vpop.f32.mrb[32].mxu0 }
 0x537   : > { %v1616_v36 = vmul.f32 0.35355338, %v3048_v23  ;;  %v1551_v59 = vpop.f32.mrb[33].mxu0 }
 0x538   : > { %v3049_v60 = vpop.f32.mrb[34].mxu0  ;;  %v1614_v15 = vmul.f32 0.35355338, %v1551_v59 }
 0x539   : > { %v1554_v53 = vpop.f32.mrb[35].mxu0  ;;  %v4210_v10 = vsel %vm206_vm1, %v1616_v36, -1e+30  ;;  %v1617_v29 = vmul.f32 0.35355338, %v3049_v60 }
 0x53a   : > { %v1615_v38 = vmul.f32 0.35355338, %v1554_v53  ;;  %1650 = vmax.xlane.f32.xlu0 %v4210_v10  ;;  %v4220_v23 = vsel %vm206_vm1, %v1614_v15, -1e+30 }
 0x53b   : > { %v4225_v53 = vsel %vm206_vm1, %v1617_v29, -1e+30 }
 0x53c   : > { %v4215_v30 = vsel %vm206_vm1, %v1615_v38, -1e+30 }
 0x53d   : > { %1648 = vmax.xlane.f32.xlu1 %v4215_v30 }
 0x53e   : > { %1646 = vmax.xlane.f32.xlu0 %v4220_v23  ;;  %v3052_v59 = vpop.f32.mrb[36].mxu0 }
 0x53f   : > { %v1620_v22 = vmul.f32 0.35355338, %v3052_v59  ;;  %v1567_v36 = vpop.f32.mrb[37].mxu0 }
 0x540   : > { %v3053_v47 = vpop.f32.mrb[38].mxu0  ;;  %v1618_v60 = vmul.f32 0.35355338, %v1567_v36 }
 0x541   : > { %v1570_v9 = vpop.f32.mrb[39].mxu0  ;;  %v4229_v38 = vsel %vm206_vm1, %v1620_v22, -1e+30  ;;  %v1621_v15 = vmul.f32 0.35355338, %v3053_v47 }
 0x542   : > { %v1619_v55 = vmul.f32 0.35355338, %v1570_v9  ;;  %1652 = vmax.xlane.f32.xlu0 %v4225_v53  ;;  %1658 = vmax.xlane.f32.xlu1 %v4229_v38  ;;  %v4239_v29 = vsel %vm206_vm1, %v1618_v60, -1e+30 }
 0x543   : > { %v4245_v3 = vsel %vm206_vm1, %v1621_v15, -1e+30 }
 0x544   : > { %v4235_v59 = vsel %vm206_vm1, %v1619_v55, -1e+30 }
 0x546   : > { %1654 = vmax.xlane.f32.xlu1 %v4239_v29  ;;  %1656 = vmax.xlane.f32.xlu0 %v4235_v59  ;;  %v3056_v22 = vpop.f32.mrb[40].mxu0 }
 0x547   : > { %v1624_v36 = vmul.f32 0.35355338, %v3056_v22  ;;  %v1583_v9 = vpop.f32.mrb[41].mxu0 }
 0x548   : > { %v3057_v34 = vpop.f32.mrb[42].mxu0  ;;  %v1622_v47 = vmul.f32 0.35355338, %v1583_v9 }
 0x549   : > { %v1586_v42 = vpop.f32.mrb[43].mxu0  ;;  %v4249_v55 = vsel %vm206_vm1, %v1624_v36, -1e+30  ;;  %v1625_v60 = vmul.f32 0.35355338, %v3057_v34 }
 0x54a   : > { %1660 = vmax.xlane.f32.xlu1 %v4245_v3  ;;  %1666 = vmax.xlane.f32.xlu0 %v4249_v55  ;;  %v4255_v22 = vsel %vm206_vm1, %v1622_v47, -1e+30  ;;  %v1623_v54 = vmul.f32 0.35355338, %v1586_v42 }
 0x54b   : > { %v4260_v57 = vsel %vm206_vm1, %v1625_v60, -1e+30 }
 0x54c   : > { %v4270_v42 = vsel %vm206_vm1, %v1623_v54, -1e+30  ;;  %v2035_v54 = vld [vmem:[%s3561_s16 + $0x58] sm:$0xff] }
 0x54e   : > { %1662 = vmax.xlane.f32.xlu1 %v4255_v22  ;;  %v3060_v48 = vpop.f32.mrb[44].mxu0 }
 0x54f   : > { %v1599_v15 = vpop.f32.mrb[45].mxu0  ;;  %v1628_v47 = vmul.f32 0.35355338, %v3060_v48  ;;  %v2034_v48 = vld [vmem:[%s3561_s16 + $0x50] sm:$0xff] }
 0x550   : > { %v1626_v4 = vmul.f32 0.35355338, %v1599_v15  ;;  %v3061_v9 = vpop.f32.mrb[46].mxu0  ;;  %v4285_v52 = vpack.c.bf16 %v2035_v54, %v2034_v48  ;;  %v2019_v48 = vpack.c.bf16 %v2007_v18, %v2006_v6  ;;  %v2010_v54 = vld [vmem:[%s3607_s20 + $0x50] sm:$0xff]  ;;  %v2037_v6 = vld [vmem:[%s3561_s16 + $0x68] sm:$0xff] }
 0x551   : > { %v1602_v36 = vpop.f32.mrb[47].mxu0  ;;  %v1629_v60 = vmul.f32 0.35355338, %v3061_v9  ;;  %v4275_v15 = vsel %vm206_vm1, %v1628_v47, -1e+30  ;;  %v2032_v9 = vld [vmem:[%s3561_s16 + $0x40] sm:$0xff] }
 0x552   : > { %1668 = vmax.xlane.f32.xlu1 %v4260_v57  ;;  %v4265_v34 = vsel %vm206_vm1, %v1626_v4, -1e+30  ;;  %v4291_v47 = vpack.c.bf16 %v2033_v17, %v2032_v9  ;;  %v2021_v17 = vpack.c.bf16 %v2011_v31, %v2010_v54  ;;  %v2014_v9 = vld [vmem:[%s3607_s20 + $0x70] sm:$0xff]  ;;  %v2036_v31 = vld [vmem:[%s3561_s16 + $0x60] sm:$0xff] }
 0x553   : > { %1670 = vmax.xlane.f32.xlu0 %v4265_v34  ;;  %v4280_v4 = vsel %vm206_vm1, %v1629_v60, -1e+30  ;;  %v2003_v60 = vld [vmem:[%s3607_s20 + $0x18] sm:$0xff]  ;;  %v2000_v54 = vld [vmem:[%s3607_s20] sm:$0xff] }
 0x554   : > { %v2017_v51 = vpack.c.bf16 %v2003_v60, %v2002_v26  ;;  %v2023_v26 = vpack.c.bf16 %v2015_v44, %v2014_v9  ;;  %v4314_v60 = vpack.c.bf16 %v2037_v6, %v2036_v31  ;;  %v2039_v44 = vld [vmem:[%s3561_s16 + $0x78] sm:$0xff]  ;;  %v2008_v6 = vld [vmem:[%s3607_s20 + $0x40] sm:$0xff] }
 0x555   : > { %v2020_v33 = vpack.c.bf16 %v2009_v46, %v2008_v6 }
 0x556   : > { %1664 = vmax.xlane.f32.xlu1 %v4270_v42 }
 0x55a   : > { %1674 = vmax.xlane.f32.xlu1 %v4275_v15 }
 0x55e   : > { %1676 = vmax.xlane.f32.xlu1 %v4280_v4 }
 0x569   : > { %2090 = vrot.lane.b32.xlu0 %v4285_v52, %s3516_s28 }
 0x56f   : > { %2088 = vrot.lane.b32.xlu1 %v4291_v47, %s3516_s28 }
 0x573   : > { %2058 = vrot.lane.b32.xlu1 %v2017_v51, %s3517_s29  ;;  %v1627_v51 = vmul.f32 0.35355338, %v1602_v36 }
 0x575   : > { %v4309_v18 = vsel %vm206_vm1, %v1627_v51, -1e+30  ;;  %v2005_v51 = vld [vmem:[%s3607_s20 + $0x28] sm:$0xff] }
 0x577   : > { %2062 = vrot.lane.b32.xlu1 %v2019_v48, %s3517_s29  ;;  %v2038_v48 = vld [vmem:[%s3561_s16 + $0x70] sm:$0xff] }
 0x578   : > { %v4320_v36 = vpack.c.bf16 %v2039_v44, %v2038_v48  ;;  %v2022_v48 = vpack.c.bf16 %v2013_v13, %v2012_v12  ;;  %v4336_v44 = vpop.permute.xlu0 %2082 }
 0x57b   : > { %2066 = vrot.lane.b32.xlu1 %v2021_v17, %s3517_s29  ;;  %v2001_v17 = vld [vmem:[%s3607_s20 + $0x8] sm:$0xff] }
 0x57c   : > { %v2016_v9 = vpack.c.bf16 %v2001_v17, %v2000_v54  ;;  %v4338_v54 = vpop.permute.xlu0 %2086  ;;  %v4340_v17 = vpop.permute.xlu1 %2084 }
 0x57f   : > { %2070 = vrot.lane.b32.xlu1 %v2023_v26, %s3517_s29  ;;  %v2004_v26 = vld [vmem:[%s3607_s20 + $0x20] sm:$0xff] }
 0x580   : > { %v2018_v31 = vpack.c.bf16 %v2005_v51, %v2004_v26 }
 0x583   : > { %2395 = vrot.lane.b32.xlu1 %v4155_v7, %s3518_s30 }
 0x587   : > { %2399 = vrot.lane.b32.xlu1 %v4166_v20, %s3518_s30 }
 0x588   : > { %1672 = vmax.xlane.f32.xlu0 %v4309_v18 }
 0x58b   : > { %2403 = vrot.lane.b32.xlu1 %v4285_v52, %s3518_s30 }
 0x59e   : > { %2092 = vrot.lane.b32.xlu0 %v4314_v60, %s3516_s28 }
 0x5a2   : > { %2094 = vrot.lane.b32.xlu0 %v4320_v36, %s3516_s28 }
 0x5a6   : > { %2056 = vrot.lane.b32.xlu0 %v2016_v9, %s3517_s29 }
 0x5aa   : > { %2060 = vrot.lane.b32.xlu0 %v2018_v31, %s3517_s29 }
 0x5ae   : > { %2064 = vrot.lane.b32.xlu0 %v2020_v33, %s3517_s29 }
 0x5b2   : > { %2068 = vrot.lane.b32.xlu0 %v2022_v48, %s3517_s29 }
 0x5b6   : > { %2393 = vrot.lane.b32.xlu0 %v4149_v1, %s3518_s30 }
 0x5ba   : > { %2397 = vrot.lane.b32.xlu0 %v4162_v16, %s3518_s30 }
 0x5be   : > { %2401 = vrot.lane.b32.xlu0 %v4291_v47, %s3518_s30 }
 0x5c7   : > { %v1651_v9 = vpop.xlane.xlu0 %1650 }
 0x5c8   : > { %v1680_v46 = vsub.f32 %v4210_v10, %v1651_v9 }
 0x5ca   : > { %v1649_v26 = vpop.xlane.xlu1 %1648  ;;  %v1698_v48 = vmul.f32 1.442695, %v1680_v46 }
 0x5cb   : > { %v1679_v51 = vsub.f32 %v4215_v30, %v1649_v26  ;;  %v1647_v32 = vpop.xlane.xlu0 %1646 }
 0x5cc   : > { %v1678_v31 = vsub.f32 %v4220_v23, %v1647_v32 }
 0x5cd   : > { %v1696_v6 = vmul.f32 1.442695, %v1679_v51 }
 0x5ce   : > { %v1694_v33 = vmul.f32 1.442695, %v1678_v31 }
 0x5cf   : > { %3292 = vpow2.f32 %v1696_v6  ;;  %v1659_v12 = vpop.xlane.xlu1 %1658  ;;  %v1653_v13 = vpop.xlane.xlu0 %1652 }
 0x5d0   : > { %3294 = vpow2.f32 %v1694_v33  ;;  %v1681_v25 = vsub.f32 %v4225_v53, %v1653_v13  ;;  %v1684_v43 = vsub.f32 %v4229_v38, %v1659_v12  ;;  %v2121_v13 = vsel %vm279_vm0, %v4196_v11, 0 }
 0x5d1   : > { %3296 = vpow2.f32 %v1698_v48 }
 0x5d2   : > { %v1700_v0 = vmul.f32 1.442695, %v1681_v25  ;;  %v1706_v9 = vmul.f32 1.442695, %v1684_v43 }
 0x5d3   : > { %v1655_v61 = vpop.xlane.xlu1 %1654  ;;  %v1657_v2 = vpop.xlane.xlu0 %1656 }
 0x5d4   : > { %v1682_v30 = vsub.f32 %v4239_v29, %v1655_v61  ;;  %v1683_v10 = vsub.f32 %v4235_v59, %v1657_v2  ;;  %3298 = vpow2.f32 %v1700_v0 }
 0x5d6   : > { %v1702_v32 = vmul.f32 1.442695, %v1682_v30  ;;  %v1704_v23 = vmul.f32 1.442695, %v1683_v10 }
 0x5d7   : > { %v1661_v26 = vpop.xlane.xlu1 %1660  ;;  %v1667_v2 = vpop.xlane.xlu0 %1666 }
 0x5d8   : > { %3300 = vpow2.f32 %v1702_v32  ;;  %v1685_v51 = vsub.f32 %v4245_v3, %v1661_v26  ;;  %v1688_v6 = vsub.f32 %v4249_v55, %v1667_v2 }
 0x5d9   : > { %v4350_v46 = vpop.eup %3292  ;;  %3302 = vpow2.f32 %v1704_v23 }
 0x5da   : > { %v4352_v25 = vpop.eup %3294  ;;  %v1708_v53 = vmul.f32 1.442695, %v1685_v51  ;;  %3304 = vpow2.f32 %v1706_v9  ;;  %v1714_v32 = vmul.f32 1.442695, %v1688_v6 }
 0x5db   : > { %v1663_v38 = vpop.xlane.xlu1 %1662  ;;  %v1758_v61 = vpack.c.bf16 %v4350_v46, %v4352_v25  ;;  %v4356_v0 = vpop.eup %3296 }
 0x5dc   : > { %3306 = vpow2.f32 %v1708_v53  ;;  %v1686_v43 = vsub.f32 %v4255_v22, %v1663_v38 }
 0x5dd   : > { %3078 = vmatprep.mubr.bf16.mxu1 %v1758_v61  ;;  %v2127_v61 = vsel %vm279_vm0, %v4340_v17, 0 }
 0x5de   : > { %v4359_v59 = vpop.eup %3298  ;;  %v1710_v12 = vmul.f32 1.442695, %v1686_v43 }
 0x5df   : > { %v1669_v3 = vpop.xlane.xlu1 %1668  ;;  %v1759_v31 = vpack.c.bf16 %v4359_v59, %v4356_v0 }
 0x5e0   : > { %v1689_v29 = vsub.f32 %v4260_v57, %v1669_v3  ;;  %3308 = vpow2.f32 %v1710_v12 }
 0x5e1   : > { %3079 = vmatmul.mubr.bf16.vlgmr.msra.gmra.mrb[32].mxu1 %v1759_v31  ;;  %v2130_v31 = vsel %vm279_vm0, %v4338_v54, 0 }
 0x5e2   : > { %v4365_v33 = vpop.eup %3300  ;;  %v1716_v22 = vmul.f32 1.442695, %v1689_v29  ;;  %3095 = vmatpush3.bf16.xpose.msra.mxu1 %v2121_v13 }
 0x5e3   : > { %v4369_v48 = vpop.eup %3302  ;;  %v1665_v30 = vpop.xlane.xlu1 %1664  ;;  %3183 = vmatprep.subr.msk.bf16.mxu1 %vm279_vm0, %v4336_v44 }
 0x5e4   : > { %v1687_v57 = vsub.f32 %v4270_v42, %v1665_v30  ;;  %v1760_v55 = vpack.c.bf16 %v4369_v48, %v4365_v33  ;;  %v4376_v10 = vpop.eup %3304  ;;  %3310 = vpow2.f32 %v1716_v22  ;;  %v2124_v42 = vsel %vm279_vm0, %v4336_v44, 0 }
 0x5e6   : > { %v4378_v23 = vpop.eup %3306  ;;  %v1712_v11 = vmul.f32 1.442695, %v1687_v57  ;;  %3082 = vmatprep.mubr.bf16.mxu1 %v1760_v55 }
 0x5e7   : > { %v1761_v9 = vpack.c.bf16 %v4378_v23, %v4376_v10  ;;  %v1675_v26 = vpop.xlane.xlu1 %1674 }
 0x5e8   : > { %3312 = vpow2.f32 %v1712_v11  ;;  %v1692_v57 = vsub.f32 %v4275_v15, %v1675_v26 }
 0x5e9   : > { %3314 = vpow2.f32 %v1714_v32  ;;  %3083 = vmatmul.mubr.bf16.gmra.mrb[36].mxu1 %v1761_v9 }
 0x5ea   : > { %3097 = vmatpush3.bf16.xpose.msra.mxu1 %v2124_v42  ;;  %v4386_v51 = vpop.eup %3308  ;;  %v1722_v9 = vmul.f32 1.442695, %v1692_v57 }
 0x5eb   : > { %3184 = vmatprep.subr.msk.bf16.mxu1 %vm279_vm0, %v4340_v17  ;;  %v1677_v3 = vpop.xlane.xlu1 %1676  ;;  %v1671_v17 = vpop.xlane.xlu0 %1670 }
 0x5ec   : > { %v1690_v22 = vsub.f32 %v4265_v34, %v1671_v17  ;;  %v1693_v30 = vsub.f32 %v4280_v4, %v1677_v3 }
 0x5ee   : > { %v4388_v53 = vpop.eup %3310  ;;  %v1724_v55 = vmul.f32 1.442695, %v1693_v30 }
 0x5ef   : > { %v2089_v29 = vpop.permute.xlu1 %2088  ;;  %v2091_v12 = vpop.permute.xlu0 %2090 }
 0x5f0   : > { %v2133_v6 = vsel %vm279_vm0, %v2089_v29, 0  ;;  %v2136_v13 = vsel %vm279_vm0, %v2091_v12, 0 }
 0x5f2   : > { %v4390_v38 = vpop.eup %3312  ;;  %3099 = vmatpush3.bf16.xpose.msra.mxu1 %v2127_v61 }
 0x5f3   : > { %v4394_v2 = vpop.eup %3314  ;;  %v1762_v44 = vpack.c.bf16 %v4390_v38, %v4386_v51  ;;  %3185 = vmatprep.subr.msk.bf16.mxu1 %vm279_vm0, %v4338_v54  ;;  %v1718_v54 = vmul.f32 1.442695, %v1690_v22  ;;  %v2059_v17 = vpop.permute.xlu1 %2058 }
 0x5f4   : > { %v1763_v43 = vpack.c.bf16 %v4388_v53, %v4394_v2 }
 0x5f5   : > { %3086 = vmatprep.mubr.bf16.mxu1 %v1762_v44  ;;  %3316 = vpow2.f32 %v1718_v54 }
 0x5f6   : > { %3087 = vmatmul.mubr.bf16.gmra.mrb[40].mxu1 %v1763_v43  ;;  %3318 = vpow2.f32 %v1724_v55 }
 0x5fa   : > { %3101 = vmatpush3.bf16.xpose.msra.mxu1 %v2130_v31 }
 0x5fb   : > { %3186 = vmatprep.subr.msk.bf16.mxu1 %vm279_vm0, %v2089_v29 }
 0x5ff   : > { %v4416_v4 = vpop.eup %3316 }
 0x602   : > { %3103 = vmatpush3.bf16.xpose.msra.mxu1 %v2133_v6 }
 0x603   : > { %3187 = vmatprep.subr.msk.bf16.mxu1 %vm279_vm0, %v2091_v12  ;;  %v2063_v12 = vpop.permute.xlu1 %2062 }
 0x607   : > { %v2067_v22 = vpop.permute.xlu1 %2066 }
 0x60a   : > { %3105 = vmatpush3.bf16.xpose.msra.mxu1 %v2136_v13 }
 0x60b   : > { %v2071_v57 = vpop.permute.xlu1 %2070 }
 0x60f   : > { %v2396_v47 = vpop.permute.xlu1 %2395 }
 0x615   : > { %v1673_v32 = vpop.xlane.xlu0 %1672 }
 0x616   : > { %v1691_v11 = vsub.f32 %v4309_v18, %v1673_v32  ;;  %v4418_v18 = vpop.eup %3318 }
 0x618   : > { %v1720_v42 = vmul.f32 1.442695, %v1691_v11 }
 0x619   : > { %v2093_v61 = vpop.permute.xlu0 %2092 }
 0x61a   : > { %3320 = vpow2.f32 %v1720_v42  ;;  %3188 = vmatprep.subr.msk.bf16.mxu1 %vm279_vm0, %v2093_v61  ;;  %v2139_v44 = vsel %vm279_vm0, %v2093_v61, 0  ;;  %v2400_v61 = vpop.permute.xlu1 %2399 }
 0x61b   : > { %3322 = vpow2.f32 %v1722_v9  ;;  %3107 = vmatpush3.bf16.xpose.msra.mxu1 %v2139_v44 }
 0x61d   : > { %v2095_v34 = vpop.permute.xlu0 %2094 }
 0x61e   : > { %3189 = vmatprep.subr.msk.bf16.mxu1 %vm279_vm0, %v2095_v34  ;;  %v2142_v15 = vsel %vm279_vm0, %v2095_v34, 0 }
 0x621   : > { %v2057_v31 = vpop.permute.xlu0 %2056 }
 0x623   : > { %3109 = vmatpush3.bf16.xpose.msra.mxu1 %v2142_v15 }
 0x624   : > { %v4420_v26 = vpop.eup %3320 }
 0x625   : > { %v4422_v43 = vpop.eup %3322  ;;  %v1764_v3 = vpack.c.bf16 %v4420_v26, %v4416_v4  ;;  %v2061_v6 = vpop.permute.xlu0 %2060 }
 0x626   : > { %v1765_v29 = vpack.c.bf16 %v4418_v18, %v4422_v43 }
 0x627   : > { %3090 = vmatprep.mubr.bf16.mxu1 %v1764_v3 }
 0x628   : > { %3091 = vmatmul.mubr.bf16.gmra.mrb[44].mxu1 %v1765_v29  ;;  %v2404_v29 = vpop.permute.xlu1 %2403 }
 0x629   : > { %3110 = vmatprep.mubr.msk.bf16.mxu1 %vm279_vm0, %v2057_v31  ;;  %v2065_v13 = vpop.permute.xlu0 %2064 }
 0x62d   : > { %v2069_v30 = vpop.permute.xlu0 %2068 }
 0x630   : > { %3111 = vmatmul.mubr.msk.bf16.vlgmr.msra.gmra.mrb[48].mxu1 %vm279_vm0, %v2059_v17 }
 0x631   : > { %3114 = vmatprep.mubr.msk.bf16.mxu1 %vm279_vm0, %v2061_v6  ;;  %v2394_v20 = vpop.permute.xlu0 %2393 }
 0x632   : > { %3126 = vmatprep.subr.bf16.mxu0 %v2394_v20 }
 0x633   : > { %3127 = vmatpush3.bf16.msra.mxu0 %v2394_v20 }
 0x634   : > { %3128 = vmatprep.subr.bf16.mxu0 %v2396_v47 }
 0x635   : > { %v2398_v52 = vpop.permute.xlu0 %2397 }
 0x637   : > { %3129 = vmatpush3.bf16.msra.mxu0 %v2396_v47 }
 0x638   : > { %3115 = vmatmul.mubr.msk.bf16.gmra.mrb[52].mxu1 %vm279_vm0, %v2063_v12  ;;  %3130 = vmatprep.subr.bf16.mxu0 %v2398_v52 }
 0x639   : > { %3118 = vmatprep.mubr.msk.bf16.mxu1 %vm279_vm0, %v2065_v13  ;;  %v2402_v3 = vpop.permute.xlu0 %2401 }
 0x63b   : > { %3131 = vmatpush3.bf16.msra.mxu0 %v2398_v52 }
 0x63c   : > { %3132 = vmatprep.subr.bf16.mxu0 %v2400_v61 }
 0x63f   : > { %3133 = vmatpush3.bf16.msra.mxu0 %v2400_v61 }
 0x640   : > { %3119 = vmatmul.mubr.msk.bf16.gmra.mrb[56].mxu1 %vm279_vm0, %v2067_v22  ;;  %3134 = vmatprep.subr.bf16.mxu0 %v2402_v3 }
 0x641   : > { %3122 = vmatprep.mubr.msk.bf16.mxu1 %vm279_vm0, %v2069_v30 }
 0x643   : > { %3135 = vmatpush3.bf16.msra.mxu0 %v2402_v3 }
 0x644   : > { %3136 = vmatprep.subr.bf16.mxu0 %v2404_v29 }
 0x647   : > { %3137 = vmatpush3.bf16.msra.mxu0 %v2404_v29 }
 0x648   : > { %3123 = vmatmul.mubr.msk.bf16.gmra.mrb[60].mxu1 %vm279_vm0, %v2071_v57 }
 0x6b4   : > { %v4448_v54 = vpop.f32.mrb[32].mxu1 }
 0x6b5   : > { %v4450_v55 = vpop.f32.mrb[33].mxu1 }
 0x6b6   : > { %v4452_v1 = vpop.f32.mrb[34].mxu1 }
 0x6b7   : > { %5058 = vst [vmem:[#allocation47_spill] sm:$0xff] %v4452_v1  ;;  %v4454_v32 = vpop.f32.mrb[35].mxu1 }
 0x6b8   : > { %5059 = vst [vmem:[#allocation48_spill] sm:$0xff] %v4454_v32 }
 0x6bc   : > { %v4456_v7 = vpop.f32.mrb[36].mxu1 }
 0x6bd   : > { %v4458_v16 = vpop.f32.mrb[37].mxu1 }
 0x6be   : > { %v4460_v11 = vpop.f32.mrb[38].mxu1 }
 0x6bf   : > { %5060 = vst [vmem:[#allocation49_spill] sm:$0xff] %v4460_v11  ;;  %v4462_v9 = vpop.f32.mrb[39].mxu1 }
 0x6c0   : > { %5061 = vst [vmem:[#allocation50_spill] sm:$0xff] %v4462_v9 }
 0x6c9   : > { %v4464_v42 = vpop.f32.mrb[40].mxu1 }
 0x6ca   : > { %5062 = vst [vmem:[#allocation51_spill] sm:$0xff] %v4464_v42  ;;  %v4466_v44 = vpop.f32.mrb[41].mxu1 }
 0x6cb   : > { %5063 = vst [vmem:[#allocation52_spill] sm:$0xff] %v4466_v44  ;;  %v4468_v34 = vpop.f32.mrb[42].mxu1 }
 0x6cc   : > { %5064 = vst [vmem:[#allocation53_spill] sm:$0xff] %v4468_v34  ;;  %v4470_v15 = vpop.f32.mrb[43].mxu1 }
 0x6cd   : > { %5065 = vst [vmem:[#allocation54_spill] sm:$0xff] %v4470_v15 }
 0x6fb   : > { %v4472_v31 = vpop.f32.mrb[44].mxu1 }
 0x6fc   : > { %5066 = vst [vmem:[#allocation55_spill] sm:$0xff] %v4472_v31  ;;  %v4474_v17 = vpop.f32.mrb[45].mxu1 }
 0x6fd   : > { %5067 = vst [vmem:[#allocation56_spill] sm:$0xff] %v4474_v17  ;;  %v4476_v6 = vpop.f32.mrb[46].mxu1 }
 0x6fe   : > { %5068 = vst [vmem:[#allocation57_spill] sm:$0xff] %v4476_v6  ;;  %v4478_v12 = vpop.f32.mrb[47].mxu1 }
 0x6ff   : > { %5069 = vst [vmem:[#allocation58_spill] sm:$0xff] %v4478_v12 }
 0x703   : > { %v3112_v13 = vpop.f32.mrb[48].mxu1 }
 0x704   : > { %v2243_v22 = vmul.f32 0.35355338, %v3112_v13  ;;  %v2178_v30 = vpop.f32.mrb[49].mxu1 }
 0x705   : > { %v2241_v57 = vmul.f32 0.35355338, %v2178_v30  ;;  %v3113_v20 = vpop.f32.mrb[50].mxu1 }
 0x706   : > { %v2244_v47 = vmul.f32 0.35355338, %v3113_v20  ;;  %v2181_v52 = vpop.f32.mrb[51].mxu1  ;;  %v4482_v61 = vsel %vm206_vm1, %v2243_v22, -1e+30 }
 0x707   : > { %2277 = vmax.xlane.f32.xlu1 %v4482_v61  ;;  %v4487_v3 = vsel %vm206_vm1, %v2241_v57, -1e+30  ;;  %v2242_v29 = vmul.f32 0.35355338, %v2181_v52 }
 0x708   : > { %2273 = vmax.xlane.f32.xlu0 %v4487_v3  ;;  %v4492_v13 = vsel %vm206_vm1, %v2244_v47, -1e+30 }
 0x709   : > { %v4497_v15 = vsel %vm206_vm1, %v2242_v29, -1e+30 }
 0x70b   : > { %2279 = vmax.xlane.f32.xlu1 %v4492_v13  ;;  %v3116_v30 = vpop.f32.mrb[52].mxu1 }
 0x70c   : > { %v2247_v20 = vmul.f32 0.35355338, %v3116_v30  ;;  %v2194_v6 = vpop.f32.mrb[53].mxu1 }
 0x70d   : > { %v2245_v22 = vmul.f32 0.35355338, %v2194_v6  ;;  %v3117_v12 = vpop.f32.mrb[54].mxu1 }
 0x70e   : > { %v2197_v34 = vpop.f32.mrb[55].mxu1  ;;  %v4507_v47 = vsel %vm206_vm1, %v2247_v20, -1e+30  ;;  %v2248_v52 = vmul.f32 0.35355338, %v3117_v12 }
 0x70f   : > { %2275 = vmax.xlane.f32.xlu1 %v4497_v15  ;;  %v4502_v57 = vsel %vm206_vm1, %v2245_v22, -1e+30  ;;  %v2246_v29 = vmul.f32 0.35355338, %v2197_v34 }
 0x710   : > { %2281 = vmax.xlane.f32.xlu0 %v4502_v57  ;;  %v4512_v11 = vsel %vm206_vm1, %v2248_v52, -1e+30 }
 0x711   : > { %v4517_v9 = vsel %vm206_vm1, %v2246_v29, -1e+30 }
 0x713   : > { %2285 = vmax.xlane.f32.xlu1 %v4507_v47  ;;  %v3120_v6 = vpop.f32.mrb[56].mxu1 }
 0x714   : > { %v2210_v30 = vpop.f32.mrb[57].mxu1  ;;  %v2251_v22 = vmul.f32 0.35355338, %v3120_v6 }
 0x715   : > { %v3121_v31 = vpop.f32.mrb[58].mxu1 }
 0x716   : > { %v2213_v17 = vpop.f32.mrb[59].mxu1  ;;  %v4522_v20 = vsel %vm206_vm1, %v2251_v22, -1e+30  ;;  %v2252_v22 = vmul.f32 0.35355338, %v3121_v31  ;;  %v5080_v31 = vld [vmem:[#allocation8_spill] sm:$0xff] }
 0x717   : > { %2287 = vmax.xlane.f32.xlu1 %v4512_v11  ;;  %v2250_v1 = vmul.f32 0.35355338, %v2213_v17 }
 0x719   : > { %v4527_v6 = vsel %vm206_vm1, %v2250_v1, -1e+30  ;;  %v2249_v1 = vmul.f32 0.35355338, %v2210_v30 }
 0x71b   : > { %2283 = vmax.xlane.f32.xlu1 %v4517_v9  ;;  %v3124_v12 = vpop.f32.mrb[60].mxu1 }
 0x71c   : > { %v2226_v34 = vpop.f32.mrb[61].mxu1  ;;  %v2255_v44 = vmul.f32 0.35355338, %v3124_v12  ;;  %v4551_v12 = vsel %vm206_vm1, %v2252_v22, -1e+30 }
 0x71d   : > { %v3125_v42 = vpop.f32.mrb[62].mxu1  ;;  %v2253_v32 = vmul.f32 0.35355338, %v2226_v34 }
 0x71e   : > { %v2229_v52 = vpop.f32.mrb[63].mxu1  ;;  %v4532_v29 = vsel %vm206_vm1, %v2255_v44, -1e+30  ;;  %v4546_v44 = vsel %vm206_vm1, %v2249_v1, -1e+30 }
 0x71f   : > { %2293 = vmax.xlane.f32.xlu1 %v4522_v20  ;;  %v4539_v17 = vsel %vm206_vm1, %v2253_v32, -1e+30  ;;  %v2256_v32 = vmul.f32 0.35355338, %v3125_v42 }
 0x723   : > { %2291 = vmax.xlane.f32.xlu1 %v4527_v6 }
 0x726   : > { %2405 = vrot.lane.b32.xlu0 %v4314_v60, %s3518_s30  ;;  %v2254_v60 = vmul.f32 0.35355338, %v2229_v52 }
 0x727   : > { %2301 = vmax.xlane.f32.xlu1 %v4532_v29 }
 0x728   : > { %v4556_v34 = vsel %vm206_vm1, %v2254_v60, -1e+30 }
 0x72b   : > { %2297 = vmax.xlane.f32.xlu1 %v4539_v17 }
 0x73c   : > { %2407 = vrot.lane.b32.xlu1 %v4320_v36, %s3518_s30  ;;  %v4561_v36 = vsel %vm206_vm1, %v2256_v32, -1e+30 }
 0x745   : > { %2289 = vmax.xlane.f32.xlu0 %v4546_v44 }
 0x749   : > { %2295 = vmax.xlane.f32.xlu0 %v4551_v12 }
 0x74d   : > { %2299 = vmax.xlane.f32.xlu0 %v4556_v34 }
 0x751   : > { %2303 = vmax.xlane.f32.xlu0 %v4561_v36 }
 0x755   : > { %1101 = vadd.xlane.f32.xlu0 %v4054_v37 }
 0x759   : > { %1103 = vadd.xlane.f32.xlu0 %v4060_v50 }
 0x75d   : > { %1105 = vadd.xlane.f32.xlu0 %v4063_v49 }
 0x760   : > { %1099 = vadd.xlane.f32.xlu1 %v4056_v5 }
 0x761   : > { %1107 = vadd.xlane.f32.xlu0 %v4069_v24 }
 0x764   : > { %1115 = vadd.xlane.f32.xlu1 %v4090_v40  ;;  %v5070_v40 = vld [vmem:[#allocation5_spill] sm:$0xff] }
 0x765   : > { %1109 = vadd.xlane.f32.xlu0 %v4073_v62 }
 0x768   : > { %1119 = vadd.xlane.f32.xlu1 %v4098_v58  ;;  %v5072_v58 = vld [vmem:[#allocation7_spill] sm:$0xff] }
 0x769   : > { %1111 = vadd.xlane.f32.xlu0 %v4080_v21 }
 0x76c   : > { %1123 = vadd.xlane.f32.xlu1 %v4120_v56 }
 0x76d   : > { %1113 = vadd.xlane.f32.xlu0 %v4082_v63 }
 0x770   : > { %1127 = vadd.xlane.f32.xlu1 %v4126_v8 }
 0x771   : > { %1117 = vadd.xlane.f32.xlu0 %v4094_v19 }
 0x774   : > { %1726 = vadd.xlane.f32.xlu1 %v4352_v25 }
 0x775   : > { %1121 = vadd.xlane.f32.xlu0 %v4092_v39  ;;  %v5071_v39 = vld [vmem:[#allocation2_spill] sm:$0xff] }
 0x778   : > { %1730 = vadd.xlane.f32.xlu1 %v4356_v0 }
 0x779   : > { %1125 = vadd.xlane.f32.xlu0 %v4124_v45  ;;  %v5075_v45 = vld [vmem:[#allocation4_spill] sm:$0xff] }
 0x77c   : > { %1734 = vadd.xlane.f32.xlu1 %v4365_v33 }
 0x77d   : > { %1129 = vadd.xlane.f32.xlu0 %v4122_v27  ;;  %v5074_v27 = vld [vmem:[#allocation10_spill] sm:$0xff] }
 0x780   : > { %1738 = vadd.xlane.f32.xlu1 %v4376_v10 }
 0x781   : > { %1728 = vadd.xlane.f32.xlu0 %v4350_v46 }
 0x784   : > { %1742 = vadd.xlane.f32.xlu1 %v4386_v51  ;;  %v5077_v51 = vld [vmem:[#allocation6_spill] sm:$0xff] }
 0x785   : > { %1732 = vadd.xlane.f32.xlu0 %v4359_v59 }
 0x788   : > { %1746 = vadd.xlane.f32.xlu1 %v4394_v2 }
 0x789   : > { %1736 = vadd.xlane.f32.xlu0 %v4369_v48  ;;  %v5076_v48 = vld [vmem:[#allocation11_spill] sm:$0xff] }
 0x78c   : > { %1750 = vadd.xlane.f32.xlu1 %v4416_v4 }
 0x78d   : > { %1740 = vadd.xlane.f32.xlu0 %v4378_v23 }
 0x790   : > { %1754 = vadd.xlane.f32.xlu1 %v4422_v43  ;;  %v5079_v43 = vld [vmem:[#allocation9_spill] sm:$0xff] }
 0x791   : > { %1744 = vadd.xlane.f32.xlu0 %v4390_v38 }
 0x794   : > { %v2278_v14 = vpop.xlane.xlu1 %2277  ;;  %537 = vadd.xlane.f32.xlu1 %v3808_v35 }
 0x795   : > { %1748 = vadd.xlane.f32.xlu0 %v4388_v53  ;;  %v2274_v37 = vpop.xlane.xlu0 %2273  ;;  %v2307_v59 = vsub.f32 %v4482_v61, %v2278_v14 }
 0x796   : > { %v2305_v5 = vsub.f32 %v4487_v3, %v2274_v37 }
 0x797   : > { %v2325_v2 = vmul.f32 1.442695, %v2307_v59 }
 0x798   : > { %v2280_v50 = vpop.xlane.xlu1 %2279  ;;  %541 = vadd.xlane.f32.xlu1 %v3812_v41  ;;  %v2321_v49 = vmul.f32 1.442695, %v2305_v5 }
 0x799   : > { %1752 = vadd.xlane.f32.xlu0 %v4420_v26  ;;  %v2308_v46 = vsub.f32 %v4492_v13, %v2280_v50 }
 0x79a   : > { %3324 = vpow2.f32 %v2321_v49 }
 0x79b   : > { %v2327_v53 = vmul.f32 1.442695, %v2308_v46 }
 0x79c   : > { %v2276_v24 = vpop.xlane.xlu1 %2275  ;;  %545 = vadd.xlane.f32.xlu1 %v3823_v28  ;;  %v5073_v28 = vld [vmem:[#allocation3_spill] sm:$0xff] }
 0x79d   : > { %v2306_v62 = vsub.f32 %v4497_v15, %v2276_v24  ;;  %1756 = vadd.xlane.f32.xlu0 %v4418_v18  ;;  %v2282_v21 = vpop.xlane.xlu0 %2281  ;;  %v5078_v18 = vld [vmem:[#allocation14_spill] sm:$0xff] }
 0x79e   : > { %v2309_v23 = vsub.f32 %v4502_v57, %v2282_v21  ;;  %v5081_v57 = vld [vmem:[#allocation13_spill] sm:$0xff] }
 0x79f   : > { %v2323_v35 = vmul.f32 1.442695, %v2306_v62 }
 0x7a0   : > { %v2286_v63 = vpop.xlane.xlu1 %2285  ;;  %549 = vadd.xlane.f32.xlu1 %v5070_v40  ;;  %v2329_v26 = vmul.f32 1.442695, %v2309_v23 }
 0x7a1   : > { %3326 = vpow2.f32 %v2323_v35  ;;  %539 = vadd.xlane.f32.xlu0 %v5071_v39  ;;  %v2406_v41 = vpop.permute.xlu0 %2405  ;;  %v2311_v42 = vsub.f32 %v4507_v47, %v2286_v63 }
 0x7a2   : > { %3138 = vmatprep.subr.bf16.mxu0 %v2406_v41  ;;  %3328 = vpow2.f32 %v2327_v53 }
 0x7a3   : > { %3139 = vmatpush3.bf16.msra.mxu0 %v2406_v41  ;;  %v2333_v3 = vmul.f32 1.442695, %v2311_v42 }
 0x7a4   : > { %v2288_v19 = vpop.xlane.xlu1 %2287  ;;  %553 = vadd.xlane.f32.xlu1 %v5072_v58  ;;  %v4607_v8 = vpop.eup %3324 }
 0x7a5   : > { %543 = vadd.xlane.f32.xlu0 %v5073_v28 }
 0x7a8   : > { %v2284_v56 = vpop.xlane.xlu1 %2283  ;;  %557 = vadd.xlane.f32.xlu1 %v5074_v27 }
 0x7a9   : > { %547 = vadd.xlane.f32.xlu0 %v5075_v45  ;;  %v2310_v0 = vsub.f32 %v4517_v9, %v2284_v56  ;;  %v2312_v9 = vsub.f32 %v4512_v11, %v2288_v19  ;;  %v5082_v11 = vld [vmem:[#allocation12_spill] sm:$0xff] }
 0x7ab   : > { %v4610_v25 = vpop.eup %3326  ;;  %v2331_v38 = vmul.f32 1.442695, %v2310_v0  ;;  %v2335_v61 = vmul.f32 1.442695, %v2312_v9 }
 0x7ac   : > { %v2294_v33 = vpop.xlane.xlu1 %2293  ;;  %561 = vadd.xlane.f32.xlu1 %v5076_v48  ;;  %v2385_v10 = vpack.c.bf16 %v4610_v25, %v4607_v8  ;;  %v4625_v30 = vpop.eup %3328 }
 0x7ad   : > { %551 = vadd.xlane.f32.xlu0 %v5077_v51  ;;  %3330 = vpow2.f32 %v2331_v38  ;;  %v2315_v49 = vsub.f32 %v4522_v20, %v2294_v33 }
 0x7ae   : > { %3142 = vmatprep.mubr.bf16.mxu0 %v2385_v10  ;;  %3332 = vpow2.f32 %v2325_v2 }
 0x7af   : > { %3334 = vpow2.f32 %v2329_v26  ;;  %v2341_v63 = vmul.f32 1.442695, %v2315_v49 }
 0x7b0   : > { %v2292_v4 = vpop.xlane.xlu1 %2291  ;;  %565 = vadd.xlane.f32.xlu1 %v5078_v18  ;;  %3336 = vpow2.f32 %v2335_v61 }
 0x7b1   : > { %555 = vadd.xlane.f32.xlu0 %v5079_v43  ;;  %3338 = vpow2.f32 %v2333_v3  ;;  %v2314_v50 = vsub.f32 %v4527_v6, %v2292_v4  ;;  %v5083_v43 = vld [vmem:[#allocation34_spill] sm:$0xff] }
 0x7b3   : > { %v2339_v24 = vmul.f32 1.442695, %v2314_v50 }
 0x7b4   : > { %v2302_v15 = vpop.xlane.xlu1 %2301 }
 0x7b5   : > { %559 = vadd.xlane.f32.xlu0 %v5080_v31  ;;  %3340 = vpow2.f32 %v2339_v24  ;;  %v2319_v58 = vsub.f32 %v4532_v29, %v2302_v15  ;;  %v5086_v24 = vld [vmem:[#allocation31_spill] sm:$0xff] }
 0x7b7   : > { %v4627_v1 = vpop.eup %3330 }
 0x7b8   : > { %v2298_v13 = vpop.xlane.xlu1 %2297  ;;  %v4630_v47 = vpop.eup %3332 }
 0x7b9   : > { %563 = vadd.xlane.f32.xlu0 %v5081_v57  ;;  %v4632_v22 = vpop.eup %3334  ;;  %v2386_v60 = vpack.c.bf16 %v4625_v30, %v4630_v47  ;;  %v2317_v40 = vsub.f32 %v4539_v17, %v2298_v13 }
 0x7ba   : > { %v2387_v32 = vpack.c.bf16 %v4627_v1, %v4632_v22  ;;  %v4638_v14 = vpop.eup %3336 }
 0x7bb   : > { %v4640_v37 = vpop.eup %3338  ;;  %v2345_v6 = vmul.f32 1.442695, %v2317_v40 }
 0x7bc   : > { %v2408_v52 = vpop.permute.xlu1 %2407  ;;  %v2388_v5 = vpack.c.bf16 %v4638_v14, %v4640_v37 }
 0x7bd   : > { %567 = vadd.xlane.f32.xlu0 %v5082_v11  ;;  %3140 = vmatprep.subr.bf16.mxu0 %v2408_v52 }
 0x7be   : > { %3141 = vmatpush3.bf16.msra.mxu0 %v2408_v52  ;;  %v5084_v52 = vld [vmem:[#allocation32_spill] sm:$0xff] }
 0x7bf   : > { %v4652_v45 = vpop.eup %3340 }
 0x7c1   : > { %3143 = vmatmul.mubr.bf16.vlgmr.msra.gmra.mrb[48].mxu0 %v2386_v60 }
 0x7c2   : > { %3146 = vmatprep.mubr.bf16.mxu0 %v2387_v32 }
 0x7c9   : > { %3147 = vmatmul.mubr.bf16.gmra.mrb[52].mxu0 %v2388_v5  ;;  %v5085_v5 = vld [vmem:[#allocation36_spill] sm:$0xff] }
 0x7d2   : > { %v2290_v62 = vpop.xlane.xlu0 %2289 }
 0x7d3   : > { %v2313_v21 = vsub.f32 %v4546_v44, %v2290_v62  ;;  %v2349_v44 = vmul.f32 1.442695, %v2319_v58 }
 0x7d5   : > { %v2337_v35 = vmul.f32 1.442695, %v2313_v21 }
 0x7d6   : > { %v2296_v39 = vpop.xlane.xlu0 %2295 }
 0x7d7   : > { %3342 = vpow2.f32 %v2337_v35  ;;  %v2316_v41 = vsub.f32 %v4551_v12, %v2296_v39  ;;  %v5087_v39 = vld [vmem:[#allocation33_spill] sm:$0xff] }
 0x7d8   : > { %3344 = vpow2.f32 %v2341_v63 }
 0x7d9   : > { %v2343_v19 = vmul.f32 1.442695, %v2316_v41 }
 0x7da   : > { %v2300_v28 = vpop.xlane.xlu0 %2299 }
 0x7db   : > { %3346 = vpow2.f32 %v2343_v19  ;;  %v2318_v20 = vsub.f32 %v4556_v34, %v2300_v28 }
 0x7dc   : > { %3348 = vpow2.f32 %v2345_v6  ;;  %v5088_v6 = vld [vmem:[#allocation35_spill] sm:$0xff] }
 0x7dd   : > { %v2347_v56 = vmul.f32 1.442695, %v2318_v20 }
 0x7de   : > { %v2304_v27 = vpop.xlane.xlu0 %2303 }
 0x7df   : > { %3350 = vpow2.f32 %v2347_v56  ;;  %v2320_v17 = vsub.f32 %v4561_v36, %v2304_v27 }
 0x7e0   : > { %3352 = vpow2.f32 %v2349_v44  ;;  %v5089_v44 = vld [vmem:[#allocation38_spill] sm:$0xff] }
 0x7e1   : > { %v4654_v46 = vpop.eup %3342  ;;  %v2351_v12 = vmul.f32 1.442695, %v2320_v17 }
 0x7e2   : > { %v1102_v0 = vpop.xlane.xlu0 %1101  ;;  %v2389_v29 = vpack.c.bf16 %v4652_v45, %v4654_v46  ;;  %v4658_v59 = vpop.eup %3344 }
 0x7e3   : > { %3354 = vpow2.f32 %v2351_v12 }
 0x7e4   : > { %3356 = vrcp.f32 %v1102_v0  ;;  %3150 = vmatprep.mubr.bf16.mxu0 %v2389_v29  ;;  %v5090_v0 = vld [vmem:[#allocation40_spill] sm:$0xff] }
 0x7e5   : > { %v4660_v34 = vpop.eup %3346 }
 0x7e6   : > { %v1104_v33 = vpop.xlane.xlu0 %1103  ;;  %v2390_v36 = vpack.c.bf16 %v4660_v34, %v4658_v59  ;;  %v4664_v48 = vpop.eup %3348 }
 0x7e8   : > { %3151 = vmatmul.mubr.bf16.gmra.mrb[56].mxu0 %v2390_v36 }
 0x7e9   : > { %v4666_v10 = vpop.eup %3350 }
 0x7ea   : > { %v1106_v23 = vpop.xlane.xlu0 %1105  ;;  %v2391_v51 = vpack.c.bf16 %v4666_v10, %v4664_v48  ;;  %v4670_v53 = vpop.eup %3352 }
 0x7ec   : > { %3154 = vmatprep.mubr.bf16.mxu0 %v2391_v51 }
 0x7ed   : > { %v4672_v38 = vpop.eup %3354  ;;  %v1100_v2 = vpop.xlane.xlu1 %1099 }
 0x7ee   : > { %v3357_v4 = vpop.eup %3356  ;;  %3358 = vrcp.f32 %v1100_v2  ;;  %v1108_v18 = vpop.xlane.xlu0 %1107  ;;  %v2392_v26 = vpack.c.bf16 %v4672_v38, %v4670_v53 }
 0x7ef   : > { %3360 = vrcp.f32 %v1108_v18  ;;  %v1277_v9 = vmul.f32 %v3357_v4, %v5083_v43  ;;  %v5092_v18 = vld [vmem:[#allocation39_spill] sm:$0xff] }
 0x7f0   : > { %3362 = vrcp.f32 %v1104_v33  ;;  %3155 = vmatmul.mubr.bf16.gmra.mrb[60].mxu0 %v2392_v26 }
 0x7f1   : > { %1310 = vrot.lane.b32.xlu0 %v1277_v9, %s3519_s3  ;;  %v1116_v42 = vpop.xlane.xlu1 %1115  ;;  %3364 = vrcp.f32 %v1106_v23  ;;  %v5091_v23 = vld [vmem:[#allocation37_spill] sm:$0xff] }
 0x7f2   : > { %v1110_v15 = vpop.xlane.xlu0 %1109 }
 0x7f5   : > { %v1120_v31 = vpop.xlane.xlu1 %1119 }
 0x7f6   : > { %v1112_v61 = vpop.xlane.xlu0 %1111 }
 0x7f7   : > { %3366 = vrcp.f32 %v1112_v61 }
 0x7f8   : > { %v3359_v3 = vpop.eup %3358  ;;  %3368 = vrcp.f32 %v1110_v15 }
 0x7f9   : > { %v3361_v13 = vpop.eup %3360  ;;  %3370 = vrcp.f32 %v1116_v42  ;;  %v1124_v57 = vpop.xlane.xlu1 %1123  ;;  %v1276_v11 = vmul.f32 %v3359_v3, %v5084_v52  ;;  %v5093_v42 = vld [vmem:[#allocation42_spill] sm:$0xff]  ;;  %v5094_v3 = vld [vmem:[#allocation44_spill] sm:$0xff] }
 0x7fa   : > { %v3363_v60 = vpop.eup %3362  ;;  %v1114_v32 = vpop.xlane.xlu0 %1113  ;;  %v1280_v50 = vmul.f32 %v3361_v13, %v5085_v5 }
 0x7fb   : > { %1308 = vrot.lane.b32.xlu1 %v1276_v11, %s3519_s3  ;;  %3372 = vrcp.f32 %v1114_v32  ;;  %v1278_v62 = vmul.f32 %v3363_v60, %v5086_v24  ;;  %v3365_v21 = vpop.eup %3364  ;;  %v5095_v60 = vld [vmem:[#allocation41_spill] sm:$0xff]  ;;  %v5096_v24 = vld [vmem:[#allocation43_spill] sm:$0xff] }
 0x7fc   : > { %1316 = vrot.lane.b32.xlu0 %v1280_v50, %s3519_s3  ;;  %3374 = vrcp.f32 %v1120_v31  ;;  %v1279_v41 = vmul.f32 %v3365_v21, %v5087_v39 }
 0x7fd   : > { %v1128_v49 = vpop.xlane.xlu1 %1127 }
 0x7fe   : > { %v1118_v35 = vpop.xlane.xlu0 %1117 }
 0x7ff   : > { %1312 = vrot.lane.b32.xlu1 %v1278_v62, %s3519_s3  ;;  %3376 = vrcp.f32 %v1118_v35 }
 0x800   : > { %3378 = vrcp.f32 %v1124_v57 }
 0x801   : > { %v3367_v63 = vpop.eup %3366  ;;  %v1727_v40 = vpop.xlane.xlu1 %1726 }
 0x802   : > { %v3369_v19 = vpop.eup %3368  ;;  %v1122_v58 = vpop.xlane.xlu0 %1121  ;;  %v1282_v28 = vmul.f32 %v3367_v63, %v5088_v6 }
 0x803   : > { %v3371_v20 = vpop.eup %3370  ;;  %1314 = vrot.lane.b32.xlu1 %v1279_v41, %s3519_s3  ;;  %3380 = vrcp.f32 %v1122_v58  ;;  %v1281_v27 = vmul.f32 %v3369_v19, %v5089_v44 }
 0x804   : > { %1320 = vrot.lane.b32.xlu0 %v1282_v28, %s3519_s3  ;;  %3382 = vrcp.f32 %v1128_v49  ;;  %v1284_v29 = vmul.f32 %v3371_v20, %v5090_v0  ;;  %v5098_v20 = vld [vmem:[#allocation45_spill] sm:$0xff]  ;;  %v5099_v0 = vld [vmem:[#allocation48_spill] sm:$0xff] }
 0x805   : > { %v1731_v56 = vpop.xlane.xlu1 %1730  ;;  %v3373_v17 = vpop.eup %3372 }
 0x806   : > { %3384 = vrcp.f32 %v1731_v56  ;;  %v1126_v12 = vpop.xlane.xlu0 %1125  ;;  %v3375_v33 = vpop.eup %3374  ;;  %v1283_v51 = vmul.f32 %v3373_v17, %v5091_v23 }
 0x807   : > { %1318 = vrot.lane.b32.xlu1 %v1281_v27, %s3519_s3  ;;  %3386 = vrcp.f32 %v1126_v12  ;;  %v1286_v26 = vmul.f32 %v3375_v33, %v5092_v18  ;;  %v5100_v33 = vld [vmem:[#allocation52_spill] sm:$0xff] }
 0x808   : > { %1324 = vrot.lane.b32.xlu0 %v1284_v29, %s3519_s3  ;;  %3388 = vrcp.f32 %v1727_v40  ;;  %v5097_v40 = vld [vmem:[#allocation46_spill] sm:$0xff] }
 0x809   : > { %v1735_v36 = vpop.xlane.xlu1 %1734  ;;  %v3377_v2 = vpop.eup %3376 }
 0x80a   : > { %3390 = vrcp.f32 %v1735_v36  ;;  %v1130_v4 = vpop.xlane.xlu0 %1129  ;;  %v3379_v43 = vpop.eup %3378  ;;  %v1285_v15 = vmul.f32 %v3377_v2, %v5093_v42  ;;  %v5103_v42 = vld [vmem:[#allocation50_spill] sm:$0xff] }
 0x80b   : > { %1322 = vrot.lane.b32.xlu1 %v1283_v51, %s3519_s3  ;;  %3392 = vrcp.f32 %v1130_v4  ;;  %v1288_v13 = vmul.f32 %v3379_v43, %v5094_v3  ;;  %v5101_v51 = vld [vmem:[#allocation47_spill] sm:$0xff] }
 0x80c   : > { %1328 = vrot.lane.b32.xlu0 %v1286_v26, %s3519_s3  ;;  %v5102_v26 = vld [vmem:[#allocation51_spill] sm:$0xff] }
 0x80d   : > { %v1739_v9 = vpop.xlane.xlu1 %1738  ;;  %v3381_v31 = vpop.eup %3380 }
 0x80e   : > { %3394 = vrcp.f32 %v1739_v9  ;;  %v1729_v61 = vpop.xlane.xlu0 %1728  ;;  %v3383_v57 = vpop.eup %3382  ;;  %v1287_v32 = vmul.f32 %v3381_v31, %v5095_v60 }
 0x80f   : > { %1326 = vrot.lane.b32.xlu1 %v1285_v15, %s3519_s3  ;;  %3396 = vrcp.f32 %v1729_v61  ;;  %v1290_v62 = vmul.f32 %v3383_v57, %v5096_v24  ;;  %v5106_v24 = vld [vmem:[#allocation55_spill] sm:$0xff] }
 0x810   : > { %v3385_v52 = vpop.eup %3384  ;;  %1332 = vrot.lane.b32.xlu0 %v1288_v13, %s3519_s3  ;;  %v5104_v13 = vld [vmem:[#allocation56_spill] sm:$0xff] }
 0x811   : > { %v1743_v11 = vpop.xlane.xlu1 %1742  ;;  %v4702_v5 = vmul.f32 %v3385_v52, %v4448_v54  ;;  %v3387_v50 = vpop.eup %3386 }
 0x812   : > { %3398 = vrcp.f32 %v1743_v11  ;;  %v1733_v49 = vpop.xlane.xlu0 %1732  ;;  %v3389_v21 = vpop.eup %3388  ;;  %v1289_v39 = vmul.f32 %v3387_v50, %v5097_v40  ;;  %v5105_v11 = vld [vmem:[#allocation49_spill] sm:$0xff] }
 0x813   : > { %3400 = vrcp.f32 %v1733_v49  ;;  %1330 = vrot.lane.b32.xlu1 %v1287_v32, %s3519_s3  ;;  %v1903_v58 = vmul.f32 %v3389_v21, %v4450_v55 }
 0x814   : > { %v3391_v35 = vpop.eup %3390  ;;  %1336 = vrot.lane.b32.xlu0 %v1290_v62, %s3519_s3 }
 0x815   : > { %v1747_v63 = vpop.xlane.xlu1 %1746  ;;  %v4709_v41 = vmul.f32 %v3391_v35, %v4458_v16  ;;  %v3393_v54 = vpop.eup %3392  ;;  %v5107_v35 = vld [vmem:[#allocation54_spill] sm:$0xff] }
 0x816   : > { %3402 = vrcp.f32 %v1747_v63  ;;  %v1737_v19 = vpop.xlane.xlu0 %1736  ;;  %v1291_v56 = vmul.f32 %v3393_v54, %v5098_v20  ;;  %v5108_v54 = vld [vmem:[#allocation16_spill] sm:$0xff] }
 0x817   : > { %3404 = vrcp.f32 %v1737_v19  ;;  %1334 = vrot.lane.b32.xlu1 %v1289_v39, %s3519_s3 }
 0x818   : > { %v3395_v6 = vpop.eup %3394  ;;  %1935 = vrot.lane.b32.xlu0 %v1903_v58, %s3520_s4 }
 0x819   : > { %v1751_v28 = vpop.xlane.xlu1 %1750  ;;  %v4716_v44 = vmul.f32 %v3395_v6, %v4456_v7  ;;  %v3397_v16 = vpop.eup %3396 }
 0x81a   : > { %3406 = vrcp.f32 %v1751_v28  ;;  %v1741_v27 = vpop.xlane.xlu0 %1740  ;;  %v1904_v29 = vmul.f32 %v3397_v16, %v5099_v0  ;;  %v5109_v28 = vld [vmem:[#allocation53_spill] sm:$0xff]  ;;  %v5111_v0 = vld [vmem:[#allocation58_spill] sm:$0xff] }
 0x81b   : > { %3408 = vrcp.f32 %v1741_v27  ;;  %1338 = vrot.lane.b32.xlu1 %v1291_v56, %s3519_s3  ;;  %v5110_v27 = vld [vmem:[#allocation15_spill] sm:$0xff] }
 0x81c   : > { %v3399_v55 = vpop.eup %3398 }
 0x81d   : > { %v3401_v17 = vpop.eup %3400  ;;  %v1755_v12 = vpop.xlane.xlu1 %1754  ;;  %v4721_v36 = vmul.f32 %v3399_v55, %v5100_v33 }
 0x81e   : > { %3410 = vrcp.f32 %v1755_v12  ;;  %v1745_v23 = vpop.xlane.xlu0 %1744  ;;  %v4724_v2 = vmul.f32 %v3401_v17, %v5101_v51  ;;  %v5112_v51 = vld [vmem:[#allocation20_spill] sm:$0xff] }
 0x81f   : > { %3412 = vrcp.f32 %v1745_v23  ;;  %1937 = vrot.lane.b32.xlu1 %v1904_v29, %s3520_s4 }
 0x820   : > { %v3403_v7 = vpop.eup %3402 }
 0x821   : > { %v3405_v4 = vpop.eup %3404  ;;  %v538_v18 = vpop.xlane.xlu1 %537  ;;  %v4728_v43 = vmul.f32 %v3403_v7, %v5102_v26  ;;  %v5113_v26 = vld [vmem:[#allocation57_spill] sm:$0xff] }
 0x822   : > { %3414 = vrcp.f32 %v538_v18  ;;  %v1749_v9 = vpop.xlane.xlu0 %1748  ;;  %v4731_v15 = vmul.f32 %v3405_v4, %v5103_v42 }
 0x823   : > { %3416 = vrcp.f32 %v1749_v9 }
 0x824   : > { %v3407_v31 = vpop.eup %3406 }
 0x825   : > { %v3409_v61 = vpop.eup %3408  ;;  %v542_v3 = vpop.xlane.xlu1 %541  ;;  %v4734_v57 = vmul.f32 %v3407_v31, %v5104_v13 }
 0x826   : > { %3418 = vrcp.f32 %v542_v3  ;;  %v1753_v52 = vpop.xlane.xlu0 %1752  ;;  %v4737_v60 = vmul.f32 %v3409_v61, %v5105_v11  ;;  %v5114_v61 = vld [vmem:[#allocation19_spill] sm:$0xff] }
 0x827   : > { %3420 = vrcp.f32 %v1753_v52  ;;  %v5115_v52 = vld [vmem:[#allocation18_spill] sm:$0xff] }
 0x828   : > { %v3411_v32 = vpop.eup %3410 }
 0x829   : > { %v3413_v50 = vpop.eup %3412  ;;  %v546_v49 = vpop.xlane.xlu1 %545  ;;  %v4740_v62 = vmul.f32 %v3411_v32, %v5106_v24 }
 0x82a   : > { %3422 = vrcp.f32 %v546_v49  ;;  %v1757_v21 = vpop.xlane.xlu0 %1756  ;;  %v4743_v63 = vmul.f32 %v3413_v50, %v5107_v35  ;;  %v5116_v49 = vld [vmem:[#allocation24_spill] sm:$0xff]  ;;  %v5117_v35 = vld [vmem:[#allocation17_spill] sm:$0xff] }
 0x82b   : > { %3424 = vrcp.f32 %v1757_v21 }
 0x82c   : > { %v3415_v40 = vpop.eup %3414 }
 0x82d   : > { %v3417_v39 = vpop.eup %3416  ;;  %v714_v19 = vmul.f32 %v3415_v40, %v5108_v54  ;;  %v550_v58 = vpop.xlane.xlu1 %549 }
 0x82e   : > { %3426 = vrcp.f32 %v550_v58  ;;  %v540_v6 = vpop.xlane.xlu0 %539  ;;  %v4753_v20 = vmul.f32 %v3417_v39, %v5109_v28 }
 0x82f   : > { %3428 = vrcp.f32 %v540_v6  ;;  %730 = vst.msk [vmem:[%s4749_s7] sm:$0xff] %vm279_vm0, %v714_v19  ;;  %v5118_v19 = vld [vmem:[#allocation23_spill] sm:$0xff]  ;;  %v5119_v6 = vld [vmem:[#allocation22_spill] sm:$0xff] }
 0x830   : > { %v3419_v56 = vpop.eup %3418 }
 0x831   : > { %v3421_v16 = vpop.eup %3420  ;;  %v716_v55 = vmul.f32 %v3419_v56, %v5110_v27  ;;  %v554_v17 = vpop.xlane.xlu1 %553  ;;  %v5120_v27 = vld [vmem:[#allocation28_spill] sm:$0xff] }
 0x832   : > { %3430 = vrcp.f32 %v554_v17  ;;  %v544_v12 = vpop.xlane.xlu0 %543  ;;  %v4759_v29 = vmul.f32 %v3421_v16, %v5111_v0  ;;  %v5121_v17 = vld [vmem:[#allocation21_spill] sm:$0xff] }
 0x833   : > { %3432 = vrcp.f32 %v544_v12  ;;  %732 = vst.msk [vmem:[%s4749_s7 + $0x10] sm:$0xff] %vm279_vm0, %v716_v55 }
 0x834   : > { %v3423_v33 = vpop.eup %3422 }
 0x835   : > { %v3425_v23 = vpop.eup %3424  ;;  %v718_v7 = vmul.f32 %v3423_v33, %v5112_v51  ;;  %v558_v4 = vpop.xlane.xlu1 %557  ;;  %v5122_v33 = vld [vmem:[#allocation27_spill] sm:$0xff]  ;;  %v5123_v51 = vld [vmem:[#allocation26_spill] sm:$0xff] }
 0x836   : > { %3434 = vrcp.f32 %v558_v4  ;;  %v548_v18 = vpop.xlane.xlu0 %547  ;;  %v4765_v9 = vmul.f32 %v3425_v23, %v5113_v26 }
 0x837   : > { %3436 = vrcp.f32 %v548_v18  ;;  %2359 = vadd.xlane.f32.xlu0 %v4625_v30  ;;  %734 = vst.msk [vmem:[%s4749_s7 + $0x20] sm:$0xff] %vm279_vm0, %v718_v7 }
 0x838   : > { %v3427_v42 = vpop.eup %3426 }
 0x839   : > { %v3429_v31 = vpop.eup %3428  ;;  %v720_v3 = vmul.f32 %v3427_v42, %v5114_v61  ;;  %v562_v13 = vpop.xlane.xlu1 %561  ;;  %v5125_v42 = vld [vmem:[#allocation30_spill] sm:$0xff] }
 0x83a   : > { %v715_v11 = vmul.f32 %v3429_v31, %v5115_v52  ;;  %3438 = vrcp.f32 %v562_v13  ;;  %v552_v32 = vpop.xlane.xlu0 %551  ;;  %v5126_v31 = vld [vmem:[#allocation29_spill] sm:$0xff] }
 0x83b   : > { %3440 = vrcp.f32 %v552_v32  ;;  %2355 = vadd.xlane.f32.xlu0 %v4610_v25  ;;  %736 = vst.msk [vmem:[%s4749_s7 + $0x30] sm:$0xff] %vm279_vm0, %v720_v3 }
 0x83c   : > { %v3431_v50 = vpop.eup %3430  ;;  %731 = vst.msk [vmem:[%s4749_s7 + $0x8] sm:$0xff] %vm279_vm0, %v715_v11 }
 0x83d   : > { %v3433_v30 = vpop.eup %3432  ;;  %v722_v24 = vmul.f32 %v3431_v50, %v5116_v49  ;;  %v566_v21 = vpop.xlane.xlu1 %565 }
 0x83e   : > { %v717_v40 = vmul.f32 %v3433_v30, %v5117_v35  ;;  %3442 = vrcp.f32 %v566_v21  ;;  %v556_v39 = vpop.xlane.xlu0 %555 }
 0x83f   : > { %3444 = vrcp.f32 %v556_v39  ;;  %2367 = vadd.xlane.f32.xlu0 %v4638_v14  ;;  %738 = vst.msk [vmem:[%s4749_s7 + $0x40] sm:$0xff] %vm279_vm0, %v722_v24 }
 0x840   : > { %v3435_v25 = vpop.eup %3434  ;;  %733 = vst.msk [vmem:[%s4749_s7 + $0x18] sm:$0xff] %vm279_vm0, %v717_v40 }
 0x841   : > { %v3437_v54 = vpop.eup %3436  ;;  %v724_v58 = vmul.f32 %v3435_v25, %v5118_v19 }
 0x842   : > { %v719_v28 = vmul.f32 %v3437_v54, %v5119_v6  ;;  %v560_v56 = vpop.xlane.xlu0 %559 }
 0x843   : > { %3446 = vrcp.f32 %v560_v56  ;;  %2363 = vadd.xlane.f32.xlu0 %v4627_v1  ;;  %2357 = vadd.xlane.f32.xlu1 %v4630_v47  ;;  %740 = vst.msk [vmem:[%s4749_s7 + $0x50] sm:$0xff] %vm279_vm0, %v724_v58 }
 0x844   : > { %v3439_v14 = vpop.eup %3438  ;;  %735 = vst.msk [vmem:[%s4749_s7 + $0x28] sm:$0xff] %vm279_vm0, %v719_v28 }
 0x845   : > { %v3441_v16 = vpop.eup %3440  ;;  %v726_v55 = vmul.f32 %v3439_v14, %v5120_v27 }
 0x846   : > { %v721_v12 = vmul.f32 %v3441_v16, %v5121_v17  ;;  %v564_v0 = vpop.xlane.xlu0 %563 }
 0x847   : > { %3448 = vrcp.f32 %v564_v0  ;;  %2375 = vadd.xlane.f32.xlu0 %v4660_v34  ;;  %2353 = vadd.xlane.f32.xlu1 %v4607_v8  ;;  %742 = vst.msk [vmem:[%s4749_s7 + $0x60] sm:$0xff] %vm279_vm0, %v726_v55  ;;  %v5124_v34 = vld [vmem:[#allocation25_spill] sm:$0xff] }
 0x848   : > { %v3443_v1 = vpop.eup %3442  ;;  %737 = vst.msk [vmem:[%s4749_s7 + $0x38] sm:$0xff] %vm279_vm0, %v721_v12 }
 0x849   : > { %v3445_v47 = vpop.eup %3444  ;;  %v728_v23 = vmul.f32 %v3443_v1, %v5122_v33 }
 0x84a   : > { %v723_v7 = vmul.f32 %v3445_v47, %v5123_v51  ;;  %v568_v4 = vpop.xlane.xlu0 %567 }
 0x84b   : > { %3450 = vrcp.f32 %v568_v4  ;;  %2371 = vadd.xlane.f32.xlu0 %v4652_v45  ;;  %2365 = vadd.xlane.f32.xlu1 %v4640_v37  ;;  %744 = vst.msk [vmem:[%s4749_s7 + $0x70] sm:$0xff] %vm279_vm0, %v728_v23 }
 0x84c   : > { %739 = vst.msk [vmem:[%s4749_s7 + $0x48] sm:$0xff] %vm279_vm0, %v723_v7 }
 0x84d   : > { %v3447_v8 = vpop.eup %3446 }
 0x84e   : > { %v725_v18 = vmul.f32 %v3447_v8, %v5124_v34 }
 0x84f   : > { %2383 = vadd.xlane.f32.xlu0 %v4672_v38  ;;  %2361 = vadd.xlane.f32.xlu1 %v4632_v22 }
 0x850   : > { %741 = vst.msk [vmem:[%s4749_s7 + $0x58] sm:$0xff] %vm279_vm0, %v725_v18 }
 0x851   : > { %v3449_v26 = vpop.eup %3448 }
 0x852   : > { %v727_v45 = vmul.f32 %v3449_v26, %v5125_v42 }
 0x853   : > { %2379 = vadd.xlane.f32.xlu0 %v4666_v10  ;;  %2373 = vadd.xlane.f32.xlu1 %v4658_v59 }
 0x854   : > { %743 = vst.msk [vmem:[%s4749_s7 + $0x68] sm:$0xff] %vm279_vm0, %v727_v45 }
 0x855   : > { %v3451_v37 = vpop.eup %3450 }
 0x856   : > { %v729_v61 = vmul.f32 %v3451_v37, %v5126_v31 }
 0x857   : > { %2369 = vadd.xlane.f32.xlu1 %v4654_v46 }
 0x858   : > { %745 = vst.msk [vmem:[%s4749_s7 + $0x78] sm:$0xff] %vm279_vm0, %v729_v61 }
 0x85b   : > { %2381 = vadd.xlane.f32.xlu1 %v4670_v53 }
 0x85f   : > { %2377 = vadd.xlane.f32.xlu1 %v4664_v48 }
 0x863   : > { %v1311_v22 = vpop.permute.xlu0 %1310 }
 0x864   : > { %1358 = vst.msk [vmem:[%s4749_s7 + $0x8] sm:$0xff] %vm1356_vm2, %v1311_v22 }
 0x869   : > { %1939 = vrot.lane.b32.xlu0 %v4702_v5, %s3520_s4 }
 0x86d   : > { %v1309_v59 = vpop.permute.xlu1 %1308  ;;  %1943 = vrot.lane.b32.xlu0 %v4709_v41, %s3520_s4 }
 0x86e   : > { %1357 = vst.msk [vmem:[%s4749_s7] sm:$0xff] %vm1356_vm2, %v1309_v59  ;;  %v1317_v46 = vpop.permute.xlu0 %1316 }
 0x86f   : > { %1361 = vst.msk [vmem:[%s4749_s7 + $0x20] sm:$0xff] %vm1356_vm2, %v1317_v46 }
 0x870   : > { %1941 = vrot.lane.b32.xlu1 %v4724_v2, %s3520_s4 }
 0x871   : > { %v1313_v48 = vpop.permute.xlu1 %1312  ;;  %1947 = vrot.lane.b32.xlu0 %v4716_v44, %s3520_s4 }
 0x872   : > { %1359 = vst.msk [vmem:[%s4749_s7 + $0x10] sm:$0xff] %vm1356_vm2, %v1313_v48 }
 0x874   : > { %1945 = vrot.lane.b32.xlu1 %v4731_v15, %s3520_s4 }
 0x875   : > { %v1315_v10 = vpop.permute.xlu1 %1314  ;;  %1951 = vrot.lane.b32.xlu0 %v4721_v36, %s3520_s4 }
 0x876   : > { %1360 = vst.msk [vmem:[%s4749_s7 + $0x18] sm:$0xff] %vm1356_vm2, %v1315_v10  ;;  %v1321_v53 = vpop.permute.xlu0 %1320 }
 0x877   : > { %1363 = vst.msk [vmem:[%s4749_s7 + $0x30] sm:$0xff] %vm1356_vm2, %v1321_v53 }
 0x878   : > { %1949 = vrot.lane.b32.xlu1 %v4737_v60, %s3520_s4 }
 0x879   : > { %v1319_v38 = vpop.permute.xlu1 %1318  ;;  %1955 = vrot.lane.b32.xlu0 %v4728_v43, %s3520_s4 }
 0x87a   : > { %1362 = vst.msk [vmem:[%s4749_s7 + $0x28] sm:$0xff] %vm1356_vm2, %v1319_v38  ;;  %v1325_v5 = vpop.permute.xlu0 %1324 }
 0x87b   : > { %1365 = vst.msk [vmem:[%s4749_s7 + $0x40] sm:$0xff] %vm1356_vm2, %v1325_v5 }
 0x87c   : > { %1953 = vrot.lane.b32.xlu1 %v4743_v63, %s3520_s4 }
 0x87d   : > { %1959 = vrot.lane.b32.xlu0 %v4734_v57, %s3520_s4  ;;  %v1323_v41 = vpop.permute.xlu1 %1322 }
 0x87e   : > { %1364 = vst.msk [vmem:[%s4749_s7 + $0x38] sm:$0xff] %vm1356_vm2, %v1323_v41  ;;  %v1329_v44 = vpop.permute.xlu0 %1328 }
 0x87f   : > { %1367 = vst.msk [vmem:[%s4749_s7 + $0x50] sm:$0xff] %vm1356_vm2, %v1329_v44 }
 0x880   : > { %1957 = vrot.lane.b32.xlu1 %v4753_v20, %s3520_s4 }
 0x881   : > { %1963 = vrot.lane.b32.xlu0 %v4740_v62, %s3520_s4  ;;  %v1327_v36 = vpop.permute.xlu1 %1326 }
 0x882   : > { %1366 = vst.msk [vmem:[%s4749_s7 + $0x48] sm:$0xff] %vm1356_vm2, %v1327_v36  ;;  %v1333_v2 = vpop.permute.xlu0 %1332 }
 0x883   : > { %1369 = vst.msk [vmem:[%s4749_s7 + $0x60] sm:$0xff] %vm1356_vm2, %v1333_v2 }
 0x884   : > { %1961 = vrot.lane.b32.xlu1 %v4759_v29, %s3520_s4 }
 0x885   : > { %v1331_v43 = vpop.permute.xlu1 %1330 }
 0x886   : > { %1368 = vst.msk [vmem:[%s4749_s7 + $0x58] sm:$0xff] %vm1356_vm2, %v1331_v43  ;;  %v1337_v15 = vpop.permute.xlu0 %1336 }
 0x887   : > { %1371 = vst.msk [vmem:[%s4749_s7 + $0x70] sm:$0xff] %vm1356_vm2, %v1337_v15 }
 0x888   : > { %1965 = vrot.lane.b32.xlu1 %v4765_v9, %s3520_s4 }
 0x889   : > { %v1335_v57 = vpop.permute.xlu1 %1334 }
 0x88a   : > { %1370 = vst.msk [vmem:[%s4749_s7 + $0x68] sm:$0xff] %vm1356_vm2, %v1335_v57  ;;  %v1936_v60 = vpop.permute.xlu0 %1935 }
 0x88b   : > { %1984 = vst.msk [vmem:[%s4749_s7] sm:$0xff] %vm1983_vm3, %v1936_v60 }
 0x88d   : > { %v1339_v62 = vpop.permute.xlu1 %1338 }
 0x88e   : > { %1372 = vst.msk [vmem:[%s4749_s7 + $0x78] sm:$0xff] %vm1356_vm2, %v1339_v62 }
 0x891   : > { %v1938_v63 = vpop.permute.xlu1 %1937 }
 0x892   : > { %1985 = vst.msk [vmem:[%s4749_s7 + $0x8] sm:$0xff] %vm1983_vm3, %v1938_v63 }
 0x894   : > { %v3144_v20 = vpop.f32.mrb[48].mxu0 }
 0x895   : > { %v2451_v29 = vpop.f32.mrb[49].mxu0 }
 0x896   : > { %v3145_v3 = vpop.f32.mrb[50].mxu0 }
 0x897   : > { %v2454_v13 = vpop.f32.mrb[51].mxu0 }
 0x89c   : > { %v4888_v52 = vpop.f32.mrb[52].mxu0 }
 0x89d   : > { %v4890_v9 = vpop.f32.mrb[53].mxu0 }
 0x89e   : > { %v3149_v11 = vpop.f32.mrb[54].mxu0 }
 0x89f   : > { %v2470_v32 = vpop.f32.mrb[55].mxu0 }
 0x8bb   : > { %v4892_v50 = vpop.f32.mrb[56].mxu0 }
 0x8bc   : > { %v4894_v30 = vpop.f32.mrb[57].mxu0 }
 0x8bd   : > { %v3153_v49 = vpop.f32.mrb[58].mxu0 }
 0x8be   : > { %v2486_v24 = vpop.f32.mrb[59].mxu0 }
 0x8c3   : > { %v4896_v21 = vpop.f32.mrb[60].mxu0 }
 0x8c4   : > { %v4898_v35 = vpop.f32.mrb[61].mxu0  ;;  %v2360_v40 = vpop.xlane.xlu0 %2359 }
 0x8c5   : > { %3452 = vrcp.f32 %v2360_v40  ;;  %v4900_v39 = vpop.f32.mrb[62].mxu0 }
 0x8c6   : > { %v4902_v25 = vpop.f32.mrb[63].mxu0 }
 0x8c8   : > { %v2356_v54 = vpop.xlane.xlu0 %2355 }
 0x8c9   : > { %3454 = vrcp.f32 %v2356_v54 }
 0x8cc   : > { %v2368_v19 = vpop.xlane.xlu0 %2367 }
 0x8cd   : > { %3456 = vrcp.f32 %v2368_v19 }
 0x8cf   : > { %v3453_v58 = vpop.eup %3452 }
 0x8d0   : > { %v2358_v6 = vpop.xlane.xlu1 %2357  ;;  %v2364_v28 = vpop.xlane.xlu0 %2363  ;;  %v2533_v56 = vmul.f32 %v3453_v58, %v3145_v3 }
 0x8d1   : > { %3458 = vrcp.f32 %v2358_v6 }
 0x8d2   : > { %3460 = vrcp.f32 %v2364_v28  ;;  %2568 = vrot.lane.b32.xlu1 %v2533_v56, %s3521_s8 }
 0x8d3   : > { %v3455_v14 = vpop.eup %3454 }
 0x8d4   : > { %v2354_v16 = vpop.xlane.xlu1 %2353  ;;  %v2376_v27 = vpop.xlane.xlu0 %2375  ;;  %v2531_v55 = vmul.f32 %v3455_v14, %v2454_v13 }
 0x8d5   : > { %3462 = vrcp.f32 %v2354_v16 }
 0x8d6   : > { %3464 = vrcp.f32 %v2376_v27  ;;  %2564 = vrot.lane.b32.xlu1 %v2531_v55, %s3521_s8 }
 0x8d7   : > { %v3457_v17 = vpop.eup %3456 }
 0x8d8   : > { %v2366_v12 = vpop.xlane.xlu1 %2365  ;;  %v2372_v0 = vpop.xlane.xlu0 %2371  ;;  %v2537_v1 = vmul.f32 %v3457_v17, %v3149_v11 }
 0x8d9   : > { %3466 = vrcp.f32 %v2366_v12 }
 0x8da   : > { %3468 = vrcp.f32 %v2372_v0  ;;  %2576 = vrot.lane.b32.xlu1 %v2537_v1, %s3521_s8 }
 0x8db   : > { %v3459_v47 = vpop.eup %3458 }
 0x8dc   : > { %v3461_v33 = vpop.eup %3460  ;;  %v2362_v23 = vpop.xlane.xlu1 %2361  ;;  %v2532_v7 = vmul.f32 %v3459_v47, %v3144_v20 }
 0x8dd   : > { %v2384_v51 = vpop.xlane.xlu0 %2383  ;;  %3470 = vrcp.f32 %v2362_v23  ;;  %v2535_v4 = vmul.f32 %v3461_v33, %v2470_v32 }
 0x8de   : > { %2566 = vrot.lane.b32.xlu0 %v2532_v7, %s3521_s8 }
 0x8df   : > { %v3463_v8 = vpop.eup %3462  ;;  %2572 = vrot.lane.b32.xlu1 %v2535_v4, %s3521_s8 }
 0x8e0   : > { %v3465_v34 = vpop.eup %3464  ;;  %v2374_v18 = vpop.xlane.xlu1 %2373  ;;  %v2530_v42 = vmul.f32 %v3463_v8, %v2451_v29 }
 0x8e1   : > { %v2380_v26 = vpop.xlane.xlu0 %2379  ;;  %3472 = vrcp.f32 %v2374_v18  ;;  %v2541_v45 = vmul.f32 %v3465_v34, %v3153_v49 }
 0x8e2   : > { %3474 = vrcp.f32 %v2380_v26  ;;  %2562 = vrot.lane.b32.xlu0 %v2530_v42, %s3521_s8 }
 0x8e3   : > { %v3467_v37 = vpop.eup %3466  ;;  %2584 = vrot.lane.b32.xlu1 %v2541_v45, %s3521_s8  ;;  %3476 = vrcp.f32 %v2384_v51 }
 0x8e4   : > { %v3469_v31 = vpop.eup %3468  ;;  %v2370_v61 = vpop.xlane.xlu1 %2369  ;;  %v2536_v59 = vmul.f32 %v3467_v37, %v4888_v52 }
 0x8e5   : > { %v1940_v22 = vpop.permute.xlu0 %1939  ;;  %3478 = vrcp.f32 %v2370_v61  ;;  %v2539_v46 = vmul.f32 %v3469_v31, %v2486_v24 }
 0x8e6   : > { %1986 = vst.msk [vmem:[%s4749_s7 + $0x10] sm:$0xff] %vm1983_vm3, %v1940_v22  ;;  %2574 = vrot.lane.b32.xlu0 %v2536_v59, %s3521_s8 }
 0x8e7   : > { %v3471_v48 = vpop.eup %3470  ;;  %2580 = vrot.lane.b32.xlu1 %v2539_v46, %s3521_s8 }
 0x8e8   : > { %v2382_v10 = vpop.xlane.xlu1 %2381  ;;  %v2534_v38 = vmul.f32 %v3471_v48, %v4890_v9 }
 0x8e9   : > { %v1944_v53 = vpop.permute.xlu0 %1943 }
 0x8ea   : > { %1988 = vst.msk [vmem:[%s4749_s7 + $0x20] sm:$0xff] %vm1983_vm3, %v1944_v53  ;;  %2570 = vrot.lane.b32.xlu0 %v2534_v38, %s3521_s8 }
 0x8eb   : > { %v3473_v5 = vpop.eup %3472 }
 0x8ec   : > { %v3475_v41 = vpop.eup %3474  ;;  %v2378_v44 = vpop.xlane.xlu1 %2377  ;;  %v2540_v2 = vmul.f32 %v3473_v5, %v4892_v50 }
 0x8ed   : > { %v1948_v36 = vpop.permute.xlu0 %1947  ;;  %3480 = vrcp.f32 %v2378_v44  ;;  %v2543_v43 = vmul.f32 %v3475_v41, %v4902_v25  ;;  %v3477_v15 = vpop.eup %3476 }
 0x8ee   : > { %1990 = vst.msk [vmem:[%s4749_s7 + $0x30] sm:$0xff] %vm1983_vm3, %v1948_v36  ;;  %2582 = vrot.lane.b32.xlu0 %v2540_v2, %s3521_s8  ;;  %3482 = vrcp.f32 %v2382_v10  ;;  %v2545_v20 = vmul.f32 %v3477_v15, %v4900_v39 }
 0x8ef   : > { %v3479_v57 = vpop.eup %3478  ;;  %2588 = vrot.lane.b32.xlu1 %v2543_v43, %s3521_s8 }
 0x8f0   : > { %v1942_v60 = vpop.permute.xlu1 %1941  ;;  %v2538_v63 = vmul.f32 %v3479_v57, %v4894_v30 }
 0x8f1   : > { %v1952_v62 = vpop.permute.xlu0 %1951  ;;  %1987 = vst.msk [vmem:[%s4749_s7 + $0x18] sm:$0xff] %vm1983_vm3, %v1942_v60 }
 0x8f2   : > { %1992 = vst.msk [vmem:[%s4749_s7 + $0x40] sm:$0xff] %vm1983_vm3, %v1952_v62  ;;  %2578 = vrot.lane.b32.xlu0 %v2538_v63, %s3521_s8 }
 0x8f3   : > { %2592 = vrot.lane.b32.xlu1 %v2545_v20, %s3521_s8 }
 0x8f4   : > { %v1946_v29 = vpop.permute.xlu1 %1945 }
 0x8f5   : > { %v1956_v3 = vpop.permute.xlu0 %1955  ;;  %1989 = vst.msk [vmem:[%s4749_s7 + $0x28] sm:$0xff] %vm1983_vm3, %v1946_v29 }
 0x8f6   : > { %1994 = vst.msk [vmem:[%s4749_s7 + $0x50] sm:$0xff] %vm1983_vm3, %v1956_v3 }
 0x8f7   : > { %v3481_v13 = vpop.eup %3480 }
 0x8f8   : > { %v1950_v52 = vpop.permute.xlu1 %1949  ;;  %v2542_v11 = vmul.f32 %v3481_v13, %v4898_v35  ;;  %v3483_v32 = vpop.eup %3482 }
 0x8f9   : > { %v1960_v9 = vpop.permute.xlu0 %1959  ;;  %1991 = vst.msk [vmem:[%s4749_s7 + $0x38] sm:$0xff] %vm1983_vm3, %v1950_v52  ;;  %v2544_v49 = vmul.f32 %v3483_v32, %v4896_v21 }
 0x8fa   : > { %1996 = vst.msk [vmem:[%s4749_s7 + $0x60] sm:$0xff] %vm1983_vm3, %v1960_v9  ;;  %2586 = vrot.lane.b32.xlu0 %v2542_v11, %s3521_s8 }
 0x8fc   : > { %v1954_v50 = vpop.permute.xlu1 %1953 }
 0x8fd   : > { %v1964_v30 = vpop.permute.xlu0 %1963  ;;  %1993 = vst.msk [vmem:[%s4749_s7 + $0x48] sm:$0xff] %vm1983_vm3, %v1954_v50 }
 0x8fe   : > { %1998 = vst.msk [vmem:[%s4749_s7 + $0x70] sm:$0xff] %vm1983_vm3, %v1964_v30  ;;  %2590 = vrot.lane.b32.xlu0 %v2544_v49, %s3521_s8 }
 0x900   : > { %v1958_v24 = vpop.permute.xlu1 %1957 }
 0x901   : > { %1995 = vst.msk [vmem:[%s4749_s7 + $0x58] sm:$0xff] %vm1983_vm3, %v1958_v24 }
 0x904   : > { %v1962_v35 = vpop.permute.xlu1 %1961 }
 0x905   : > { %1997 = vst.msk [vmem:[%s4749_s7 + $0x68] sm:$0xff] %vm1983_vm3, %v1962_v35 }
 0x908   : > { %v1966_v40 = vpop.permute.xlu1 %1965 }
 0x909   : > { %1999 = vst.msk [vmem:[%s4749_s7 + $0x78] sm:$0xff] %vm1983_vm3, %v1966_v40 }
 0x944   : > { %v2569_v21 = vpop.permute.xlu1 %2568 }
 0x945   : > { %2614 = vst.msk [vmem:[%s4749_s7 + $0x18] sm:$0xff] %vm2610_vm4, %v2569_v21 }
 0x948   : > { %v2565_v39 = vpop.permute.xlu1 %2564 }
 0x949   : > { %2612 = vst.msk [vmem:[%s4749_s7 + $0x8] sm:$0xff] %vm2610_vm4, %v2565_v39 }
 0x94c   : > { %v2577_v25 = vpop.permute.xlu1 %2576 }
 0x94d   : > { %2618 = vst.msk [vmem:[%s4749_s7 + $0x38] sm:$0xff] %vm2610_vm4, %v2577_v25 }
 0x950   : > { %v2567_v54 = vpop.permute.xlu0 %2566 }
 0x951   : > { %v2573_v19 = vpop.permute.xlu1 %2572  ;;  %2613 = vst.msk [vmem:[%s4749_s7 + $0x10] sm:$0xff] %vm2610_vm4, %v2567_v54 }
 0x952   : > { %2616 = vst.msk [vmem:[%s4749_s7 + $0x28] sm:$0xff] %vm2610_vm4, %v2573_v19 }
 0x954   : > { %v2563_v58 = vpop.permute.xlu0 %2562 }
 0x955   : > { %v2585_v6 = vpop.permute.xlu1 %2584  ;;  %2611 = vst.msk [vmem:[%s4749_s7] sm:$0xff] %vm2610_vm4, %v2563_v58 }
 0x956   : > { %2622 = vst.msk [vmem:[%s4749_s7 + $0x58] sm:$0xff] %vm2610_vm4, %v2585_v6 }
 0x958   : > { %v2575_v28 = vpop.permute.xlu0 %2574 }
 0x959   : > { %v2581_v56 = vpop.permute.xlu1 %2580  ;;  %2617 = vst.msk [vmem:[%s4749_s7 + $0x30] sm:$0xff] %vm2610_vm4, %v2575_v28 }
 0x95a   : > { %2620 = vst.msk [vmem:[%s4749_s7 + $0x48] sm:$0xff] %vm2610_vm4, %v2581_v56 }
 0x95c   : > { %v2571_v14 = vpop.permute.xlu0 %2570 }
 0x95d   : > { %2615 = vst.msk [vmem:[%s4749_s7 + $0x20] sm:$0xff] %vm2610_vm4, %v2571_v14 }
 0x960   : > { %v2583_v16 = vpop.permute.xlu0 %2582 }
 0x961   : > { %v2589_v27 = vpop.permute.xlu1 %2588  ;;  %2621 = vst.msk [vmem:[%s4749_s7 + $0x50] sm:$0xff] %vm2610_vm4, %v2583_v16 }
 0x962   : > { %2624 = vst.msk [vmem:[%s4749_s7 + $0x68] sm:$0xff] %vm2610_vm4, %v2589_v27 }
 0x964   : > { %v2579_v55 = vpop.permute.xlu0 %2578 }
 0x965   : > { %v2593_v17 = vpop.permute.xlu1 %2592  ;;  %2619 = vst.msk [vmem:[%s4749_s7 + $0x40] sm:$0xff] %vm2610_vm4, %v2579_v55 }
 0x966   : > { %2626 = vst.msk [vmem:[%s4749_s7 + $0x78] sm:$0xff] %vm2610_vm4, %v2593_v17 }
 0x96c   : > { %v2587_v12 = vpop.permute.xlu0 %2586 }
 0x96d   : > { %2623 = vst.msk [vmem:[%s4749_s7 + $0x60] sm:$0xff] %vm2610_vm4, %v2587_v12 }
 0x970   : > { %v2591_v0 = vpop.permute.xlu0 %2590 }
 0x971   : > { %2625 = vst.msk [vmem:[%s4749_s7 + $0x70] sm:$0xff] %vm2610_vm4, %v2591_v0 }
 0x972 PF: > { %s12_s11 = sadd.s32 1, %s3506_s11   ;;  %s5127_s9 = smov %s3502_s10 }
 0x973   : > { %p9_p5 = scmp.ge.s32.totalorder %s12_s11, 4   ;;  %s5128_s10 = smov %s5130_s12 }
 0x975   :  { %11 = sbr.rel (!%p9_p5) target bundleno = 2 (0x2), region = 61 }

// kernel: vit_forward.23
= control target key start
LH: loop header
LB: loop body
LE: loop exit
PB: predicated region body
PF: predicated region fallthrough
CT: control target
= control target key end

     0   :  { %v203_v0 = vmov 0.0   ;;  %vm204_vm0 = vmmov 0   ;;  %s264_s1 = inlined_call_operand.vmem [shape: bf16[128,128], index: 1, kind: input, shape index: {}]   ;;  %s265_s0 = inlined_call_operand.vmem [shape: f32[16,128], index: 0, kind: input, shape index: {}]   ;;  %s266_s2 = inlined_call_operand.vmem [shape: f32[1,128], index: 2, kind: input, shape index: {}]   ;;  %s267_s3 = inlined_call_operand.vmem [shape: f32[16,128], index: 3, kind: output, shape index: {}]  }
   0x1   :  { %173 = vmatprep.subr.bf16.mxu0 %v203_v0  ;;  %v195_v1 = vld [vmem:[%s264_s1] sm:$0xff]   ;;  %189 = vmatprep.mubr.msk.bf16.mxu0 %vm204_vm0, %v203_v0  ;;  %v196_v2 = vld [vmem:[%s264_s1 + $0x8] sm:$0xff]   ;;  %v197_v3 = vld [vmem:[%s264_s1 + $0x10] sm:$0xff]  }
   0x2   :  { %174 = vmatpush3.bf16.msra.mxu0 %v195_v1  ;;  %v198_v4 = vld [vmem:[%s264_s1 + $0x18] sm:$0xff]   ;;  %v199_v5 = vld [vmem:[%s264_s1 + $0x20] sm:$0xff]   ;;  %v200_v6 = vld [vmem:[%s264_s1 + $0x28] sm:$0xff]  }
   0x3   :  { %175 = vmatprep.subr.bf16.mxu0 %v203_v0  ;;  %v201_v7 = vld [vmem:[%s264_s1 + $0x30] sm:$0xff]   ;;  %v202_v8 = vld [vmem:[%s264_s1 + $0x38] sm:$0xff]   ;;  %v23_v9 = vld [vmem:[%s265_s0] sm:$0xff] }
   0x4   :  { %v24_v10 = vld [vmem:[%s265_s0 + $0x8] sm:$0xff]  ;;  %v163_v12 = vld [vmem:[%s266_s2] ss:$0 sm:$0xff] }
   0x5   :  { %v25_v11 = vpack.c.bf16 %v24_v10, %v23_v9 }
   0x6   :  { %176 = vmatpush3.bf16.msra.mxu0 %v196_v2 }
   0x7   :  { %177 = vmatprep.subr.bf16.mxu0 %v203_v0 }
   0xa   :  { %178 = vmatpush3.bf16.msra.mxu0 %v197_v3 }
   0xb   :  { %179 = vmatprep.subr.bf16.mxu0 %v203_v0 }
   0xe   :  { %180 = vmatpush3.bf16.msra.mxu0 %v198_v4 }
   0xf   :  { %181 = vmatprep.subr.bf16.mxu0 %v203_v0 }
  0x12   :  { %182 = vmatpush3.bf16.msra.mxu0 %v199_v5 }
  0x13   :  { %183 = vmatprep.subr.bf16.mxu0 %v203_v0 }
  0x16   :  { %184 = vmatpush3.bf16.msra.mxu0 %v200_v6 }
  0x17   :  { %185 = vmatprep.subr.bf16.mxu0 %v203_v0 }
  0x1a   :  { %186 = vmatpush3.bf16.msra.mxu0 %v201_v7 }
  0x1b   :  { %187 = vmatprep.subr.bf16.mxu0 %v203_v0 }
  0x1e   :  { %188 = vmatpush3.bf16.msra.mxu0 %v202_v8 }
  0x21   :  { %190 = vmatmul.mubr.bf16.vlgmr.msra.gmra.mrb[0].mxu0 %v25_v11 }
  0xf4   :  { %v124_v13 = vpop.f32.mrb[0].mxu0 }
  0xf5   :  { %v147_v14 = vadd.f32 %v163_v12, %v124_v13  ;;  %v191_v15 = vpop.f32.mrb[1].mxu0 }
  0xf6   :  { %v127_v16 = vpop.f32.mrb[2].mxu0 }
  0xf7   :  { %149 = vst [vmem:[%s267_s3] sm:$0xff] %v147_v14  ;;  %v148_v17 = vadd.f32 %v163_v12, %v127_v16  ;;  %v192_v18 = vpop.f32.mrb[3].mxu0 }
  0xf9   :  { %150 = vst [vmem:[%s267_s3 + $0x8] sm:$0xff] %v148_v17 }

</bundles_post_ra>
